<compile_context>
chip_gen: v7x
topology: tpu7x:2x2x1
jax: 0.10.0
libtpu: 0.0.40
codegen_flags: <defaults>
</compile_context>

<pallas_src>
import itertools

import numpy as np
import jax
import jax.numpy as jnp
from jax.experimental import pallas as pl
from jax.experimental.pallas import tpu as pltpu


# ---------------------------------------------------------------------------
# Static geometry (specialised to batch=2, 1x16^3 input).
# ---------------------------------------------------------------------------
N = 2
C1, C2, C3 = 16, 32, 64
TAPS = list(itertools.product(range(3), range(3), range(3)))  # (kd, kh, kw)

# h1 ("phase-on-lane" storage of the conv1 output, zero padded to 10^3):
#   row  = n*128 + ud*25 + uh*5 + uw            (u in 0..4, 125 used per n)
#   lane = phase*16 + c                          (phase = parities of padded
#                                                 position t = 2u + parity)
H1_ROWS = 288        # 256 data rows + 32 rows so slab reads stay in bounds
# layer-2 accumulator rows: n*128 + md*25 + mh*5 + mw   (m in 0..3 valid)
M2_ROWS = 256
# st3 ("phase-on-lane" storage of the conv2 output, zero padded to 6^3):
#   row  = n*32 + vd*9 + vh*3 + vw               (v in 0..2, 27 used per n)
#   lane = phase*32 + c
ST3_ROWS = 80        # 64 data rows + 16 rows so slab reads stay in bounds
# layer-3 accumulator rows: n*32 + wd*9 + wh*3 + ww      (w in 0..1 valid)
M3_ROWS = 64

# Tap groups: g = k // 2 per axis (8 groups); within a group the tap's parity
# phase selects the weight block.  Row offsets of the contiguous LHS slabs:
_OFF2 = [((g >> 2) & 1) * 25 + ((g >> 1) & 1) * 5 + (g & 1) for g in range(8)]
_OFF3 = [((g >> 2) & 1) * 9 + ((g >> 1) & 1) * 3 + (g & 1) for g in range(8)]

# Slab reads may overrun the valid data rows (by up to 31 / 13 rows).  Those
# reads only feed accumulator rows that the SQ / SELO selections discard, and
# the overrun rows are explicitly initialised (zero), so they are harmless.
assert max(_OFF2) + M2_ROWS <= H1_ROWS
assert max(_OFF3) + M3_ROWS <= ST3_ROWS


def _build_a1_maps():
    """Gather indices (into flat x, + appended 1.0) and mask for A1 rows.

    A1 has one 32-wide column block per parity phase:
      cols p*32 + [0..26]  : the 27-tap conv1 input patch (0 where padded)
      col  p*32 + 27       : validity flag (gates the folded conv1 bias)
      cols p*32 + [28..31] : zero (pad K of each block from 28 to 32)
    Rows with no valid data (u padding / overrun rows) stay exactly zero.
    """
    idx = np.zeros((H1_ROWS, 256), np.int64)
    msk = np.zeros((H1_ROWS, 256), np.float32)
    one_pos = N * 16 * 16 * 16                      # index of appended 1.0
    for p in range(8):
        par = ((p >> 2) & 1, (p >> 1) & 1, p & 1)
        for n in range(N):
            for ud in range(5):
                for uh in range(5):
                    for uw in range(5):
                        row = n * 128 + ud * 25 + uh * 5 + uw
                        t = (2 * ud + par[0], 2 * uh + par[1], 2 * uw + par[2])
                        if not all(1 <= ti <= 8 for ti in t):
                            continue                 # zero-padding position
                        j = tuple(ti - 1 for ti in t)  # conv1 output coord
                        col0 = p * 32
                        idx[row, col0 + 27] = one_pos
                        msk[row, col0 + 27] = 1.0
                        for c, (kd, kh, kw) in enumerate(TAPS):
                            src = (2 * j[0] + kd - 1,
                                   2 * j[1] + kh - 1,
                                   2 * j[2] + kw - 1)
                            if all(0 <= s < 16 for s in src):
                                idx[row, col0 + c] = (
                                    ((n * 16 + src[0]) * 16 + src[1]) * 16
                                    + src[2])
                                msk[row, col0 + c] = 1.0
    return idx.astype(np.int32), msk


def _build_sq():
    """Per-phase 0/1 selection (layer-2 acc rows -> st3 rows), per batch blk."""
    s = np.zeros((8, 32, 128), np.float32)
    for q in range(8):
        par = ((q >> 2) & 1, (q >> 1) & 1, q & 1)
        for vd in range(3):
            for vh in range(3):
                for vw in range(3):
                    m = (2 * vd + par[0] - 1, 2 * vh + par[1] - 1,
                         2 * vw + par[2] - 1)
                    if all(0 <= mi <= 3 for mi in m):
                        s[q, vd * 9 + vh * 3 + vw,
                          m[0] * 25 + m[1] * 5 + m[2]] = 1.0
    return s


def _build_selo():
    """0/1 selection of the 16 valid layer-3 accumulator rows (NDHW order)."""
    s = np.zeros((16, M3_ROWS), np.float32)
    r = 0
    for n in range(N):
        for wd in range(2):
            for wh in range(2):
                for ww in range(2):
                    s[r, n * 32 + wd * 9 + wh * 3 + ww] = 1.0
                    r += 1
    return s


_A1_IDX, _A1_MASK = _build_a1_maps()
_SQ = _build_sq()
_SELO = _build_selo()


# ---------------------------------------------------------------------------
# Fused kernel: conv1 + conv2 + conv3 (+bias, +ReLU), intermediates in VMEM.
# ---------------------------------------------------------------------------
def _encoder_kernel(a1_ref, w1_ref, w2g_ref, sq_ref, w3g_ref, b2_ref, b3_ref,
                    selo_ref, out_ref, h1_ref, st3_ref):
    f32, bf16 = jnp.float32, jnp.bfloat16

    # ---- layer 1: one block-diagonal GEMM (bias folded in), ReLU.
    #      Output is the lane-dense phase-on-lane storage h1 (288, 128).
    h1 = jnp.dot(a1_ref[...], w1_ref[...], preferred_element_type=f32)
    h1_ref[...] = jnp.maximum(h1, 0.0)

    # ---- layer 2: 8 grouped GEMMs over contiguous lane-dense slabs of h1.
    acc2 = None
    for g in range(8):
        slab = h1_ref[_OFF2[g]:_OFF2[g] + M2_ROWS, :].astype(bf16)  # (256,128)
        d = jnp.dot(slab, w2g_ref[g], preferred_element_type=f32)   # (256, 32)
        acc2 = d if acc2 is None else acc2 + d
    a2 = jnp.maximum(acc2 + b2_ref[...], 0.0).astype(bf16)          # (256, 32)

    # ---- re-index layer-2 output into the phase-on-lane storage st3 with
    #      tiny constant 0/1 selection matmuls (invalid rows become zero).
    st3_ref[N * 32:, :] = jnp.zeros((ST3_ROWS - N * 32, 256), f32)
    for q in range(8):
        for n in range(N):
            sel = jnp.dot(sq_ref[q], a2[n * 128:(n + 1) * 128, :],
                          preferred_element_type=f32)                # (32, 32)
            st3_ref[n * 32:(n + 1) * 32, q * 32:(q + 1) * 32] = sel

    # ---- layer 3: 8 grouped GEMMs over contiguous slabs of st3.
    acc3 = None
    for g in range(8):
        slab = st3_ref[_OFF3[g]:_OFF3[g] + M3_ROWS, :].astype(bf16)  # (64,256)
        d = jnp.dot(slab, w3g_ref[g], preferred_element_type=f32)    # (64, 64)
        acc3 = d if acc3 is None else acc3 + d

    # ---- epilogue: bias + ReLU, then select the 16 valid rows with a tiny
    #      selection matmul (garbage rows are finite, selector is 0 there).
    o = jnp.maximum(acc3 + b3_ref[...], 0.0)                         # (64, 64)
    out_ref[...] = jnp.dot(selo_ref[...], o, preferred_element_type=f32)


def _full(shape):
    nd = len(shape)
    return pl.BlockSpec(shape, lambda i, nd=nd: (0,) * nd)


def _fused_call(a1, w1bd, w2g, sq, w3g, b2, b3, selo):
    args = (a1, w1bd, w2g, sq, w3g, b2, b3, selo)
    return pl.pallas_call(
        _encoder_kernel,
        out_shape=jax.ShapeDtypeStruct((16, C3), jnp.float32),
        grid_spec=pltpu.PrefetchScalarGridSpec(
            num_scalar_prefetch=0,
            grid=(1,),
            in_specs=[_full(a.shape) for a in args],
            out_specs=_full((16, C3)),
            scratch_shapes=[pltpu.VMEM((H1_ROWS, 128), jnp.float32),
                            pltpu.VMEM((ST3_ROWS, 256), jnp.float32)]),
        compiler_params=pltpu.CompilerParams(
            dimension_semantics=("arbitrary",)),
    )(*args)
    # TODO(synk): at batch=2 a single TensorCore / grid=(1,) is the right
    # choice; if batch grows, make batch a "parallel" grid axis.


# ---------------------------------------------------------------------------
# One-time, x-independent packing of the parameters + selection constants.
# ---------------------------------------------------------------------------
def prepare_params(params):
    (w1, b1), (w2, b2), (w3, b3) = params
    f32, bf16 = jnp.float32, jnp.bfloat16

    # conv1: block-diagonal over the 8 parity phases; bias rides the GEMM via
    # the validity column (col 27 of each 32-wide block).
    w1bd = jnp.zeros((256, 128), f32)
    w1t = w1.reshape(C1, 27).T                               # (27, 16)
    for p in range(8):
        w1bd = w1bd.at[p * 32:p * 32 + 27, p * 16:(p + 1) * 16].set(w1t)
        w1bd = w1bd.at[p * 32 + 27, p * 16:(p + 1) * 16].set(b1)

    def grouped(w, cin, cout):
        g_mat = jnp.zeros((8, 8 * cin, cout), f32)
        for g in range(8):
            gd, gh, gw = (g >> 2) & 1, (g >> 1) & 1, g & 1
            for p in range(8):
                pd, ph, pw = (p >> 2) & 1, (p >> 1) & 1, p & 1
                kd, kh, kw = 2 * gd + pd, 2 * gh + ph, 2 * gw + pw
                if kd > 2 or kh > 2 or kw > 2:
                    continue
                g_mat = g_mat.at[g, p * cin:(p + 1) * cin, :].set(
                    w[:, :, kd, kh, kw].T)
        return g_mat

    return dict(
        a1_idx=jnp.asarray(_A1_IDX),
        a1_mask=jnp.asarray(_A1_MASK),
        w1bd=w1bd.astype(bf16),
        w2g=grouped(w2, C1, C2).astype(bf16),                 # (8, 128, 32)
        w3g=grouped(w3, C2, C3).astype(bf16),                 # (8, 256, 64)
        sq=jnp.asarray(_SQ).astype(bf16),                     # (8, 32, 128)
        selo=jnp.asarray(_SELO),                              # (16, 64) f32
        b2=b2.reshape(1, C2).astype(f32),
        b3=b3.reshape(1, C3).astype(f32),
    )


# ---------------------------------------------------------------------------
# Per-step forward: conv1 patch gather + ONE fused kernel + 4 KiB re-layout.
# ---------------------------------------------------------------------------
@jax.jit
def encoder_forward(x, packed):
    assert x.shape == (N, 1, 16, 16, 16), x.shape
    xflat1 = jnp.concatenate([x.reshape(-1), jnp.ones((1,), x.dtype)])
    a1 = (jnp.take(xflat1, packed["a1_idx"]) * packed["a1_mask"]
          ).astype(jnp.bfloat16)                              # (288, 256)
    out16 = _fused_call(a1, packed["w1bd"], packed["w2g"], packed["sq"],
                        packed["w3g"], packed["b2"], packed["b3"],
                        packed["selo"])                       # (16, 64) f32
    out = out16.reshape(N, 2, 2, 2, C3)
    return jnp.transpose(out, (0, 4, 1, 2, 3))                # (2, 64, 2, 2, 2)


# ---------------------------------------------------------------------------
# Parameters + pure-JAX reference (bf16-rounded operands to match the kernel's
# bf16 MXU inputs; accumulation stays f32 on both sides).
# ---------------------------------------------------------------------------
def init_encoder_params(key):
    shapes = [((16, 1, 3, 3, 3), (16,)),
              ((32, 16, 3, 3, 3), (32,)),
              ((64, 32, 3, 3, 3), (64,))]
    params = []
    for i, (ws, bs) in enumerate(shapes):
        kw, kb = jax.random.split(jax.random.fold_in(key, i))
        fan_in = ws[1] * ws[2] * ws[3] * ws[4]
        scale = 1.0 / jnp.sqrt(jnp.float32(fan_in))
        params.append((jax.random.normal(kw, ws, jnp.float32) * scale,
                       jax.random.normal(kb, bs, jnp.float32) * scale))
    return params


def _round_bf16(v):
    return v.astype(jnp.bfloat16).astype(jnp.float32)


def _encoder_ref(x, params):
    dn = ("NCDHW", "OIDHW", "NCDHW")
    act = _round_bf16(x)
    for i, (w, b) in enumerate(params):
        bias = _round_bf16(b) if i == 0 else b   # conv1 bias rides the bf16 GEMM
        y = jax.lax.conv_general_dilated(
            act, _round_bf16(w), window_strides=(2, 2, 2),
            padding=((1, 1), (1, 1), (1, 1)), dimension_numbers=dn)
        y = jax.nn.relu(y + bias.reshape(1, -1, 1, 1, 1))
        act = _round_bf16(y) if i < 2 else y     # intermediates held as bf16
    return act


if __name__ == "__main__":
    key = jax.random.PRNGKey(0)
    kx, kp = jax.random.split(key)

    x = jax.random.normal(kx, (N, 1, 16, 16, 16), jnp.float32)
    params = init_encoder_params(kp)
    packed = prepare_params(params)          # one-time, x-independent packing

    out = encoder_forward(x, packed)
    out = jax.block_until_ready(out)
    assert out.shape == (2, 64, 2, 2, 2), out.shape

    ref = _encoder_ref(x, params)
    err = float(jnp.max(jnp.abs(out - ref)))
    assert jnp.allclose(out, ref, atol=1e-2, rtol=1e-2), err

    print("KERNEL_OK")
</pallas_src>

<mosaic_0001>
module attributes {stable_mosaic.version = 11 : i64} {
  func.func @_encoder_kernel(%arg0: i32, %arg1: memref<288x256xbf16, #tpu.memory_space<vmem>>, %arg2: memref<256x128xbf16, #tpu.memory_space<vmem>>, %arg3: memref<8x128x32xbf16, #tpu.memory_space<vmem>>, %arg4: memref<8x32x128xbf16, #tpu.memory_space<vmem>>, %arg5: memref<8x256x64xbf16, #tpu.memory_space<vmem>>, %arg6: memref<1x32xf32, #tpu.memory_space<vmem>>, %arg7: memref<1x64xf32, #tpu.memory_space<vmem>>, %arg8: memref<16x64xf32, #tpu.memory_space<vmem>>, %arg9: memref<16x64xf32, #tpu.memory_space<vmem>>, %arg10: memref<288x128xf32, #tpu.memory_space<vmem>>, %arg11: memref<80x256xf32, #tpu.memory_space<vmem>>) attributes {dimension_semantics = [#tpu.dimension_semantics<arbitrary>], iteration_bounds = array<i64: 1>, scalar_prefetch = 0 : i64, scratch_operands = 2 : i64, tpu.core_type = #tpu.core_type<tc>, window_params = [{pipeline_mode = #tpu.pipeline_mode<synchronous>, transform_indices = @transform_0, window_bounds = array<i64: 288, 256>}, {pipeline_mode = #tpu.pipeline_mode<synchronous>, transform_indices = @transform_1, window_bounds = array<i64: 256, 128>}, {pipeline_mode = #tpu.pipeline_mode<synchronous>, transform_indices = @transform_2, window_bounds = array<i64: 8, 128, 32>}, {pipeline_mode = #tpu.pipeline_mode<synchronous>, transform_indices = @transform_3, window_bounds = array<i64: 8, 32, 128>}, {pipeline_mode = #tpu.pipeline_mode<synchronous>, transform_indices = @transform_4, window_bounds = array<i64: 8, 256, 64>}, {pipeline_mode = #tpu.pipeline_mode<synchronous>, transform_indices = @transform_5, window_bounds = array<i64: 1, 32>}, {pipeline_mode = #tpu.pipeline_mode<synchronous>, transform_indices = @transform_6, window_bounds = array<i64: 1, 64>}, {pipeline_mode = #tpu.pipeline_mode<synchronous>, transform_indices = @transform_7, window_bounds = array<i64: 16, 64>}, {pipeline_mode = #tpu.pipeline_mode<synchronous>, transform_indices = @transform_8, window_bounds = array<i64: 16, 64>}]} {
    %c0 = arith.constant 0 : index
    %c0_0 = arith.constant 0 : index
    %0 = vector.load %arg1[%c0, %c0_0] : memref<288x256xbf16, #tpu.memory_space<vmem>>, vector<288x256xbf16>
    %c0_1 = arith.constant 0 : index
    %c0_2 = arith.constant 0 : index
    %1 = vector.load %arg2[%c0_1, %c0_2] : memref<256x128xbf16, #tpu.memory_space<vmem>>, vector<256x128xbf16>
    %cst = arith.constant dense<0.000000e+00> : vector<288x128xf32>
    %2 = tpu.matmul %0, %1, %cst {dimension_numbers = #tpu.dot_dimension_numbers<[1], [0], [0], [1], [0, 0, 1, 1], [], []>} : vector<288x256xbf16>, vector<256x128xbf16>, vector<288x128xf32> -> vector<288x128xf32>
    %cst_3 = arith.constant 0.000000e+00 : f32
    %3 = vector.broadcast %cst_3 : f32 to vector<288x128xf32>
    %4 = arith.maximumf %2, %3 : vector<288x128xf32>
    %c0_4 = arith.constant 0 : index
    %c0_5 = arith.constant 0 : index
    %5 = vector.load %arg10[%c0_4, %c0_5] : memref<288x128xf32, #tpu.memory_space<vmem>>, vector<288x128xf32>
    tpu.vector_store %arg10[%c0_4, %c0_5], %4 {strides = array<i32>} : memref<288x128xf32, #tpu.memory_space<vmem>>, vector<288x128xf32>,
    %c0_6 = arith.constant 0 : index
    %c0_7 = arith.constant 0 : index
    %6 = vector.load %arg10[%c0_6, %c0_7] : memref<288x128xf32, #tpu.memory_space<vmem>>, vector<256x128xf32>
    %7 = arith.truncf %6 : vector<256x128xf32> to vector<256x128xbf16>
    %c0_8 = arith.constant 0 : index
    %c0_9 = arith.constant 0 : index
    %c0_10 = arith.constant 0 : index
    %8 = vector.load %arg3[%c0_8, %c0_9, %c0_10] : memref<8x128x32xbf16, #tpu.memory_space<vmem>>, vector<1x128x32xbf16>
    %9 = vector.shape_cast %8 : vector<1x128x32xbf16> to vector<128x32xbf16>
    %cst_11 = arith.constant dense<0.000000e+00> : vector<256x32xf32>
    %10 = tpu.matmul %7, %9, %cst_11 {dimension_numbers = #tpu.dot_dimension_numbers<[1], [0], [0], [1], [0, 0, 1, 1], [], []>} : vector<256x128xbf16>, vector<128x32xbf16>, vector<256x32xf32> -> vector<256x32xf32>
    %c1 = arith.constant 1 : index
    %c0_12 = arith.constant 0 : index
    %11 = vector.load %arg10[%c1, %c0_12] : memref<288x128xf32, #tpu.memory_space<vmem>>, vector<256x128xf32>
    %12 = arith.truncf %11 : vector<256x128xf32> to vector<256x128xbf16>
    %c1_13 = arith.constant 1 : index
    %c0_14 = arith.constant 0 : index
    %c0_15 = arith.constant 0 : index
    %13 = vector.load %arg3[%c1_13, %c0_14, %c0_15] : memref<8x128x32xbf16, #tpu.memory_space<vmem>>, vector<1x128x32xbf16>
    %14 = vector.shape_cast %13 : vector<1x128x32xbf16> to vector<128x32xbf16>
    %cst_16 = arith.constant dense<0.000000e+00> : vector<256x32xf32>
    %15 = tpu.matmul %12, %14, %cst_16 {dimension_numbers = #tpu.dot_dimension_numbers<[1], [0], [0], [1], [0, 0, 1, 1], [], []>} : vector<256x128xbf16>, vector<128x32xbf16>, vector<256x32xf32> -> vector<256x32xf32>
    %16 = arith.addf %10, %15 : vector<256x32xf32>
    %c5 = arith.constant 5 : index
    %c0_17 = arith.constant 0 : index
    %17 = vector.load %arg10[%c5, %c0_17] : memref<288x128xf32, #tpu.memory_space<vmem>>, vector<256x128xf32>
    %18 = arith.truncf %17 : vector<256x128xf32> to vector<256x128xbf16>
    %c2 = arith.constant 2 : index
    %c0_18 = arith.constant 0 : index
    %c0_19 = arith.constant 0 : index
    %19 = vector.load %arg3[%c2, %c0_18, %c0_19] : memref<8x128x32xbf16, #tpu.memory_space<vmem>>, vector<1x128x32xbf16>
    %20 = vector.shape_cast %19 : vector<1x128x32xbf16> to vector<128x32xbf16>
    %cst_20 = arith.constant dense<0.000000e+00> : vector<256x32xf32>
    %21 = tpu.matmul %18, %20, %cst_20 {dimension_numbers = #tpu.dot_dimension_numbers<[1], [0], [0], [1], [0, 0, 1, 1], [], []>} : vector<256x128xbf16>, vector<128x32xbf16>, vector<256x32xf32> -> vector<256x32xf32>
    %22 = arith.addf %16, %21 : vector<256x32xf32>
    %c6 = arith.constant 6 : index
    %c0_21 = arith.constant 0 : index
    %23 = vector.load %arg10[%c6, %c0_21] : memref<288x128xf32, #tpu.memory_space<vmem>>, vector<256x128xf32>
    %24 = arith.truncf %23 : vector<256x128xf32> to vector<256x128xbf16>
    %c3 = arith.constant 3 : index
    %c0_22 = arith.constant 0 : index
    %c0_23 = arith.constant 0 : index
    %25 = vector.load %arg3[%c3, %c0_22, %c0_23] : memref<8x128x32xbf16, #tpu.memory_space<vmem>>, vector<1x128x32xbf16>
    %26 = vector.shape_cast %25 : vector<1x128x32xbf16> to vector<128x32xbf16>
    %cst_24 = arith.constant dense<0.000000e+00> : vector<256x32xf32>
    %27 = tpu.matmul %24, %26, %cst_24 {dimension_numbers = #tpu.dot_dimension_numbers<[1], [0], [0], [1], [0, 0, 1, 1], [], []>} : vector<256x128xbf16>, vector<128x32xbf16>, vector<256x32xf32> -> vector<256x32xf32>
    %28 = arith.addf %22, %27 : vector<256x32xf32>
    %c25 = arith.constant 25 : index
    %c0_25 = arith.constant 0 : index
    %29 = vector.load %arg10[%c25, %c0_25] : memref<288x128xf32, #tpu.memory_space<vmem>>, vector<256x128xf32>
    %30 = arith.truncf %29 : vector<256x128xf32> to vector<256x128xbf16>
    %c4 = arith.constant 4 : index
    %c0_26 = arith.constant 0 : index
    %c0_27 = arith.constant 0 : index
    %31 = vector.load %arg3[%c4, %c0_26, %c0_27] : memref<8x128x32xbf16, #tpu.memory_space<vmem>>, vector<1x128x32xbf16>
    %32 = vector.shape_cast %31 : vector<1x128x32xbf16> to vector<128x32xbf16>
    %cst_28 = arith.constant dense<0.000000e+00> : vector<256x32xf32>
    %33 = tpu.matmul %30, %32, %cst_28 {dimension_numbers = #tpu.dot_dimension_numbers<[1], [0], [0], [1], [0, 0, 1, 1], [], []>} : vector<256x128xbf16>, vector<128x32xbf16>, vector<256x32xf32> -> vector<256x32xf32>
    %34 = arith.addf %28, %33 : vector<256x32xf32>
    %c26 = arith.constant 26 : index
    %c0_29 = arith.constant 0 : index
    %35 = vector.load %arg10[%c26, %c0_29] : memref<288x128xf32, #tpu.memory_space<vmem>>, vector<256x128xf32>
    %36 = arith.truncf %35 : vector<256x128xf32> to vector<256x128xbf16>
    %c5_30 = arith.constant 5 : index
    %c0_31 = arith.constant 0 : index
    %c0_32 = arith.constant 0 : index
    %37 = vector.load %arg3[%c5_30, %c0_31, %c0_32] : memref<8x128x32xbf16, #tpu.memory_space<vmem>>, vector<1x128x32xbf16>
    %38 = vector.shape_cast %37 : vector<1x128x32xbf16> to vector<128x32xbf16>
    %cst_33 = arith.constant dense<0.000000e+00> : vector<256x32xf32>
    %39 = tpu.matmul %36, %38, %cst_33 {dimension_numbers = #tpu.dot_dimension_numbers<[1], [0], [0], [1], [0, 0, 1, 1], [], []>} : vector<256x128xbf16>, vector<128x32xbf16>, vector<256x32xf32> -> vector<256x32xf32>
    %40 = arith.addf %34, %39 : vector<256x32xf32>
    %c30 = arith.constant 30 : index
    %c0_34 = arith.constant 0 : index
    %41 = vector.load %arg10[%c30, %c0_34] : memref<288x128xf32, #tpu.memory_space<vmem>>, vector<256x128xf32>
    %42 = arith.truncf %41 : vector<256x128xf32> to vector<256x128xbf16>
    %c6_35 = arith.constant 6 : index
    %c0_36 = arith.constant 0 : index
    %c0_37 = arith.constant 0 : index
    %43 = vector.load %arg3[%c6_35, %c0_36, %c0_37] : memref<8x128x32xbf16, #tpu.memory_space<vmem>>, vector<1x128x32xbf16>
    %44 = vector.shape_cast %43 : vector<1x128x32xbf16> to vector<128x32xbf16>
    %cst_38 = arith.constant dense<0.000000e+00> : vector<256x32xf32>
    %45 = tpu.matmul %42, %44, %cst_38 {dimension_numbers = #tpu.dot_dimension_numbers<[1], [0], [0], [1], [0, 0, 1, 1], [], []>} : vector<256x128xbf16>, vector<128x32xbf16>, vector<256x32xf32> -> vector<256x32xf32>
    %46 = arith.addf %40, %45 : vector<256x32xf32>
    %c31 = arith.constant 31 : index
    %c0_39 = arith.constant 0 : index
    %47 = vector.load %arg10[%c31, %c0_39] : memref<288x128xf32, #tpu.memory_space<vmem>>, vector<256x128xf32>
    %48 = arith.truncf %47 : vector<256x128xf32> to vector<256x128xbf16>
    %c7 = arith.constant 7 : index
    %c0_40 = arith.constant 0 : index
    %c0_41 = arith.constant 0 : index
    %49 = vector.load %arg3[%c7, %c0_40, %c0_41] : memref<8x128x32xbf16, #tpu.memory_space<vmem>>, vector<1x128x32xbf16>
    %50 = vector.shape_cast %49 : vector<1x128x32xbf16> to vector<128x32xbf16>
    %cst_42 = arith.constant dense<0.000000e+00> : vector<256x32xf32>
    %51 = tpu.matmul %48, %50, %cst_42 {dimension_numbers = #tpu.dot_dimension_numbers<[1], [0], [0], [1], [0, 0, 1, 1], [], []>} : vector<256x128xbf16>, vector<128x32xbf16>, vector<256x32xf32> -> vector<256x32xf32>
    %52 = arith.addf %46, %51 : vector<256x32xf32>
    %c0_43 = arith.constant 0 : index
    %c0_44 = arith.constant 0 : index
    %53 = vector.load %arg6[%c0_43, %c0_44] : memref<1x32xf32, #tpu.memory_space<vmem>>, vector<1x32xf32>
    %54 = vector.broadcast %53 : vector<1x32xf32> to vector<256x32xf32>
    %55 = arith.addf %52, %54 : vector<256x32xf32>
    %cst_45 = arith.constant 0.000000e+00 : f32
    %56 = vector.broadcast %cst_45 : f32 to vector<256x32xf32>
    %57 = arith.maximumf %55, %56 : vector<256x32xf32>
    %58 = arith.truncf %57 : vector<256x32xf32> to vector<256x32xbf16>
    %cst_46 = arith.constant 0.000000e+00 : f32
    %59 = vector.broadcast %cst_46 : f32 to vector<16x256xf32>
    %c64 = arith.constant 64 : index
    %c0_47 = arith.constant 0 : index
    %60 = vector.load %arg11[%c64, %c0_47] : memref<80x256xf32, #tpu.memory_space<vmem>>, vector<16x256xf32>
    tpu.vector_store %arg11[%c64, %c0_47], %59 {strides = array<i32>} : memref<80x256xf32, #tpu.memory_space<vmem>>, vector<16x256xf32>,
    %c0_48 = arith.constant 0 : index
    %c0_49 = arith.constant 0 : index
    %c0_50 = arith.constant 0 : index
    %61 = vector.load %arg4[%c0_48, %c0_49, %c0_50] : memref<8x32x128xbf16, #tpu.memory_space<vmem>>, vector<1x32x128xbf16>
    %62 = vector.shape_cast %61 : vector<1x32x128xbf16> to vector<32x128xbf16>
    %63 = vector.extract_strided_slice %58 {offsets = [0, 0], sizes = [128, 32], strides = [1, 1]} : vector<256x32xbf16> to vector<128x32xbf16>
    %cst_51 = arith.constant dense<0.000000e+00> : vector<32x32xf32>
    %64 = tpu.matmul %62, %63, %cst_51 {dimension_numbers = #tpu.dot_dimension_numbers<[1], [0], [0], [1], [0, 0, 1, 1], [], []>} : vector<32x128xbf16>, vector<128x32xbf16>, vector<32x32xf32> -> vector<32x32xf32>
    %c0_52 = arith.constant 0 : index
    %c0_53 = arith.constant 0 : index
    %65 = vector.load %arg11[%c0_52, %c0_53] : memref<80x256xf32, #tpu.memory_space<vmem>>, vector<32x32xf32>
    tpu.vector_store %arg11[%c0_52, %c0_53], %64 {strides = array<i32>} : memref<80x256xf32, #tpu.memory_space<vmem>>, vector<32x32xf32>,
    %c0_54 = arith.constant 0 : index
    %c0_55 = arith.constant 0 : index
    %c0_56 = arith.constant 0 : index
    %66 = vector.load %arg4[%c0_54, %c0_55, %c0_56] : memref<8x32x128xbf16, #tpu.memory_space<vmem>>, vector<1x32x128xbf16>
    %67 = vector.shape_cast %66 : vector<1x32x128xbf16> to vector<32x128xbf16>
    %68 = vector.extract_strided_slice %58 {offsets = [128, 0], sizes = [128, 32], strides = [1, 1]} : vector<256x32xbf16> to vector<128x32xbf16>
    %cst_57 = arith.constant dense<0.000000e+00> : vector<32x32xf32>
    %69 = tpu.matmul %67, %68, %cst_57 {dimension_numbers = #tpu.dot_dimension_numbers<[1], [0], [0], [1], [0, 0, 1, 1], [], []>} : vector<32x128xbf16>, vector<128x32xbf16>, vector<32x32xf32> -> vector<32x32xf32>
    %c32 = arith.constant 32 : index
    %c0_58 = arith.constant 0 : index
    %70 = vector.load %arg11[%c32, %c0_58] : memref<80x256xf32, #tpu.memory_space<vmem>>, vector<32x32xf32>
    tpu.vector_store %arg11[%c32, %c0_58], %69 {strides = array<i32>} : memref<80x256xf32, #tpu.memory_space<vmem>>, vector<32x32xf32>,
    %c1_59 = arith.constant 1 : index
    %c0_60 = arith.constant 0 : index
    %c0_61 = arith.constant 0 : index
    %71 = vector.load %arg4[%c1_59, %c0_60, %c0_61] : memref<8x32x128xbf16, #tpu.memory_space<vmem>>, vector<1x32x128xbf16>
    %72 = vector.shape_cast %71 : vector<1x32x128xbf16> to vector<32x128xbf16>
    %73 = vector.extract_strided_slice %58 {offsets = [0, 0], sizes = [128, 32], strides = [1, 1]} : vector<256x32xbf16> to vector<128x32xbf16>
    %cst_62 = arith.constant dense<0.000000e+00> : vector<32x32xf32>
    %74 = tpu.matmul %72, %73, %cst_62 {dimension_numbers = #tpu.dot_dimension_numbers<[1], [0], [0], [1], [0, 0, 1, 1], [], []>} : vector<32x128xbf16>, vector<128x32xbf16>, vector<32x32xf32> -> vector<32x32xf32>
    %c0_63 = arith.constant 0 : index
    %c32_64 = arith.constant 32 : index
    %75 = vector.load %arg11[%c0_63, %c32_64] : memref<80x256xf32, #tpu.memory_space<vmem>>, vector<32x32xf32>
    tpu.vector_store %arg11[%c0_63, %c32_64], %74 {strides = array<i32>} : memref<80x256xf32, #tpu.memory_space<vmem>>, vector<32x32xf32>,
    %c1_65 = arith.constant 1 : index
    %c0_66 = arith.constant 0 : index
    %c0_67 = arith.constant 0 : index
    %76 = vector.load %arg4[%c1_65, %c0_66, %c0_67] : memref<8x32x128xbf16, #tpu.memory_space<vmem>>, vector<1x32x128xbf16>
    %77 = vector.shape_cast %76 : vector<1x32x128xbf16> to vector<32x128xbf16>
    %78 = vector.extract_strided_slice %58 {offsets = [128, 0], sizes = [128, 32], strides = [1, 1]} : vector<256x32xbf16> to vector<128x32xbf16>
    %cst_68 = arith.constant dense<0.000000e+00> : vector<32x32xf32>
    %79 = tpu.matmul %77, %78, %cst_68 {dimension_numbers = #tpu.dot_dimension_numbers<[1], [0], [0], [1], [0, 0, 1, 1], [], []>} : vector<32x128xbf16>, vector<128x32xbf16>, vector<32x32xf32> -> vector<32x32xf32>
    %c32_69 = arith.constant 32 : index
    %c32_70 = arith.constant 32 : index
    %80 = vector.load %arg11[%c32_69, %c32_70] : memref<80x256xf32, #tpu.memory_space<vmem>>, vector<32x32xf32>
    tpu.vector_store %arg11[%c32_69, %c32_70], %79 {strides = array<i32>} : memref<80x256xf32, #tpu.memory_space<vmem>>, vector<32x32xf32>,
    %c2_71 = arith.constant 2 : index
    %c0_72 = arith.constant 0 : index
    %c0_73 = arith.constant 0 : index
    %81 = vector.load %arg4[%c2_71, %c0_72, %c0_73] : memref<8x32x128xbf16, #tpu.memory_space<vmem>>, vector<1x32x128xbf16>
    %82 = vector.shape_cast %81 : vector<1x32x128xbf16> to vector<32x128xbf16>
    %83 = vector.extract_strided_slice %58 {offsets = [0, 0], sizes = [128, 32], strides = [1, 1]} : vector<256x32xbf16> to vector<128x32xbf16>
    %cst_74 = arith.constant dense<0.000000e+00> : vector<32x32xf32>
    %84 = tpu.matmul %82, %83, %cst_74 {dimension_numbers = #tpu.dot_dimension_numbers<[1], [0], [0], [1], [0, 0, 1, 1], [], []>} : vector<32x128xbf16>, vector<128x32xbf16>, vector<32x32xf32> -> vector<32x32xf32>
    %c0_75 = arith.constant 0 : index
    %c64_76 = arith.constant 64 : index
    %85 = vector.load %arg11[%c0_75, %c64_76] : memref<80x256xf32, #tpu.memory_space<vmem>>, vector<32x32xf32>
    tpu.vector_store %arg11[%c0_75, %c64_76], %84 {strides = array<i32>} : memref<80x256xf32, #tpu.memory_space<vmem>>, vector<32x32xf32>,
    %c2_77 = arith.constant 2 : index
    %c0_78 = arith.constant 0 : index
    %c0_79 = arith.constant 0 : index
    %86 = vector.load %arg4[%c2_77, %c0_78, %c0_79] : memref<8x32x128xbf16, #tpu.memory_space<vmem>>, vector<1x32x128xbf16>
    %87 = vector.shape_cast %86 : vector<1x32x128xbf16> to vector<32x128xbf16>
    %88 = vector.extract_strided_slice %58 {offsets = [128, 0], sizes = [128, 32], strides = [1, 1]} : vector<256x32xbf16> to vector<128x32xbf16>
    %cst_80 = arith.constant dense<0.000000e+00> : vector<32x32xf32>
    %89 = tpu.matmul %87, %88, %cst_80 {dimension_numbers = #tpu.dot_dimension_numbers<[1], [0], [0], [1], [0, 0, 1, 1], [], []>} : vector<32x128xbf16>, vector<128x32xbf16>, vector<32x32xf32> -> vector<32x32xf32>
    %c32_81 = arith.constant 32 : index
    %c64_82 = arith.constant 64 : index
    %90 = vector.load %arg11[%c32_81, %c64_82] : memref<80x256xf32, #tpu.memory_space<vmem>>, vector<32x32xf32>
    tpu.vector_store %arg11[%c32_81, %c64_82], %89 {strides = array<i32>} : memref<80x256xf32, #tpu.memory_space<vmem>>, vector<32x32xf32>,
    %c3_83 = arith.constant 3 : index
    %c0_84 = arith.constant 0 : index
    %c0_85 = arith.constant 0 : index
    %91 = vector.load %arg4[%c3_83, %c0_84, %c0_85] : memref<8x32x128xbf16, #tpu.memory_space<vmem>>, vector<1x32x128xbf16>
    %92 = vector.shape_cast %91 : vector<1x32x128xbf16> to vector<32x128xbf16>
    %93 = vector.extract_strided_slice %58 {offsets = [0, 0], sizes = [128, 32], strides = [1, 1]} : vector<256x32xbf16> to vector<128x32xbf16>
    %cst_86 = arith.constant dense<0.000000e+00> : vector<32x32xf32>
    %94 = tpu.matmul %92, %93, %cst_86 {dimension_numbers = #tpu.dot_dimension_numbers<[1], [0], [0], [1], [0, 0, 1, 1], [], []>} : vector<32x128xbf16>, vector<128x32xbf16>, vector<32x32xf32> -> vector<32x32xf32>
    %c0_87 = arith.constant 0 : index
    %c96 = arith.constant 96 : index
    %95 = vector.load %arg11[%c0_87, %c96] : memref<80x256xf32, #tpu.memory_space<vmem>>, vector<32x32xf32>
    tpu.vector_store %arg11[%c0_87, %c96], %94 {strides = array<i32>} : memref<80x256xf32, #tpu.memory_space<vmem>>, vector<32x32xf32>,
    %c3_88 = arith.constant 3 : index
    %c0_89 = arith.constant 0 : index
    %c0_90 = arith.constant 0 : index
    %96 = vector.load %arg4[%c3_88, %c0_89, %c0_90] : memref<8x32x128xbf16, #tpu.memory_space<vmem>>, vector<1x32x128xbf16>
    %97 = vector.shape_cast %96 : vector<1x32x128xbf16> to vector<32x128xbf16>
    %98 = vector.extract_strided_slice %58 {offsets = [128, 0], sizes = [128, 32], strides = [1, 1]} : vector<256x32xbf16> to vector<128x32xbf16>
    %cst_91 = arith.constant dense<0.000000e+00> : vector<32x32xf32>
    %99 = tpu.matmul %97, %98, %cst_91 {dimension_numbers = #tpu.dot_dimension_numbers<[1], [0], [0], [1], [0, 0, 1, 1], [], []>} : vector<32x128xbf16>, vector<128x32xbf16>, vector<32x32xf32> -> vector<32x32xf32>
    %c32_92 = arith.constant 32 : index
    %c96_93 = arith.constant 96 : index
    %100 = vector.load %arg11[%c32_92, %c96_93] : memref<80x256xf32, #tpu.memory_space<vmem>>, vector<32x32xf32>
    tpu.vector_store %arg11[%c32_92, %c96_93], %99 {strides = array<i32>} : memref<80x256xf32, #tpu.memory_space<vmem>>, vector<32x32xf32>,
    %c4_94 = arith.constant 4 : index
    %c0_95 = arith.constant 0 : index
    %c0_96 = arith.constant 0 : index
    %101 = vector.load %arg4[%c4_94, %c0_95, %c0_96] : memref<8x32x128xbf16, #tpu.memory_space<vmem>>, vector<1x32x128xbf16>
    %102 = vector.shape_cast %101 : vector<1x32x128xbf16> to vector<32x128xbf16>
    %103 = vector.extract_strided_slice %58 {offsets = [0, 0], sizes = [128, 32], strides = [1, 1]} : vector<256x32xbf16> to vector<128x32xbf16>
    %cst_97 = arith.constant dense<0.000000e+00> : vector<32x32xf32>
    %104 = tpu.matmul %102, %103, %cst_97 {dimension_numbers = #tpu.dot_dimension_numbers<[1], [0], [0], [1], [0, 0, 1, 1], [], []>} : vector<32x128xbf16>, vector<128x32xbf16>, vector<32x32xf32> -> vector<32x32xf32>
    %c0_98 = arith.constant 0 : index
    %c128 = arith.constant 128 : index
    %105 = vector.load %arg11[%c0_98, %c128] : memref<80x256xf32, #tpu.memory_space<vmem>>, vector<32x32xf32>
    tpu.vector_store %arg11[%c0_98, %c128], %104 {strides = array<i32>} : memref<80x256xf32, #tpu.memory_space<vmem>>, vector<32x32xf32>,
    %c4_99 = arith.constant 4 : index
    %c0_100 = arith.constant 0 : index
    %c0_101 = arith.constant 0 : index
    %106 = vector.load %arg4[%c4_99, %c0_100, %c0_101] : memref<8x32x128xbf16, #tpu.memory_space<vmem>>, vector<1x32x128xbf16>
    %107 = vector.shape_cast %106 : vector<1x32x128xbf16> to vector<32x128xbf16>
    %108 = vector.extract_strided_slice %58 {offsets = [128, 0], sizes = [128, 32], strides = [1, 1]} : vector<256x32xbf16> to vector<128x32xbf16>
    %cst_102 = arith.constant dense<0.000000e+00> : vector<32x32xf32>
    %109 = tpu.matmul %107, %108, %cst_102 {dimension_numbers = #tpu.dot_dimension_numbers<[1], [0], [0], [1], [0, 0, 1, 1], [], []>} : vector<32x128xbf16>, vector<128x32xbf16>, vector<32x32xf32> -> vector<32x32xf32>
    %c32_103 = arith.constant 32 : index
    %c128_104 = arith.constant 128 : index
    %110 = vector.load %arg11[%c32_103, %c128_104] : memref<80x256xf32, #tpu.memory_space<vmem>>, vector<32x32xf32>
    tpu.vector_store %arg11[%c32_103, %c128_104], %109 {strides = array<i32>} : memref<80x256xf32, #tpu.memory_space<vmem>>, vector<32x32xf32>,
    %c5_105 = arith.constant 5 : index
    %c0_106 = arith.constant 0 : index
    %c0_107 = arith.constant 0 : index
    %111 = vector.load %arg4[%c5_105, %c0_106, %c0_107] : memref<8x32x128xbf16, #tpu.memory_space<vmem>>, vector<1x32x128xbf16>
    %112 = vector.shape_cast %111 : vector<1x32x128xbf16> to vector<32x128xbf16>
    %113 = vector.extract_strided_slice %58 {offsets = [0, 0], sizes = [128, 32], strides = [1, 1]} : vector<256x32xbf16> to vector<128x32xbf16>
    %cst_108 = arith.constant dense<0.000000e+00> : vector<32x32xf32>
    %114 = tpu.matmul %112, %113, %cst_108 {dimension_numbers = #tpu.dot_dimension_numbers<[1], [0], [0], [1], [0, 0, 1, 1], [], []>} : vector<32x128xbf16>, vector<128x32xbf16>, vector<32x32xf32> -> vector<32x32xf32>
    %c0_109 = arith.constant 0 : index
    %c160 = arith.constant 160 : index
    %115 = vector.load %arg11[%c0_109, %c160] : memref<80x256xf32, #tpu.memory_space<vmem>>, vector<32x32xf32>
    tpu.vector_store %arg11[%c0_109, %c160], %114 {strides = array<i32>} : memref<80x256xf32, #tpu.memory_space<vmem>>, vector<32x32xf32>,
    %c5_110 = arith.constant 5 : index
    %c0_111 = arith.constant 0 : index
    %c0_112 = arith.constant 0 : index
    %116 = vector.load %arg4[%c5_110, %c0_111, %c0_112] : memref<8x32x128xbf16, #tpu.memory_space<vmem>>, vector<1x32x128xbf16>
    %117 = vector.shape_cast %116 : vector<1x32x128xbf16> to vector<32x128xbf16>
    %118 = vector.extract_strided_slice %58 {offsets = [128, 0], sizes = [128, 32], strides = [1, 1]} : vector<256x32xbf16> to vector<128x32xbf16>
    %cst_113 = arith.constant dense<0.000000e+00> : vector<32x32xf32>
    %119 = tpu.matmul %117, %118, %cst_113 {dimension_numbers = #tpu.dot_dimension_numbers<[1], [0], [0], [1], [0, 0, 1, 1], [], []>} : vector<32x128xbf16>, vector<128x32xbf16>, vector<32x32xf32> -> vector<32x32xf32>
    %c32_114 = arith.constant 32 : index
    %c160_115 = arith.constant 160 : index
    %120 = vector.load %arg11[%c32_114, %c160_115] : memref<80x256xf32, #tpu.memory_space<vmem>>, vector<32x32xf32>
    tpu.vector_store %arg11[%c32_114, %c160_115], %119 {strides = array<i32>} : memref<80x256xf32, #tpu.memory_space<vmem>>, vector<32x32xf32>,
    %c6_116 = arith.constant 6 : index
    %c0_117 = arith.constant 0 : index
    %c0_118 = arith.constant 0 : index
    %121 = vector.load %arg4[%c6_116, %c0_117, %c0_118] : memref<8x32x128xbf16, #tpu.memory_space<vmem>>, vector<1x32x128xbf16>
    %122 = vector.shape_cast %121 : vector<1x32x128xbf16> to vector<32x128xbf16>
    %123 = vector.extract_strided_slice %58 {offsets = [0, 0], sizes = [128, 32], strides = [1, 1]} : vector<256x32xbf16> to vector<128x32xbf16>
    %cst_119 = arith.constant dense<0.000000e+00> : vector<32x32xf32>
    %124 = tpu.matmul %122, %123, %cst_119 {dimension_numbers = #tpu.dot_dimension_numbers<[1], [0], [0], [1], [0, 0, 1, 1], [], []>} : vector<32x128xbf16>, vector<128x32xbf16>, vector<32x32xf32> -> vector<32x32xf32>
    %c0_120 = arith.constant 0 : index
    %c192 = arith.constant 192 : index
    %125 = vector.load %arg11[%c0_120, %c192] : memref<80x256xf32, #tpu.memory_space<vmem>>, vector<32x32xf32>
    tpu.vector_store %arg11[%c0_120, %c192], %124 {strides = array<i32>} : memref<80x256xf32, #tpu.memory_space<vmem>>, vector<32x32xf32>,
    %c6_121 = arith.constant 6 : index
    %c0_122 = arith.constant 0 : index
    %c0_123 = arith.constant 0 : index
    %126 = vector.load %arg4[%c6_121, %c0_122, %c0_123] : memref<8x32x128xbf16, #tpu.memory_space<vmem>>, vector<1x32x128xbf16>
    %127 = vector.shape_cast %126 : vector<1x32x128xbf16> to vector<32x128xbf16>
    %128 = vector.extract_strided_slice %58 {offsets = [128, 0], sizes = [128, 32], strides = [1, 1]} : vector<256x32xbf16> to vector<128x32xbf16>
    %cst_124 = arith.constant dense<0.000000e+00> : vector<32x32xf32>
    %129 = tpu.matmul %127, %128, %cst_124 {dimension_numbers = #tpu.dot_dimension_numbers<[1], [0], [0], [1], [0, 0, 1, 1], [], []>} : vector<32x128xbf16>, vector<128x32xbf16>, vector<32x32xf32> -> vector<32x32xf32>
    %c32_125 = arith.constant 32 : index
    %c192_126 = arith.constant 192 : index
    %130 = vector.load %arg11[%c32_125, %c192_126] : memref<80x256xf32, #tpu.memory_space<vmem>>, vector<32x32xf32>
    tpu.vector_store %arg11[%c32_125, %c192_126], %129 {strides = array<i32>} : memref<80x256xf32, #tpu.memory_space<vmem>>, vector<32x32xf32>,
    %c7_127 = arith.constant 7 : index
    %c0_128 = arith.constant 0 : index
    %c0_129 = arith.constant 0 : index
    %131 = vector.load %arg4[%c7_127, %c0_128, %c0_129] : memref<8x32x128xbf16, #tpu.memory_space<vmem>>, vector<1x32x128xbf16>
    %132 = vector.shape_cast %131 : vector<1x32x128xbf16> to vector<32x128xbf16>
    %133 = vector.extract_strided_slice %58 {offsets = [0, 0], sizes = [128, 32], strides = [1, 1]} : vector<256x32xbf16> to vector<128x32xbf16>
    %cst_130 = arith.constant dense<0.000000e+00> : vector<32x32xf32>
    %134 = tpu.matmul %132, %133, %cst_130 {dimension_numbers = #tpu.dot_dimension_numbers<[1], [0], [0], [1], [0, 0, 1, 1], [], []>} : vector<32x128xbf16>, vector<128x32xbf16>, vector<32x32xf32> -> vector<32x32xf32>
    %c0_131 = arith.constant 0 : index
    %c224 = arith.constant 224 : index
    %135 = vector.load %arg11[%c0_131, %c224] : memref<80x256xf32, #tpu.memory_space<vmem>>, vector<32x32xf32>
    tpu.vector_store %arg11[%c0_131, %c224], %134 {strides = array<i32>} : memref<80x256xf32, #tpu.memory_space<vmem>>, vector<32x32xf32>,
    %c7_132 = arith.constant 7 : index
    %c0_133 = arith.constant 0 : index
    %c0_134 = arith.constant 0 : index
    %136 = vector.load %arg4[%c7_132, %c0_133, %c0_134] : memref<8x32x128xbf16, #tpu.memory_space<vmem>>, vector<1x32x128xbf16>
    %137 = vector.shape_cast %136 : vector<1x32x128xbf16> to vector<32x128xbf16>
    %138 = vector.extract_strided_slice %58 {offsets = [128, 0], sizes = [128, 32], strides = [1, 1]} : vector<256x32xbf16> to vector<128x32xbf16>
    %cst_135 = arith.constant dense<0.000000e+00> : vector<32x32xf32>
    %139 = tpu.matmul %137, %138, %cst_135 {dimension_numbers = #tpu.dot_dimension_numbers<[1], [0], [0], [1], [0, 0, 1, 1], [], []>} : vector<32x128xbf16>, vector<128x32xbf16>, vector<32x32xf32> -> vector<32x32xf32>
    %c32_136 = arith.constant 32 : index
    %c224_137 = arith.constant 224 : index
    %140 = vector.load %arg11[%c32_136, %c224_137] : memref<80x256xf32, #tpu.memory_space<vmem>>, vector<32x32xf32>
    tpu.vector_store %arg11[%c32_136, %c224_137], %139 {strides = array<i32>} : memref<80x256xf32, #tpu.memory_space<vmem>>, vector<32x32xf32>,
    %c0_138 = arith.constant 0 : index
    %c0_139 = arith.constant 0 : index
    %141 = vector.load %arg11[%c0_138, %c0_139] : memref<80x256xf32, #tpu.memory_space<vmem>>, vector<64x256xf32>
    %142 = arith.truncf %141 : vector<64x256xf32> to vector<64x256xbf16>
    %c0_140 = arith.constant 0 : index
    %c0_141 = arith.constant 0 : index
    %c0_142 = arith.constant 0 : index
    %143 = vector.load %arg5[%c0_140, %c0_141, %c0_142] : memref<8x256x64xbf16, #tpu.memory_space<vmem>>, vector<1x256x64xbf16>
    %144 = vector.shape_cast %143 : vector<1x256x64xbf16> to vector<256x64xbf16>
    %cst_143 = arith.constant dense<0.000000e+00> : vector<64x64xf32>
    %145 = tpu.matmul %142, %144, %cst_143 {dimension_numbers = #tpu.dot_dimension_numbers<[1], [0], [0], [1], [0, 0, 1, 1], [], []>} : vector<64x256xbf16>, vector<256x64xbf16>, vector<64x64xf32> -> vector<64x64xf32>
    %c1_144 = arith.constant 1 : index
    %c0_145 = arith.constant 0 : index
    %146 = vector.load %arg11[%c1_144, %c0_145] : memref<80x256xf32, #tpu.memory_space<vmem>>, vector<64x256xf32>
    %147 = arith.truncf %146 : vector<64x256xf32> to vector<64x256xbf16>
    %c1_146 = arith.constant 1 : index
    %c0_147 = arith.constant 0 : index
    %c0_148 = arith.constant 0 : index
    %148 = vector.load %arg5[%c1_146, %c0_147, %c0_148] : memref<8x256x64xbf16, #tpu.memory_space<vmem>>, vector<1x256x64xbf16>
    %149 = vector.shape_cast %148 : vector<1x256x64xbf16> to vector<256x64xbf16>
    %cst_149 = arith.constant dense<0.000000e+00> : vector<64x64xf32>
    %150 = tpu.matmul %147, %149, %cst_149 {dimension_numbers = #tpu.dot_dimension_numbers<[1], [0], [0], [1], [0, 0, 1, 1], [], []>} : vector<64x256xbf16>, vector<256x64xbf16>, vector<64x64xf32> -> vector<64x64xf32>
    %151 = arith.addf %145, %150 : vector<64x64xf32>
    %c3_150 = arith.constant 3 : index
    %c0_151 = arith.constant 0 : index
    %152 = vector.load %arg11[%c3_150, %c0_151] : memref<80x256xf32, #tpu.memory_space<vmem>>, vector<64x256xf32>
    %153 = arith.truncf %152 : vector<64x256xf32> to vector<64x256xbf16>
    %c2_152 = arith.constant 2 : index
    %c0_153 = arith.constant 0 : index
    %c0_154 = arith.constant 0 : index
    %154 = vector.load %arg5[%c2_152, %c0_153, %c0_154] : memref<8x256x64xbf16, #tpu.memory_space<vmem>>, vector<1x256x64xbf16>
    %155 = vector.shape_cast %154 : vector<1x256x64xbf16> to vector<256x64xbf16>
    %cst_155 = arith.constant dense<0.000000e+00> : vector<64x64xf32>
    %156 = tpu.matmul %153, %155, %cst_155 {dimension_numbers = #tpu.dot_dimension_numbers<[1], [0], [0], [1], [0, 0, 1, 1], [], []>} : vector<64x256xbf16>, vector<256x64xbf16>, vector<64x64xf32> -> vector<64x64xf32>
    %157 = arith.addf %151, %156 : vector<64x64xf32>
    %c4_156 = arith.constant 4 : index
    %c0_157 = arith.constant 0 : index
    %158 = vector.load %arg11[%c4_156, %c0_157] : memref<80x256xf32, #tpu.memory_space<vmem>>, vector<64x256xf32>
    %159 = arith.truncf %158 : vector<64x256xf32> to vector<64x256xbf16>
    %c3_158 = arith.constant 3 : index
    %c0_159 = arith.constant 0 : index
    %c0_160 = arith.constant 0 : index
    %160 = vector.load %arg5[%c3_158, %c0_159, %c0_160] : memref<8x256x64xbf16, #tpu.memory_space<vmem>>, vector<1x256x64xbf16>
    %161 = vector.shape_cast %160 : vector<1x256x64xbf16> to vector<256x64xbf16>
    %cst_161 = arith.constant dense<0.000000e+00> : vector<64x64xf32>
    %162 = tpu.matmul %159, %161, %cst_161 {dimension_numbers = #tpu.dot_dimension_numbers<[1], [0], [0], [1], [0, 0, 1, 1], [], []>} : vector<64x256xbf16>, vector<256x64xbf16>, vector<64x64xf32> -> vector<64x64xf32>
    %163 = arith.addf %157, %162 : vector<64x64xf32>
    %c9 = arith.constant 9 : index
    %c0_162 = arith.constant 0 : index
    %164 = vector.load %arg11[%c9, %c0_162] : memref<80x256xf32, #tpu.memory_space<vmem>>, vector<64x256xf32>
    %165 = arith.truncf %164 : vector<64x256xf32> to vector<64x256xbf16>
    %c4_163 = arith.constant 4 : index
    %c0_164 = arith.constant 0 : index
    %c0_165 = arith.constant 0 : index
    %166 = vector.load %arg5[%c4_163, %c0_164, %c0_165] : memref<8x256x64xbf16, #tpu.memory_space<vmem>>, vector<1x256x64xbf16>
    %167 = vector.shape_cast %166 : vector<1x256x64xbf16> to vector<256x64xbf16>
    %cst_166 = arith.constant dense<0.000000e+00> : vector<64x64xf32>
    %168 = tpu.matmul %165, %167, %cst_166 {dimension_numbers = #tpu.dot_dimension_numbers<[1], [0], [0], [1], [0, 0, 1, 1], [], []>} : vector<64x256xbf16>, vector<256x64xbf16>, vector<64x64xf32> -> vector<64x64xf32>
    %169 = arith.addf %163, %168 : vector<64x64xf32>
    %c10 = arith.constant 10 : index
    %c0_167 = arith.constant 0 : index
    %170 = vector.load %arg11[%c10, %c0_167] : memref<80x256xf32, #tpu.memory_space<vmem>>, vector<64x256xf32>
    %171 = arith.truncf %170 : vector<64x256xf32> to vector<64x256xbf16>
    %c5_168 = arith.constant 5 : index
    %c0_169 = arith.constant 0 : index
    %c0_170 = arith.constant 0 : index
    %172 = vector.load %arg5[%c5_168, %c0_169, %c0_170] : memref<8x256x64xbf16, #tpu.memory_space<vmem>>, vector<1x256x64xbf16>
    %173 = vector.shape_cast %172 : vector<1x256x64xbf16> to vector<256x64xbf16>
    %cst_171 = arith.constant dense<0.000000e+00> : vector<64x64xf32>
    %174 = tpu.matmul %171, %173, %cst_171 {dimension_numbers = #tpu.dot_dimension_numbers<[1], [0], [0], [1], [0, 0, 1, 1], [], []>} : vector<64x256xbf16>, vector<256x64xbf16>, vector<64x64xf32> -> vector<64x64xf32>
    %175 = arith.addf %169, %174 : vector<64x64xf32>
    %c12 = arith.constant 12 : index
    %c0_172 = arith.constant 0 : index
    %176 = vector.load %arg11[%c12, %c0_172] : memref<80x256xf32, #tpu.memory_space<vmem>>, vector<64x256xf32>
    %177 = arith.truncf %176 : vector<64x256xf32> to vector<64x256xbf16>
    %c6_173 = arith.constant 6 : index
    %c0_174 = arith.constant 0 : index
    %c0_175 = arith.constant 0 : index
    %178 = vector.load %arg5[%c6_173, %c0_174, %c0_175] : memref<8x256x64xbf16, #tpu.memory_space<vmem>>, vector<1x256x64xbf16>
    %179 = vector.shape_cast %178 : vector<1x256x64xbf16> to vector<256x64xbf16>
    %cst_176 = arith.constant dense<0.000000e+00> : vector<64x64xf32>
    %180 = tpu.matmul %177, %179, %cst_176 {dimension_numbers = #tpu.dot_dimension_numbers<[1], [0], [0], [1], [0, 0, 1, 1], [], []>} : vector<64x256xbf16>, vector<256x64xbf16>, vector<64x64xf32> -> vector<64x64xf32>
    %181 = arith.addf %175, %180 : vector<64x64xf32>
    %c13 = arith.constant 13 : index
    %c0_177 = arith.constant 0 : index
    %182 = vector.load %arg11[%c13, %c0_177] : memref<80x256xf32, #tpu.memory_space<vmem>>, vector<64x256xf32>
    %183 = arith.truncf %182 : vector<64x256xf32> to vector<64x256xbf16>
    %c7_178 = arith.constant 7 : index
    %c0_179 = arith.constant 0 : index
    %c0_180 = arith.constant 0 : index
    %184 = vector.load %arg5[%c7_178, %c0_179, %c0_180] : memref<8x256x64xbf16, #tpu.memory_space<vmem>>, vector<1x256x64xbf16>
    %185 = vector.shape_cast %184 : vector<1x256x64xbf16> to vector<256x64xbf16>
    %cst_181 = arith.constant dense<0.000000e+00> : vector<64x64xf32>
    %186 = tpu.matmul %183, %185, %cst_181 {dimension_numbers = #tpu.dot_dimension_numbers<[1], [0], [0], [1], [0, 0, 1, 1], [], []>} : vector<64x256xbf16>, vector<256x64xbf16>, vector<64x64xf32> -> vector<64x64xf32>
    %187 = arith.addf %181, %186 : vector<64x64xf32>
    %c0_182 = arith.constant 0 : index
    %c0_183 = arith.constant 0 : index
    %188 = vector.load %arg7[%c0_182, %c0_183] : memref<1x64xf32, #tpu.memory_space<vmem>>, vector<1x64xf32>
    %189 = vector.broadcast %188 : vector<1x64xf32> to vector<64x64xf32>
    %190 = arith.addf %187, %189 : vector<64x64xf32>
    %cst_184 = arith.constant 0.000000e+00 : f32
    %191 = vector.broadcast %cst_184 : f32 to vector<64x64xf32>
    %192 = arith.maximumf %190, %191 : vector<64x64xf32>
    %c0_185 = arith.constant 0 : index
    %c0_186 = arith.constant 0 : index
    %193 = vector.load %arg8[%c0_185, %c0_186] : memref<16x64xf32, #tpu.memory_space<vmem>>, vector<16x64xf32>
    %cst_187 = arith.constant dense<0.000000e+00> : vector<16x64xf32>
    %194 = tpu.matmul %193, %192, %cst_187 {dimension_numbers = #tpu.dot_dimension_numbers<[1], [0], [0], [1], [0, 0, 1, 1], [], []>} : vector<16x64xf32>, vector<64x64xf32>, vector<16x64xf32> -> vector<16x64xf32>
    %c0_188 = arith.constant 0 : index
    %c0_189 = arith.constant 0 : index
    %195 = vector.load %arg9[%c0_188, %c0_189] : memref<16x64xf32, #tpu.memory_space<vmem>>, vector<16x64xf32>
    tpu.vector_store %arg9[%c0_188, %c0_189], %194 {strides = array<i32>} : memref<16x64xf32, #tpu.memory_space<vmem>>, vector<16x64xf32>,
    return
  }
  func.func @transform_0(%arg0: i32) -> (i32, i32) {
    %c0_i32 = arith.constant 0 : i32
    %c0_i32_0 = arith.constant 0 : i32
    %c0_i32_1 = arith.constant 0 : i32
    return %c0_i32, %c0_i32_0 : i32, i32
  }
  func.func @transform_1(%arg0: i32) -> (i32, i32) {
    %c0_i32 = arith.constant 0 : i32
    %c0_i32_0 = arith.constant 0 : i32
    %c0_i32_1 = arith.constant 0 : i32
    return %c0_i32, %c0_i32_0 : i32, i32
  }
  func.func @transform_2(%arg0: i32) -> (i32, i32, i32) {
    %c0_i32 = arith.constant 0 : i32
    %c0_i32_0 = arith.constant 0 : i32
    %c0_i32_1 = arith.constant 0 : i32
    %c0_i32_2 = arith.constant 0 : i32
    return %c0_i32, %c0_i32_0, %c0_i32_1 : i32, i32, i32
  }
  func.func @transform_3(%arg0: i32) -> (i32, i32, i32) {
    %c0_i32 = arith.constant 0 : i32
    %c0_i32_0 = arith.constant 0 : i32
    %c0_i32_1 = arith.constant 0 : i32
    %c0_i32_2 = arith.constant 0 : i32
    return %c0_i32, %c0_i32_0, %c0_i32_1 : i32, i32, i32
  }
  func.func @transform_4(%arg0: i32) -> (i32, i32, i32) {
    %c0_i32 = arith.constant 0 : i32
    %c0_i32_0 = arith.constant 0 : i32
    %c0_i32_1 = arith.constant 0 : i32
    %c0_i32_2 = arith.constant 0 : i32
    return %c0_i32, %c0_i32_0, %c0_i32_1 : i32, i32, i32
  }
  func.func @transform_5(%arg0: i32) -> (i32, i32) {
    %c0_i32 = arith.constant 0 : i32
    %c0_i32_0 = arith.constant 0 : i32
    %c0_i32_1 = arith.constant 0 : i32
    return %c0_i32, %c0_i32_0 : i32, i32
  }
  func.func @transform_6(%arg0: i32) -> (i32, i32) {
    %c0_i32 = arith.constant 0 : i32
    %c0_i32_0 = arith.constant 0 : i32
    %c0_i32_1 = arith.constant 0 : i32
    return %c0_i32, %c0_i32_0 : i32, i32
  }
  func.func @transform_7(%arg0: i32) -> (i32, i32) {
    %c0_i32 = arith.constant 0 : i32
    %c0_i32_0 = arith.constant 0 : i32
    %c0_i32_1 = arith.constant 0 : i32
    return %c0_i32, %c0_i32_0 : i32, i32
  }
  func.func @transform_8(%arg0: i32) -> (i32, i32) {
    %c0_i32 = arith.constant 0 : i32
    %c0_i32_0 = arith.constant 0 : i32
    %c0_i32_1 = arith.constant 0 : i32
    return %c0_i32, %c0_i32_0 : i32, i32
  }
}

</mosaic_0001>

<bundles_post_ra>
// kernel: encoder_forward.1
= control target key start
LH: loop header
LB: loop body
LE: loop exit
PB: predicated region body
PF: predicated region fallthrough
CT: control target
= control target key end

     0   :  { %v9272_v1 = vmov 0   ;;  %s11340_s0 = inlined_call_operand.vmem [shape: bf16[288,256], index: 0, kind: input, shape index: {}]   ;;  %s11341_s1 = inlined_call_operand.vmem [shape: bf16[256,128], index: 1, kind: input, shape index: {}]   ;;  %s11342_s2 = inlined_call_operand.vmem [shape: bf16[8,128,32], index: 2, kind: input, shape index: {}]   ;;  %s11343_s3 = inlined_call_operand.vmem [shape: bf16[8,32,128], index: 3, kind: input, shape index: {}]   ;;  %s11344_s4 = inlined_call_operand.vmem [shape: bf16[8,256,64], index: 4, kind: input, shape index: {}]   ;;  %s11345_s5 = inlined_call_operand.vmem [shape: f32[1,32], index: 5, kind: input, shape index: {}]   ;;  %s11346_s6 = inlined_call_operand.vmem [shape: f32[1,64], index: 6, kind: input, shape index: {}]   ;;  %s11347_s7 = inlined_call_operand.vmem [shape: f32[16,64], index: 7, kind: input, shape index: {}]   ;;  %s11348_s8 = inlined_call_operand.hbm [shape: f32[16,64], index: 8, kind: output, shape index: {}]  }
   0x1   :  { %v8953_v0 = vld [vmem:[%s11341_s1] sm:$0xff]   ;;  %375 = vmatprep.subr.bf16.mxu0 %v9272_v1  ;;  %v8954_v2 = vld [vmem:[%s11341_s1 + $0x8] sm:$0xff]   ;;  %v8955_v3 = vld [vmem:[%s11341_s1 + $0x10] sm:$0xff]  }
   0x2   :  { %376 = vmatpush1.bf16.msra.mxu0 %v8953_v0  ;;  %v8956_v4 = vld [vmem:[%s11341_s1 + $0x18] sm:$0xff]   ;;  %v8957_v5 = vld [vmem:[%s11341_s1 + $0x20] sm:$0xff]   ;;  %v8958_v7 = vld [vmem:[%s11341_s1 + $0x28] sm:$0xff]  }
   0x3   :  { %377 = vmatprep.subr.bf16.mxu0 %v9272_v1  ;;  %v8971_v6 = vld [vmem:[%s11340_s0 + $0x4] ss:$8 sps:$4 sm:$0xff]   ;;  %v8959_v8 = vld [vmem:[%s11341_s1 + $0x30] sm:$0xff]   ;;  %v8960_v9 = vld [vmem:[%s11341_s1 + $0x38] sm:$0xff]  }
   0x4   :  { %407 = vmatprep.mubr.bf16.mxu0 %v8971_v6  ;;  %v8961_v10 = vld [vmem:[%s11341_s1 + $0x40] sm:$0xff]   ;;  %v8962_v11 = vld [vmem:[%s11341_s1 + $0x48] sm:$0xff]   ;;  %v8963_v12 = vld [vmem:[%s11341_s1 + $0x50] sm:$0xff]  }
   0x5   :  { %v8964_v13 = vld [vmem:[%s11341_s1 + $0x58] sm:$0xff]   ;;  %v8965_v14 = vld [vmem:[%s11341_s1 + $0x60] sm:$0xff]   ;;  %v8966_v15 = vld [vmem:[%s11341_s1 + $0x68] sm:$0xff]  }
   0x6   :  { %378 = vmatpush1.bf16.msra.mxu0 %v8954_v2  ;;  %v8967_v16 = vld [vmem:[%s11341_s1 + $0x70] sm:$0xff]   ;;  %v8968_v17 = vld [vmem:[%s11341_s1 + $0x78] sm:$0xff]   ;;  %v8969_v18 = vld [vmem:[%s11340_s0] ss:$8 sps:$4 sm:$0xff]  }
   0x7   :  { %379 = vmatprep.subr.bf16.mxu0 %v9272_v1  ;;  %v8972_v19 = vld [vmem:[%s11340_s0 + $0x14] ss:$8 sps:$4 sm:$0xff]   ;;  %v8974_v20 = vld [vmem:[%s11340_s0 + $0x10] ss:$8 sps:$4 sm:$0xff]   ;;  %v8975_v21 = vld [vmem:[%s11340_s0 + $0x24] ss:$8 sps:$4 sm:$0xff]  }
   0x8   :  { %v9023_v22 = vld [vmem:[%s11342_s2 + $0x40] sm:$0xff]   ;;  %v8978_v24 = vld [vmem:[%s11340_s0 + $0x34] ss:$8 sps:$4 sm:$0xff]   ;;  %v8980_v25 = vld [vmem:[%s11340_s0 + $0x30] ss:$8 sps:$4 sm:$0xff]  }
   0x9   :  { %v8977_v23 = vld [vmem:[%s11340_s0 + $0x20] ss:$8 sps:$4 sm:$0xff]   ;;  %7982 = vmatprep.subr.bf16.mxu1 %v9023_v22  ;;  %v8981_v26 = vld [vmem:[%s11340_s0 + $0x44] ss:$8 sps:$4 sm:$0xff]   ;;  %v8984_v28 = vld [vmem:[%s11340_s0 + $0x54] ss:$8 sps:$4 sm:$0xff]  }
   0xa   :  { %380 = vmatpush1.bf16.msra.mxu0 %v8955_v3  ;;  %7983 = vmatpush3.bf16.msra.mxu1 %v9023_v22  ;;  %v8983_v27 = vld [vmem:[%s11340_s0 + $0x40] ss:$8 sps:$4 sm:$0xff]   ;;  %v8986_v29 = vld [vmem:[%s11340_s0 + $0x50] ss:$8 sps:$4 sm:$0xff]   ;;  %v8987_v30 = vld [vmem:[%s11340_s0 + $0x64] ss:$8 sps:$4 sm:$0xff]  }
   0xb   :  { %381 = vmatprep.subr.bf16.mxu0 %v9272_v1  ;;  %v8989_v31 = vld [vmem:[%s11340_s0 + $0x60] ss:$8 sps:$4 sm:$0xff]   ;;  %v8990_v32 = vld [vmem:[%s11340_s0 + $0x74] ss:$8 sps:$4 sm:$0xff]   ;;  %v8992_v33 = vld [vmem:[%s11340_s0 + $0x70] ss:$8 sps:$4 sm:$0xff]  }
   0xc   :  { %v8993_v34 = vld [vmem:[%s11340_s0 + $0x84] ss:$8 sps:$4 sm:$0xff]   ;;  %v8995_v35 = vld [vmem:[%s11340_s0 + $0x80] ss:$8 sps:$4 sm:$0xff]   ;;  %v8996_v36 = vld [vmem:[%s11340_s0 + $0x94] ss:$8 sps:$4 sm:$0xff]  }
   0xd   :  { %v8998_v37 = vld [vmem:[%s11340_s0 + $0x90] ss:$8 sps:$4 sm:$0xff]   ;;  %v8999_v38 = vld [vmem:[%s11340_s0 + $0xa4] ss:$8 sps:$4 sm:$0xff]   ;;  %v9001_v39 = vld [vmem:[%s11340_s0 + $0xa0] ss:$8 sps:$4 sm:$0xff]  }
   0xe   :  { %382 = vmatpush1.bf16.msra.mxu0 %v8956_v4  ;;  %v9002_v40 = vld [vmem:[%s11340_s0 + $0xb4] ss:$8 sps:$4 sm:$0xff]   ;;  %v9004_v41 = vld [vmem:[%s11340_s0 + $0xb0] ss:$8 sps:$4 sm:$0xff]   ;;  %v9024_v42 = vld [vmem:[%s11342_s2 + $0x48] sm:$0xff]  }
   0xf   :  { %383 = vmatprep.subr.bf16.mxu0 %v9272_v1  ;;  %v9005_v43 = vld [vmem:[%s11340_s0 + $0xc4] ss:$8 sps:$4 sm:$0xff]   ;;  %7984 = vmatprep.subr.bf16.mxu1 %v9024_v42  ;;  %v9025_v44 = vld [vmem:[%s11342_s2 + $0x50] sm:$0xff]   ;;  %v9007_v45 = vld [vmem:[%s11340_s0 + $0xc0] ss:$8 sps:$4 sm:$0xff]  }
  0x10   :  { %7985 = vmatpush3.bf16.msra.mxu1 %v9024_v42  ;;  %v9026_v46 = vld [vmem:[%s11342_s2 + $0x58] sm:$0xff]   ;;  %v9027_v48 = vld [vmem:[%s11342_s2 + $0x60] sm:$0xff]   ;;  %v9028_v50 = vld [vmem:[%s11342_s2 + $0x68] sm:$0xff]  }
  0x11   :  { %7986 = vmatprep.subr.bf16.mxu1 %v9025_v44  ;;  %v9008_v47 = vld [vmem:[%s11340_s0 + $0xd4] ss:$8 sps:$4 sm:$0xff]   ;;  %v9010_v49 = vld [vmem:[%s11340_s0 + $0xd0] ss:$8 sps:$4 sm:$0xff]   ;;  %v9011_v51 = vld [vmem:[%s11340_s0 + $0xe4] ss:$8 sps:$4 sm:$0xff]  }
  0x12   :  { %384 = vmatpush1.bf16.msra.mxu0 %v8957_v5  ;;  %v9029_v52 = vld [vmem:[%s11342_s2 + $0x70] sm:$0xff]   ;;  %v9013_v53 = vld [vmem:[%s11340_s0 + $0xe0] ss:$8 sps:$4 sm:$0xff]   ;;  %v9030_v54 = vld [vmem:[%s11342_s2 + $0x78] sm:$0xff]  }
  0x13   :  { %385 = vmatprep.subr.bf16.mxu0 %v9272_v1  ;;  %v9014_v55 = vld [vmem:[%s11340_s0 + $0xf4] ss:$8 sps:$4 sm:$0xff]   ;;  %v9016_v56 = vld [vmem:[%s11340_s0 + $0xf0] ss:$8 sps:$4 sm:$0xff]   ;;  %v9017_v57 = vld [vmem:[%s11340_s0 + $0x104] ss:$8 sps:$4 sm:$0xff]  }
  0x14   :  { %7987 = vmatpush3.bf16.msra.mxu1 %v9025_v44  ;;  %v9019_v58 = vld [vmem:[%s11340_s0 + $0x100] ss:$8 sps:$4 sm:$0xff]   ;;  %v9020_v59 = vld [vmem:[%s11340_s0 + $0x114] ss:$8 sps:$4 sm:$0xff]  }
  0x15   :  { %7988 = vmatprep.subr.bf16.mxu1 %v9026_v46 }
  0x16   :  { %386 = vmatpush1.bf16.msra.mxu0 %v8958_v7 }
  0x17   :  { %387 = vmatprep.subr.bf16.mxu0 %v9272_v1 }
  0x18   :  { %7989 = vmatpush3.bf16.msra.mxu1 %v9026_v46 }
  0x19   :  { %7990 = vmatprep.subr.bf16.mxu1 %v9027_v48 }
  0x1a   :  { %388 = vmatpush1.bf16.msra.mxu0 %v8959_v8 }
  0x1b   :  { %389 = vmatprep.subr.bf16.mxu0 %v9272_v1 }
  0x1c   :  { %7991 = vmatpush3.bf16.msra.mxu1 %v9027_v48 }
  0x1d   :  { %7992 = vmatprep.subr.bf16.mxu1 %v9028_v50 }
  0x1e   :  { %390 = vmatpush1.bf16.msra.mxu0 %v8960_v9 }
  0x1f   :  { %391 = vmatprep.subr.bf16.mxu0 %v9272_v1 }
  0x20   :  { %7993 = vmatpush3.bf16.msra.mxu1 %v9028_v50 }
  0x21   :  { %7994 = vmatprep.subr.bf16.mxu1 %v9029_v52 }
  0x22   :  { %392 = vmatpush1.bf16.msra.mxu0 %v8961_v10 }
  0x23   :  { %393 = vmatprep.subr.bf16.mxu0 %v9272_v1 }
  0x24   :  { %7995 = vmatpush3.bf16.msra.mxu1 %v9029_v52 }
  0x25   :  { %7996 = vmatprep.subr.bf16.mxu1 %v9030_v54 }
  0x26   :  { %394 = vmatpush1.bf16.msra.mxu0 %v8962_v11 }
  0x27   :  { %395 = vmatprep.subr.bf16.mxu0 %v9272_v1 }
  0x28   :  { %7997 = vmatpush3.bf16.msra.mxu1 %v9030_v54 }
  0x2a   :  { %396 = vmatpush1.bf16.msra.mxu0 %v8963_v12 }
  0x2b   :  { %397 = vmatprep.subr.bf16.mxu0 %v9272_v1 }
  0x2e   :  { %398 = vmatpush1.bf16.msra.mxu0 %v8964_v13 }
  0x2f   :  { %399 = vmatprep.subr.bf16.mxu0 %v9272_v1 }
  0x32   :  { %400 = vmatpush1.bf16.msra.mxu0 %v8965_v14 }
  0x33   :  { %401 = vmatprep.subr.bf16.mxu0 %v9272_v1 }
  0x36   :  { %402 = vmatpush1.bf16.msra.mxu0 %v8966_v15 }
  0x37   :  { %403 = vmatprep.subr.bf16.mxu0 %v9272_v1 }
  0x3a   :  { %404 = vmatpush1.bf16.msra.mxu0 %v8967_v16 }
  0x3b   :  { %405 = vmatprep.subr.bf16.mxu0 %v9272_v1 }
  0x3e   :  { %406 = vmatpush1.bf16.msra.mxu0 %v8968_v17 }
  0x41   :  { %408 = vmatmul.mubr.bf16.vlgmr.msra.gmra.mrb[0].mxu0 %v8969_v18 }
  0x42   :  { %415 = vmatprep.mubr.bf16.mxu0 %v8972_v19 }
  0x49   :  { %416 = vmatmul.mubr.bf16.gmra.mrb[4].mxu0 %v8974_v20 }
  0x4a   :  { %423 = vmatprep.mubr.bf16.mxu0 %v8975_v21 }
  0x51   :  { %424 = vmatmul.mubr.bf16.gmra.mrb[8].mxu0 %v8977_v23 }
  0x52   :  { %431 = vmatprep.mubr.bf16.mxu0 %v8978_v24 }
  0x59   :  { %432 = vmatmul.mubr.bf16.gmra.mrb[12].mxu0 %v8980_v25 }
  0x5a   :  { %439 = vmatprep.mubr.bf16.mxu0 %v8981_v26 }
  0x61   :  { %440 = vmatmul.mubr.bf16.gmra.mrb[16].mxu0 %v8983_v27 }
  0x62   :  { %447 = vmatprep.mubr.bf16.mxu0 %v8984_v28 }
  0x69   :  { %448 = vmatmul.mubr.bf16.gmra.mrb[20].mxu0 %v8986_v29 }
  0x6a   :  { %455 = vmatprep.mubr.bf16.mxu0 %v8987_v30 }
  0x71   :  { %456 = vmatmul.mubr.bf16.gmra.mrb[24].mxu0 %v8989_v31 }
  0x72   :  { %463 = vmatprep.mubr.bf16.mxu0 %v8990_v32 }
  0x79   :  { %464 = vmatmul.mubr.bf16.gmra.mrb[28].mxu0 %v8992_v33 }
  0x7a   :  { %471 = vmatprep.mubr.bf16.mxu0 %v8993_v34 }
  0x81   :  { %472 = vmatmul.mubr.bf16.gmra.mrb[32].mxu0 %v8995_v35 }
  0x82   :  { %479 = vmatprep.mubr.bf16.mxu0 %v8996_v36 }
  0x89   :  { %480 = vmatmul.mubr.bf16.gmra.mrb[36].mxu0 %v8998_v37 }
  0x8a   :  { %487 = vmatprep.mubr.bf16.mxu0 %v8999_v38 }
  0x91   :  { %488 = vmatmul.mubr.bf16.gmra.mrb[40].mxu0 %v9001_v39 }
  0x92   :  { %495 = vmatprep.mubr.bf16.mxu0 %v9002_v40 }
  0x99   :  { %496 = vmatmul.mubr.bf16.gmra.mrb[44].mxu0 %v9004_v41 }
  0x9a   :  { %503 = vmatprep.mubr.bf16.mxu0 %v9005_v43 }
  0xa1   :  { %504 = vmatmul.mubr.bf16.gmra.mrb[48].mxu0 %v9007_v45 }
  0xa2   :  { %511 = vmatprep.mubr.bf16.mxu0 %v9008_v47 }
  0xa9   :  { %512 = vmatmul.mubr.bf16.gmra.mrb[52].mxu0 %v9010_v49 }
  0xaa   :  { %519 = vmatprep.mubr.bf16.mxu0 %v9011_v51 }
  0xb1   :  { %520 = vmatmul.mubr.bf16.gmra.mrb[56].mxu0 %v9013_v53 }
  0xb2   :  { %527 = vmatprep.mubr.bf16.mxu0 %v9014_v55 }
  0xb9   :  { %528 = vmatmul.mubr.bf16.gmra.mrb[60].mxu0 %v9016_v56 }
  0xba   :  { %535 = vmatprep.mubr.bf16.mxu0 %v9017_v57 }
  0xbb   :  { %13 = vsyncpa [#allocation5], 0  ;;  %v9022_v60 = vld [vmem:[%s11340_s0 + $0x110] ss:$8 sps:$4 sm:$0xff]   ;;  %v9031_v61 = vld [vmem:[%s11342_s2] sm:$0xff]   ;;  %vm3163_vm0 = vcmask 261120  }
  0xbc   :  { %8030 = vmatprep.subr.bf16.mxu1 %v9031_v61  ;;  %v9032_v31 = vld [vmem:[%s11342_s2 + $0x8] sm:$0xff]   ;;  %v9033_v36 = vld [vmem:[%s11342_s2 + $0x10] sm:$0xff]   ;;  %v9034_v46 = vld [vmem:[%s11342_s2 + $0x18] sm:$0xff]   ;;  %s9273_s22 = smov 32   ;;  %s9274_s25 = smov 64   ;;  %vm3319_vm1 = vcmask 523520  }
  0xbd   :  { %v9035_v51 = vld [vmem:[%s11342_s2 + $0x20] sm:$0xff]   ;;  %vm3491_vm2 = vcmask 785920   ;;  %vm3663_vm3 = vcmask 1048320   ;;  %vm4502_vm4 = vsmask.f32 7424  ;;  %vm5233_vm5 = vcmask 1045504  }
  0xbe   :  { %vm4946_vm6 = vsmask.f32 6400  ;;  %vm5790_vm7 = vcmask 1046528   ;;  %vm6267_vm8 = vsmask.f32 5376  ;;  %vm6528_vm9 = vcmask 523264  }
  0xbf   :  { %s9277_s13 = smov [#allocation4]  }
  0xc0   :  { %s6617_s14 = sshll.u32 %s9277_s13, 4  ;;  %s6618_s14 = int_to_ptr.vmem [resolvable:$true] %s6617_s14 }
  0xc1   :  { %536 = vmatmul.mubr.bf16.gmra.mrb[64].mxu0 %v9019_v58  ;;  %s9248_s15 = scalar_lea.vmem %s6618_s14, 256  ;;  %p9253_p1 = scmp.lt.s32.totalorder %s6618_s14, %s6618_s14 }
  0xc2   :  { %543 = vmatprep.mubr.bf16.mxu0 %v9020_v59  ;;  %p9249_p0 = scmp.ne.s32.totalorder %s6618_s14, %s9248_s15  ;;  %p9254_p2 = scmp.lt.s32.totalorder %s9248_s15, %s9248_s15 }
  0xc4   :  { %p9255_p3 = por %p9254_p2, %p9253_p1 }
  0xc6   :  { %p9256_p4 = pnand %p9255_p3, %p9249_p0 }
  0xc9   :  { %544 = vmatmul.mubr.bf16.gmra.mrb[68].mxu0 %v9022_v60 }
 0x114   :  { %v409_v62 = vpop.f32.mrb[0].mxu0 }
 0x115   :  { %v552_v63 = vmax.f32 %v409_v62, 0.0  ;;  %v411_v0 = vpop.f32.mrb[1].mxu0 }
 0x116   :  { %v412_v1 = vpop.f32.mrb[2].mxu0 }
 0x117   :  { %588 = vst [vmem:[#allocation2] sm:$0xff] %v552_v63  ;;  %v553_v2 = vmax.f32 %v412_v1, 0.0  ;;  %v414_v3 = vpop.f32.mrb[3].mxu0 }
 0x119   :  { %589 = vst [vmem:[#allocation2 + $0x8] sm:$0xff] %v553_v2  ;;  %v9508_v4 = vpack.c.bf16 %v553_v2, %v552_v63 }
 0x11c   :  { %v417_v5 = vpop.f32.mrb[4].mxu0 }
 0x11d   :  { %v554_v6 = vmax.f32 %v417_v5, 0.0  ;;  %v419_v7 = vpop.f32.mrb[5].mxu0  ;;  %v9037_v5 = vld [vmem:[%s11342_s2 + $0x30] sm:$0xff]  }
 0x11e   :  { %v420_v8 = vpop.f32.mrb[6].mxu0 }
 0x11f   :  { %590 = vst [vmem:[#allocation2 + $0x10] sm:$0xff] %v554_v6  ;;  %v555_v9 = vmax.f32 %v420_v8, 0.0  ;;  %v422_v10 = vpop.f32.mrb[7].mxu0 }
 0x120   :  { %v688_v16 = vld [vmem:[#allocation2 + $0x1] sm:$0xff] }
 0x121   :  { %591 = vst [vmem:[#allocation2 + $0x18] sm:$0xff] %v555_v9  ;;  %v9510_v11 = vpack.c.bf16 %v555_v9, %v554_v6 }
 0x124   :  { %v425_v12 = vpop.f32.mrb[8].mxu0 }
 0x125   :  { %v556_v13 = vmax.f32 %v425_v12, 0.0  ;;  %v427_v14 = vpop.f32.mrb[9].mxu0 }
 0x126   :  { %v428_v15 = vpop.f32.mrb[10].mxu0  ;;  %v689_v17 = vld [vmem:[#allocation2 + $0x9] sm:$0xff] }
 0x127   :  { %592 = vst [vmem:[#allocation2 + $0x20] sm:$0xff] %v556_v13  ;;  %v557_v18 = vmax.f32 %v428_v15, 0.0  ;;  %v430_v19 = vpop.f32.mrb[11].mxu0  ;;  %v720_v20 = vpack.c.bf16 %v689_v17, %v688_v16  ;;  %v9038_v15 = vld [vmem:[%s11342_s2 + $0x38] sm:$0xff]  }
 0x128   :  { %v690_v26 = vld [vmem:[#allocation2 + $0x11] sm:$0xff] }
 0x129   :  { %593 = vst [vmem:[#allocation2 + $0x28] sm:$0xff] %v557_v18  ;;  %7998 = vmatprep.mubr.bf16.mxu1 %v720_v20  ;;  %v9512_v21 = vpack.c.bf16 %v557_v18, %v556_v13 }
 0x12c   :  { %v433_v22 = vpop.f32.mrb[12].mxu0 }
 0x12d   :  { %v558_v23 = vmax.f32 %v433_v22, 0.0  ;;  %v435_v24 = vpop.f32.mrb[13].mxu0 }
 0x12e   :  { %v436_v25 = vpop.f32.mrb[14].mxu0  ;;  %v691_v27 = vld [vmem:[#allocation2 + $0x19] sm:$0xff] }
 0x12f   :  { %594 = vst [vmem:[#allocation2 + $0x30] sm:$0xff] %v558_v23  ;;  %v559_v28 = vmax.f32 %v436_v25, 0.0  ;;  %v438_v29 = vpop.f32.mrb[15].mxu0  ;;  %v721_v30 = vpack.c.bf16 %v691_v27, %v690_v26  ;;  %v9517_v32 = vld [vmem:[#allocation2 + $0x1e] sm:$0xff] }
 0x130   :  { %v9519_v33 = vld [vmem:[#allocation2 + $0x26] sm:$0xff] }
 0x131   :  { %595 = vst [vmem:[#allocation2 + $0x38] sm:$0xff] %v559_v28  ;;  %7999 = vmatmul.mubr.bf16.vlgmr.msra.gmra.mrb[0].mxu1 %v721_v30  ;;  %v9521_v34 = vpack.c.bf16 %v559_v28, %v558_v23  ;;  %v9528_v41 = vld [vmem:[#allocation2 + $0x21] sm:$0xff] }
 0x132   :  { %8031 = vmatpush3.bf16.msra.mxu1 %v9031_v61  ;;  %v9036_v61 = vld [vmem:[%s11342_s2 + $0x28] sm:$0xff]   ;;  %v9591_v23 = vld [vmem:[%s11342_s2 + $0x80] sm:$0xff]  }
 0x133   :  { %8032 = vmatprep.subr.bf16.mxu1 %v9032_v31 }
 0x134   :  { %v441_v37 = vpop.f32.mrb[16].mxu0 }
 0x135   :  { %v560_v38 = vmax.f32 %v441_v37, 0.0  ;;  %v443_v39 = vpop.f32.mrb[17].mxu0 }
 0x136   :  { %v444_v40 = vpop.f32.mrb[18].mxu0  ;;  %v693_v42 = vld [vmem:[#allocation2 + $0x29] sm:$0xff]  ;;  %8033 = vmatpush3.bf16.msra.mxu1 %v9032_v31 }
 0x137   :  { %596 = vst [vmem:[#allocation2 + $0x40] sm:$0xff] %v560_v38  ;;  %v561_v43 = vmax.f32 %v444_v40, 0.0  ;;  %v446_v44 = vpop.f32.mrb[19].mxu0  ;;  %v722_v45 = vpack.c.bf16 %v693_v42, %v9528_v41  ;;  %8034 = vmatprep.subr.bf16.mxu1 %v9033_v36  ;;  %v9534_v47 = vld [vmem:[#allocation2 + $0x2e] sm:$0xff] }
 0x138   :  { %v9536_v48 = vld [vmem:[#allocation2 + $0x36] sm:$0xff] }
 0x139   :  { %597 = vst [vmem:[#allocation2 + $0x48] sm:$0xff] %v561_v43  ;;  %8002 = vmatprep.mubr.bf16.mxu1 %v722_v45  ;;  %v9538_v49 = vpack.c.bf16 %v561_v43, %v560_v38  ;;  %v9545_v56 = vld [vmem:[#allocation2 + $0x31] sm:$0xff] }
 0x13a   :  { %8035 = vmatpush3.bf16.msra.mxu1 %v9033_v36 }
 0x13b   :  { %8036 = vmatprep.subr.bf16.mxu1 %v9034_v46 }
 0x13c   :  { %v449_v52 = vpop.f32.mrb[20].mxu0 }
 0x13d   :  { %v562_v53 = vmax.f32 %v449_v52, 0.0  ;;  %v451_v54 = vpop.f32.mrb[21].mxu0 }
 0x13e   :  { %v452_v55 = vpop.f32.mrb[22].mxu0  ;;  %v9547_v57 = vld [vmem:[#allocation2 + $0x39] sm:$0xff]  ;;  %8037 = vmatpush3.bf16.msra.mxu1 %v9034_v46 }
 0x13f   :  { %598 = vst [vmem:[#allocation2 + $0x50] sm:$0xff] %v562_v53  ;;  %v563_v58 = vmax.f32 %v452_v55, 0.0  ;;  %v454_v59 = vpop.f32.mrb[23].mxu0  ;;  %v723_v60 = vpack.c.bf16 %v9547_v57, %v9545_v56  ;;  %8038 = vmatprep.subr.bf16.mxu1 %v9035_v51  ;;  %v9556_v63 = vld [vmem:[#allocation2 + $0x3e] sm:$0xff] }
 0x140   :  { %v9554_v62 = vld [vmem:[#allocation2 + $0x41] sm:$0xff] }
 0x141   :  { %v9558_v0 = vld [vmem:[#allocation2 + $0x46] sm:$0xff]  ;;  %599 = vst [vmem:[#allocation2 + $0x58] sm:$0xff] %v563_v58  ;;  %8003 = vmatmul.mubr.bf16.gmra.mrb[4].mxu1 %v723_v60  ;;  %v9560_v1 = vpack.c.bf16 %v563_v58, %v562_v53 }
 0x142   :  { %8039 = vmatpush3.bf16.msra.mxu1 %v9035_v51 }
 0x143   :  { %8040 = vmatprep.subr.bf16.mxu1 %v9036_v61 }
 0x144   :  { %v457_v6 = vpop.f32.mrb[24].mxu0 }
 0x145   :  { %v564_v7 = vmax.f32 %v457_v6, 0.0  ;;  %v459_v8 = vpop.f32.mrb[25].mxu0 }
 0x146   :  { %v460_v9 = vpop.f32.mrb[26].mxu0  ;;  %v9569_v10 = vld [vmem:[#allocation2 + $0x49] sm:$0xff]  ;;  %8041 = vmatpush3.bf16.msra.mxu1 %v9036_v61 }
 0x147   :  { %11368 = vst [vmem:[#allocation7_spill] sm:$0xff] %v9569_v10  ;;  %600 = vst [vmem:[#allocation2 + $0x60] sm:$0xff] %v564_v7  ;;  %v565_v12 = vmax.f32 %v460_v9, 0.0  ;;  %v462_v13 = vpop.f32.mrb[27].mxu0  ;;  %v724_v14 = vpack.c.bf16 %v9569_v10, %v9554_v62  ;;  %8042 = vmatprep.subr.bf16.mxu1 %v9037_v5  ;;  %v9578_v17 = vld [vmem:[#allocation2 + $0x4e] sm:$0xff] }
 0x148   :  { %v9576_v16 = vld [vmem:[#allocation2 + $0x51] sm:$0xff] }
 0x149   :  { %v9580_v18 = vld [vmem:[#allocation2 + $0x56] sm:$0xff]  ;;  %601 = vst [vmem:[#allocation2 + $0x68] sm:$0xff] %v565_v12  ;;  %8006 = vmatprep.mubr.bf16.mxu1 %v724_v14  ;;  %v9582_v19 = vpack.c.bf16 %v565_v12, %v564_v7 }
 0x14a   :  { %8043 = vmatpush3.bf16.msra.mxu1 %v9037_v5 }
 0x14b   :  { %8044 = vmatprep.subr.bf16.mxu1 %v9038_v15 }
 0x14c   :  { %v465_v24 = vpop.f32.mrb[28].mxu0 }
 0x14d   :  { %v566_v25 = vmax.f32 %v465_v24, 0.0  ;;  %v467_v26 = vpop.f32.mrb[29].mxu0 }
 0x14e   :  { %v468_v27 = vpop.f32.mrb[30].mxu0  ;;  %v9593_v28 = vld [vmem:[#allocation2 + $0x59] sm:$0xff]  ;;  %8045 = vmatpush3.bf16.msra.mxu1 %v9038_v15 }
 0x14f   :  { %11369 = vst [vmem:[#allocation8_spill] sm:$0xff] %v9593_v28  ;;  %602 = vst [vmem:[#allocation2 + $0x70] sm:$0xff] %v566_v25  ;;  %v567_v29 = vmax.f32 %v468_v27, 0.0  ;;  %v470_v30 = vpop.f32.mrb[31].mxu0  ;;  %v725_v31 = vpack.c.bf16 %v9593_v28, %v9576_v16  ;;  %8078 = vmatprep.subr.bf16.mxu1 %v9591_v23  ;;  %v9600_v37 = vld [vmem:[#allocation2 + $0x5e] sm:$0xff] }
 0x150   :  { %v9598_v36 = vld [vmem:[#allocation2 + $0x61] sm:$0xff] }
 0x151   :  { %11370 = vst [vmem:[#allocation9_spill] sm:$0xff] %v9598_v36  ;;  %v9602_v38 = vld [vmem:[#allocation2 + $0x66] sm:$0xff]  ;;  %603 = vst [vmem:[#allocation2 + $0x78] sm:$0xff] %v567_v29  ;;  %8007 = vmatmul.mubr.bf16.gmra.mrb[8].mxu1 %v725_v31  ;;  %v9604_v39 = vpack.c.bf16 %v567_v29, %v566_v25 }
 0x154   :  { %v473_v43 = vpop.f32.mrb[32].mxu0 }
 0x155   :  { %v568_v44 = vmax.f32 %v473_v43, 0.0  ;;  %v475_v45 = vpop.f32.mrb[33].mxu0 }
 0x156   :  { %v476_v46 = vpop.f32.mrb[34].mxu0  ;;  %v9610_v51 = vld [vmem:[#allocation2 + $0x69] sm:$0xff] }
 0x157   :  { %11371 = vst [vmem:[#allocation10_spill] sm:$0xff] %v9610_v51  ;;  %604 = vst [vmem:[#allocation2 + $0x80] sm:$0xff] %v568_v44  ;;  %v569_v52 = vmax.f32 %v476_v46, 0.0  ;;  %v478_v53 = vpop.f32.mrb[35].mxu0  ;;  %v726_v54 = vpack.c.bf16 %v9610_v51, %v9598_v36  ;;  %v9616_v58 = vld [vmem:[#allocation2 + $0x6e] sm:$0xff] }
 0x158   :  { %v9614_v55 = vld [vmem:[#allocation2 + $0x71] sm:$0xff] }
 0x159   :  { %11372 = vst [vmem:[#allocation11_spill] sm:$0xff] %v9614_v55  ;;  %v9618_v59 = vld [vmem:[#allocation2 + $0x76] sm:$0xff]  ;;  %605 = vst [vmem:[#allocation2 + $0x88] sm:$0xff] %v569_v52  ;;  %8010 = vmatprep.mubr.bf16.mxu1 %v726_v54  ;;  %v9620_v60 = vpack.c.bf16 %v569_v52, %v568_v44 }
 0x15c   :  { %v481_v6 = vpop.f32.mrb[36].mxu0 }
 0x15d   :  { %v570_v7 = vmax.f32 %v481_v6, 0.0  ;;  %v483_v8 = vpop.f32.mrb[37].mxu0 }
 0x15e   :  { %v484_v9 = vpop.f32.mrb[38].mxu0  ;;  %v9626_v12 = vld [vmem:[#allocation2 + $0x79] sm:$0xff] }
 0x15f   :  { %11373 = vst [vmem:[#allocation12_spill] sm:$0xff] %v9626_v12  ;;  %606 = vst [vmem:[#allocation2 + $0x90] sm:$0xff] %v570_v7  ;;  %v571_v13 = vmax.f32 %v484_v9, 0.0  ;;  %v486_v14 = vpop.f32.mrb[39].mxu0  ;;  %v727_v15 = vpack.c.bf16 %v9626_v12, %v9614_v55  ;;  %v9632_v25 = vld [vmem:[#allocation2 + $0x7e] sm:$0xff] }
 0x160   :  { %v9630_v24 = vld [vmem:[#allocation2 + $0x81] sm:$0xff] }
 0x161   :  { %11374 = vst [vmem:[#allocation13_spill] sm:$0xff] %v9630_v24  ;;  %v9634_v26 = vld [vmem:[#allocation2 + $0x86] sm:$0xff]  ;;  %607 = vst [vmem:[#allocation2 + $0x98] sm:$0xff] %v571_v13  ;;  %8011 = vmatmul.mubr.bf16.gmra.mrb[12].mxu1 %v727_v15  ;;  %v9636_v27 = vpack.c.bf16 %v571_v13, %v570_v7 }
 0x164   :  { %v489_v31 = vpop.f32.mrb[40].mxu0 }
 0x165   :  { %v572_v43 = vmax.f32 %v489_v31, 0.0  ;;  %v491_v44 = vpop.f32.mrb[41].mxu0 }
 0x166   :  { %v492_v45 = vpop.f32.mrb[42].mxu0  ;;  %v9642_v46 = vld [vmem:[#allocation2 + $0x89] sm:$0xff] }
 0x167   :  { %11375 = vst [vmem:[#allocation14_spill] sm:$0xff] %v9642_v46  ;;  %608 = vst [vmem:[#allocation2 + $0xa0] sm:$0xff] %v572_v43  ;;  %v573_v52 = vmax.f32 %v492_v45, 0.0  ;;  %v494_v53 = vpop.f32.mrb[43].mxu0  ;;  %v728_v54 = vpack.c.bf16 %v9642_v46, %v9630_v24  ;;  %v9648_v7 = vld [vmem:[#allocation2 + $0x8e] sm:$0xff] }
 0x168   :  { %v9646_v6 = vld [vmem:[#allocation2 + $0x91] sm:$0xff] }
 0x169   :  { %11376 = vst [vmem:[#allocation15_spill] sm:$0xff] %v9646_v6  ;;  %v9650_v8 = vld [vmem:[#allocation2 + $0x96] sm:$0xff]  ;;  %609 = vst [vmem:[#allocation2 + $0xa8] sm:$0xff] %v573_v52  ;;  %8014 = vmatprep.mubr.bf16.mxu1 %v728_v54  ;;  %v9652_v9 = vpack.c.bf16 %v573_v52, %v572_v43 }
 0x16c   :  { %v497_v15 = vpop.f32.mrb[44].mxu0 }
 0x16d   :  { %v574_v31 = vmax.f32 %v497_v15, 0.0  ;;  %v499_v44 = vpop.f32.mrb[45].mxu0 }
 0x16e   :  { %v500_v45 = vpop.f32.mrb[46].mxu0  ;;  %v9658_v53 = vld [vmem:[#allocation2 + $0x99] sm:$0xff] }
 0x16f   :  { %11377 = vst [vmem:[#allocation16_spill] sm:$0xff] %v9658_v53  ;;  %610 = vst [vmem:[#allocation2 + $0xb0] sm:$0xff] %v574_v31  ;;  %v575_v30 = vmax.f32 %v500_v45, 0.0  ;;  %v502_v5 = vpop.f32.mrb[47].mxu0  ;;  %v729_v54 = vpack.c.bf16 %v9658_v53, %v9646_v6  ;;  %v9664_v52 = vld [vmem:[#allocation2 + $0x9e] sm:$0xff] }
 0x170   :  { %v9662_v43 = vld [vmem:[#allocation2 + $0xa1] sm:$0xff] }
 0x171   :  { %11378 = vst [vmem:[#allocation17_spill] sm:$0xff] %v9662_v43  ;;  %v9666_v42 = vld [vmem:[#allocation2 + $0xa6] sm:$0xff]  ;;  %611 = vst [vmem:[#allocation2 + $0xb8] sm:$0xff] %v575_v30  ;;  %8015 = vmatmul.mubr.bf16.gmra.mrb[16].mxu1 %v729_v54  ;;  %v9668_v14 = vpack.c.bf16 %v575_v30, %v574_v31 }
 0x174   :  { %v505_v5 = vpop.f32.mrb[48].mxu0 }
 0x175   :  { %v576_v45 = vmax.f32 %v505_v5, 0.0  ;;  %v507_v22 = vpop.f32.mrb[49].mxu0 }
 0x176   :  { %v508_v3 = vpop.f32.mrb[50].mxu0  ;;  %v9674_v50 = vld [vmem:[#allocation2 + $0xa9] sm:$0xff] }
 0x177   :  { %11379 = vst [vmem:[#allocation18_spill] sm:$0xff] %v9674_v50  ;;  %612 = vst [vmem:[#allocation2 + $0xc0] sm:$0xff] %v576_v45  ;;  %v577_v35 = vmax.f32 %v508_v3, 0.0  ;;  %v510_v13 = vpop.f32.mrb[51].mxu0  ;;  %v730_v54 = vpack.c.bf16 %v9674_v50, %v9662_v43  ;;  %v9680_v31 = vld [vmem:[#allocation2 + $0xae] sm:$0xff] }
 0x178   :  { %v9678_v30 = vld [vmem:[#allocation2 + $0xb1] sm:$0xff] }
 0x179   :  { %11380 = vst [vmem:[#allocation19_spill] sm:$0xff] %v9678_v30  ;;  %v9682_v15 = vld [vmem:[#allocation2 + $0xb6] sm:$0xff]  ;;  %613 = vst [vmem:[#allocation2 + $0xc8] sm:$0xff] %v577_v35  ;;  %8018 = vmatprep.mubr.bf16.mxu1 %v730_v54  ;;  %v9684_v44 = vpack.c.bf16 %v577_v35, %v576_v45 }
 0x17c   :  { %v513_v13 = vpop.f32.mrb[52].mxu0 }
 0x17d   :  { %v578_v5 = vmax.f32 %v513_v13, 0.0  ;;  %v515_v29 = vpop.f32.mrb[53].mxu0 }
 0x17e   :  { %v516_v61 = vpop.f32.mrb[54].mxu0  ;;  %v9690_v40 = vld [vmem:[#allocation2 + $0xb9] sm:$0xff] }
 0x17f   :  { %11381 = vst [vmem:[#allocation20_spill] sm:$0xff] %v9690_v40  ;;  %614 = vst [vmem:[#allocation2 + $0xd0] sm:$0xff] %v578_v5  ;;  %v579_v20 = vmax.f32 %v516_v61, 0.0  ;;  %v518_v2 = vpop.f32.mrb[55].mxu0  ;;  %v731_v54 = vpack.c.bf16 %v9690_v40, %v9678_v30  ;;  %v9696_v45 = vld [vmem:[#allocation2 + $0xbe] sm:$0xff] }
 0x180   :  { %v9694_v35 = vld [vmem:[#allocation2 + $0xc1] sm:$0xff] }
 0x181   :  { %11382 = vst [vmem:[#allocation21_spill] sm:$0xff] %v9694_v35  ;;  %v9698_v22 = vld [vmem:[#allocation2 + $0xc6] sm:$0xff]  ;;  %615 = vst [vmem:[#allocation2 + $0xd8] sm:$0xff] %v579_v20  ;;  %8019 = vmatmul.mubr.bf16.gmra.mrb[20].mxu1 %v731_v54  ;;  %v9700_v3 = vpack.c.bf16 %v579_v20, %v578_v5 }
 0x184   :  { %v521_v2 = vpop.f32.mrb[56].mxu0 }
 0x185   :  { %v580_v13 = vmax.f32 %v521_v2, 0.0  ;;  %v523_v50 = vpop.f32.mrb[57].mxu0 }
 0x186   :  { %v524_v30 = vpop.f32.mrb[58].mxu0  ;;  %v9706_v53 = vld [vmem:[#allocation2 + $0xc9] sm:$0xff] }
 0x187   :  { %11383 = vst [vmem:[#allocation22_spill] sm:$0xff] %v9706_v53  ;;  %616 = vst [vmem:[#allocation2 + $0xe0] sm:$0xff] %v580_v13  ;;  %v581_v43 = vmax.f32 %v524_v30, 0.0  ;;  %v526_v46 = vpop.f32.mrb[59].mxu0  ;;  %v732_v54 = vpack.c.bf16 %v9706_v53, %v9694_v35  ;;  %v9712_v5 = vld [vmem:[#allocation2 + $0xce] sm:$0xff] }
 0x188   :  { %v9710_v20 = vld [vmem:[#allocation2 + $0xd1] sm:$0xff] }
 0x189   :  { %11384 = vst [vmem:[#allocation23_spill] sm:$0xff] %v9710_v20  ;;  %v9714_v29 = vld [vmem:[#allocation2 + $0xd6] sm:$0xff]  ;;  %617 = vst [vmem:[#allocation2 + $0xe8] sm:$0xff] %v581_v43  ;;  %8022 = vmatprep.mubr.bf16.mxu1 %v732_v54  ;;  %v9716_v61 = vpack.c.bf16 %v581_v43, %v580_v13 }
 0x18c   :  { %v529_v46 = vpop.f32.mrb[60].mxu0 }
 0x18d   :  { %v582_v2 = vmax.f32 %v529_v46, 0.0  ;;  %v531_v40 = vpop.f32.mrb[61].mxu0 }
 0x18e   :  { %v532_v35 = vpop.f32.mrb[62].mxu0  ;;  %v9722_v6 = vld [vmem:[#allocation2 + $0xd9] sm:$0xff] }
 0x18f   :  { %11385 = vst [vmem:[#allocation24_spill] sm:$0xff] %v9722_v6  ;;  %618 = vst [vmem:[#allocation2 + $0xf0] sm:$0xff] %v582_v2  ;;  %v583_v12 = vmax.f32 %v532_v35, 0.0  ;;  %v534_v24 = vpop.f32.mrb[63].mxu0  ;;  %v733_v54 = vpack.c.bf16 %v9722_v6, %v9710_v20  ;;  %v9728_v13 = vld [vmem:[#allocation2 + $0xde] sm:$0xff] }
 0x190   :  { %v9726_v43 = vld [vmem:[#allocation2 + $0xe1] sm:$0xff] }
 0x191   :  { %11386 = vst [vmem:[#allocation25_spill] sm:$0xff] %v9726_v43  ;;  %v9730_v50 = vld [vmem:[#allocation2 + $0xe6] sm:$0xff]  ;;  %619 = vst [vmem:[#allocation2 + $0xf8] sm:$0xff] %v583_v12  ;;  %8023 = vmatmul.mubr.bf16.gmra.mrb[24].mxu1 %v733_v54  ;;  %v9732_v30 = vpack.c.bf16 %v583_v12, %v582_v2 }
 0x194   :  { %v537_v24 = vpop.f32.mrb[64].mxu0 }
 0x195   :  { %v584_v46 = vmax.f32 %v537_v24, 0.0  ;;  %v539_v53 = vpop.f32.mrb[65].mxu0 }
 0x196   :  { %v540_v20 = vpop.f32.mrb[66].mxu0  ;;  %v9738_v51 = vld [vmem:[#allocation2 + $0xe9] sm:$0xff] }
 0x197   :  { %620 = vst [vmem:[#allocation2 + $0x100] sm:$0xff] %v584_v46  ;;  %v585_v55 = vmax.f32 %v540_v20, 0.0  ;;  %v542_v28 = vpop.f32.mrb[67].mxu0  ;;  %v734_v54 = vpack.c.bf16 %v9738_v51, %v9726_v43  ;;  %v9744_v2 = vld [vmem:[#allocation2 + $0xee] sm:$0xff] }
 0x198   :  { %v9742_v12 = vld [vmem:[#allocation2 + $0xf1] sm:$0xff] }
 0x199   :  { %v9746_v40 = vld [vmem:[#allocation2 + $0xf6] sm:$0xff]  ;;  %621 = vst [vmem:[#allocation2 + $0x108] sm:$0xff] %v585_v55  ;;  %8026 = vmatprep.mubr.bf16.mxu1 %v734_v54  ;;  %v1828_v53 = vpack.c.bf16 %v9742_v12, %v9738_v51  ;;  %v9040_v55 = vld [vmem:[%s11342_s2 + $0x88] sm:$0xff]  }
 0x19a   :  { %v2440_v24 = vpack.c.bf16 %v9746_v40, %v9744_v2 }
 0x19c   :  { %v545_v46 = vpop.f32.mrb[68].mxu0 }
 0x19d   :  { %v586_v20 = vmax.f32 %v545_v46, 0.0  ;;  %v547_v28 = vpop.f32.mrb[69].mxu0  ;;  %v1179_v46 = vld [vmem:[#allocation2 + $0x45] sm:$0xff] }
 0x19e   :  { %v548_v35 = vpop.f32.mrb[70].mxu0  ;;  %v9752_v6 = vld [vmem:[#allocation2 + $0xf9] sm:$0xff] }
 0x19f   :  { %622 = vst [vmem:[#allocation2 + $0x110] sm:$0xff] %v586_v20  ;;  %v587_v43 = vmax.f32 %v548_v35, 0.0  ;;  %v735_v36 = vpack.c.bf16 %v9752_v6, %v9742_v12  ;;  %v550_v10 = vpop.f32.mrb[71].mxu0  ;;  %v9041_v35 = vld [vmem:[%s11342_s2 + $0x90] sm:$0xff]   ;;  %v9050_v20 = vld [vmem:[%s11342_s2 + $0xd8] sm:$0xff]  }
 0x1a0   :  { %v1172_v10 = vld [vmem:[#allocation2 + $0xd] sm:$0xff] }
 0x1a1   :  { %623 = vst [vmem:[#allocation2 + $0x118] sm:$0xff] %v587_v43  ;;  %8027 = vmatmul.mubr.bf16.gmra.mrb[28].mxu1 %v735_v36  ;;  %v1174_v36 = vld [vmem:[#allocation2 + $0x1d] sm:$0xff]  ;;  %v1175_v43 = vld [vmem:[#allocation2 + $0x25] sm:$0xff]  ;;  %v9073_v12 = vld [vmem:[%s11342_s2 + $0x190] sm:$0xff]  }
 0x1a2   :  { %8046 = vmatprep.mubr.bf16.mxu1 %v9508_v4  ;;  %v9042_v4 = vld [vmem:[%s11342_s2 + $0x98] sm:$0xff]  }
 0x1a9   :  { %8047 = vmatmul.mubr.bf16.vlgmr.msra.gmra.mrb[0].mxu1 %v9510_v11  ;;  %v9043_v11 = vld [vmem:[%s11342_s2 + $0xa0] sm:$0xff]  }
 0x1aa   :  { %8050 = vmatprep.mubr.bf16.mxu1 %v9512_v21  ;;  %8079 = vmatpush3.bf16.msra.mxu1 %v9591_v23  ;;  %v9044_v21 = vld [vmem:[%s11342_s2 + $0xa8] sm:$0xff]  }
 0x1ab   :  { %8080 = vmatprep.subr.bf16.mxu1 %v9040_v55 }
 0x1ae   :  { %8081 = vmatpush3.bf16.msra.mxu1 %v9040_v55  ;;  %v9051_v55 = vld [vmem:[%s11342_s2 + $0xe0] sm:$0xff]  }
 0x1af   :  { %8082 = vmatprep.subr.bf16.mxu1 %v9041_v35 }
 0x1b1   :  { %8051 = vmatmul.mubr.bf16.gmra.mrb[4].mxu1 %v9521_v34  ;;  %v9045_v34 = vld [vmem:[%s11342_s2 + $0xb0] sm:$0xff]  }
 0x1b2   :  { %8054 = vmatprep.mubr.bf16.mxu1 %v9538_v49  ;;  %8083 = vmatpush3.bf16.msra.mxu1 %v9041_v35  ;;  %v9046_v49 = vld [vmem:[%s11342_s2 + $0xb8] sm:$0xff]  }
 0x1b3   :  { %8084 = vmatprep.subr.bf16.mxu1 %v9042_v4  ;;  %v1182_v35 = vld [vmem:[#allocation2 + $0x5d] sm:$0xff] }
 0x1b6   :  { %8085 = vmatpush3.bf16.msra.mxu1 %v9042_v4  ;;  %v1184_v4 = vld [vmem:[#allocation2 + $0x6d] sm:$0xff] }
 0x1b7   :  { %8086 = vmatprep.subr.bf16.mxu1 %v9043_v11 }
 0x1b9   :  { %8055 = vmatmul.mubr.bf16.gmra.mrb[8].mxu1 %v9560_v1  ;;  %v9047_v1 = vld [vmem:[%s11342_s2 + $0xc0] sm:$0xff]  }
 0x1ba   :  { %8058 = vmatprep.mubr.bf16.mxu1 %v9582_v19  ;;  %8087 = vmatpush3.bf16.msra.mxu1 %v9043_v11  ;;  %v1171_v19 = vld [vmem:[#allocation2 + $0x5] sm:$0xff]  ;;  %v1181_v11 = vld [vmem:[#allocation2 + $0x55] sm:$0xff] }
 0x1bb   :  { %8088 = vmatprep.subr.bf16.mxu1 %v9044_v21  ;;  %v1203_v23 = vpack.c.bf16 %v1172_v10, %v1171_v19  ;;  %v9053_v10 = vld [vmem:[%s11342_s2 + $0xf0] sm:$0xff]   ;;  %v1186_v19 = vld [vmem:[#allocation2 + $0x7d] sm:$0xff] }
 0x1be   :  { %8089 = vmatpush3.bf16.msra.mxu1 %v9044_v21  ;;  %v1208_v21 = vpack.c.bf16 %v1182_v35, %v1181_v11  ;;  %v1195_v35 = vld [vmem:[#allocation2 + $0xc5] sm:$0xff]  ;;  %v1198_v11 = vld [vmem:[#allocation2 + $0xdd] sm:$0xff] }
 0x1bf   :  { %8090 = vmatprep.subr.bf16.mxu1 %v9045_v34 }
 0x1c1   :  { %8059 = vmatmul.mubr.bf16.gmra.mrb[12].mxu1 %v9604_v39  ;;  %v1176_v39 = vld [vmem:[#allocation2 + $0x2d] sm:$0xff] }
 0x1c2   :  { %8062 = vmatprep.mubr.bf16.mxu1 %v9620_v60  ;;  %8091 = vmatpush3.bf16.msra.mxu1 %v9045_v34  ;;  %v1173_v60 = vld [vmem:[#allocation2 + $0x15] sm:$0xff]  ;;  %v1183_v34 = vld [vmem:[#allocation2 + $0x65] sm:$0xff] }
 0x1c3   :  { %8092 = vmatprep.subr.bf16.mxu1 %v9046_v49 }
 0x1c6   :  { %8093 = vmatpush3.bf16.msra.mxu1 %v9046_v49  ;;  %v9052_v49 = vld [vmem:[%s11342_s2 + $0xe8] sm:$0xff]  }
 0x1c7   :  { %8126 = vmatprep.subr.bf16.mxu1 %v9047_v1 }
 0x1c9   :  { %8063 = vmatmul.mubr.bf16.gmra.mrb[16].mxu1 %v9636_v27  ;;  %v1204_v27 = vpack.c.bf16 %v1174_v36, %v1173_v60  ;;  %v1185_v36 = vld [vmem:[#allocation2 + $0x75] sm:$0xff]  ;;  %v1187_v60 = vld [vmem:[#allocation2 + $0x85] sm:$0xff] }
 0x1ca   :  { %8066 = vmatprep.mubr.bf16.mxu1 %v9652_v9  ;;  %v9048_v9 = vld [vmem:[%s11342_s2 + $0xc8] sm:$0xff]  }
 0x1d1   :  { %8067 = vmatmul.mubr.bf16.gmra.mrb[20].mxu1 %v9668_v14  ;;  %v1205_v14 = vpack.c.bf16 %v1176_v39, %v1175_v43  ;;  %v1210_v39 = vpack.c.bf16 %v1186_v19, %v1185_v36  ;;  %v1202_v19 = vld [vmem:[#allocation2 + $0xfd] sm:$0xff]  ;;  %v1201_v36 = vld [vmem:[#allocation2 + $0xf5] sm:$0xff] }
 0x1d2   :  { %8070 = vmatprep.mubr.bf16.mxu1 %v9684_v44  ;;  %v9049_v44 = vld [vmem:[%s11342_s2 + $0xd0] sm:$0xff]  }
 0x1d9   :  { %8071 = vmatmul.mubr.bf16.gmra.mrb[24].mxu1 %v9700_v3  ;;  %v1178_v3 = vld [vmem:[#allocation2 + $0x3d] sm:$0xff] }
 0x1da   :  { %8074 = vmatprep.mubr.bf16.mxu1 %v9716_v61  ;;  %v1180_v61 = vld [vmem:[#allocation2 + $0x4d] sm:$0xff] }
 0x1db   :  { %v1207_v28 = vpack.c.bf16 %v1180_v61, %v1179_v46  ;;  %v1194_v46 = vld [vmem:[#allocation2 + $0xbd] sm:$0xff] }
 0x1e1   :  { %8075 = vmatmul.mubr.bf16.gmra.mrb[28].mxu1 %v9732_v30  ;;  %v1177_v30 = vld [vmem:[#allocation2 + $0x35] sm:$0xff] }
 0x1e2   :  { %8094 = vmatprep.mubr.bf16.mxu1 %v1203_v23  ;;  %v1206_v54 = vpack.c.bf16 %v1178_v3, %v1177_v30  ;;  %v1188_v23 = vld [vmem:[#allocation2 + $0x8d] sm:$0xff]  ;;  %v1189_v3 = vld [vmem:[#allocation2 + $0x95] sm:$0xff]  ;;  %v1191_v30 = vld [vmem:[#allocation2 + $0xa5] sm:$0xff] }
 0x1e3   :  { %v1211_v43 = vpack.c.bf16 %v1188_v23, %v1187_v60  ;;  %v1478_v23 = vld [vmem:[#allocation2 + $0xe] sm:$0xff]  ;;  %v1477_v60 = vld [vmem:[#allocation2 + $0x6] sm:$0xff] }
 0x1e9   :  { %8095 = vmatmul.mubr.bf16.vlgmr.msra.gmra.mrb[0].mxu1 %v1204_v27  ;;  %v9054_v27 = vld [vmem:[%s11342_s2 + $0xf8] sm:$0xff]  }
 0x1ea   :  { %8098 = vmatprep.mubr.bf16.mxu1 %v1205_v14  ;;  %8127 = vmatpush3.bf16.msra.mxu1 %v9047_v1  ;;  %v1209_v1 = vpack.c.bf16 %v1184_v4, %v1183_v34  ;;  %v1190_v14 = vld [vmem:[#allocation2 + $0x9d] sm:$0xff]  ;;  %v1197_v34 = vld [vmem:[#allocation2 + $0xd5] sm:$0xff] }
 0x1eb   :  { %8128 = vmatprep.subr.bf16.mxu1 %v9048_v9  ;;  %v1212_v61 = vpack.c.bf16 %v1190_v14, %v1189_v3  ;;  %v1511_v3 = vpack.c.bf16 %v9534_v47, %v9519_v33 }
 0x1ee   :  { %8129 = vmatpush3.bf16.msra.mxu1 %v9048_v9  ;;  %v9055_v9 = vld [vmem:[%s11342_s2 + $0x100] sm:$0xff]  }
 0x1ef   :  { %8130 = vmatprep.subr.bf16.mxu1 %v9049_v44 }
 0x1f1   :  { %8099 = vmatmul.mubr.bf16.gmra.mrb[4].mxu1 %v1206_v54 }
 0x1f2   :  { %8102 = vmatprep.mubr.bf16.mxu1 %v1207_v28  ;;  %8131 = vmatpush3.bf16.msra.mxu1 %v9049_v44  ;;  %v1192_v44 = vld [vmem:[#allocation2 + $0xad] sm:$0xff]  ;;  %v1193_v28 = vld [vmem:[#allocation2 + $0xb5] sm:$0xff] }
 0x1f3   :  { %8132 = vmatprep.subr.bf16.mxu1 %v9050_v20  ;;  %v1213_v54 = vpack.c.bf16 %v1192_v44, %v1191_v30  ;;  %v9056_v44 = vld [vmem:[%s11342_s2 + $0x108] sm:$0xff]   ;;  %v1512_v30 = vpack.c.bf16 %v9556_v63, %v9536_v48 }
 0x1f6   :  { %8133 = vmatpush3.bf16.msra.mxu1 %v9050_v20  ;;  %v1196_v20 = vld [vmem:[#allocation2 + $0xcd] sm:$0xff] }
 0x1f7   :  { %8134 = vmatprep.subr.bf16.mxu1 %v9051_v55  ;;  %v1215_v4 = vpack.c.bf16 %v1196_v20, %v1195_v35  ;;  %v1514_v20 = vpack.c.bf16 %v9600_v37, %v9580_v18  ;;  %v9061_v35 = vld [vmem:[%s11342_s2 + $0x130] sm:$0xff]  }
 0x1f9   :  { %8103 = vmatmul.mubr.bf16.gmra.mrb[8].mxu1 %v1208_v21  ;;  %v1200_v21 = vld [vmem:[#allocation2 + $0xed] sm:$0xff] }
 0x1fa   :  { %8106 = vmatprep.mubr.bf16.mxu1 %v1209_v1  ;;  %8135 = vmatpush3.bf16.msra.mxu1 %v9051_v55  ;;  %v1214_v55 = vpack.c.bf16 %v1194_v46, %v1193_v28  ;;  %v1199_v1 = vld [vmem:[#allocation2 + $0xe5] sm:$0xff]  ;;  %v1513_v46 = vpack.c.bf16 %v9578_v17, %v9558_v0 }
 0x1fb   :  { %8136 = vmatprep.subr.bf16.mxu1 %v9052_v49  ;;  %v9060_v28 = vld [vmem:[%s11342_s2 + $0x128] sm:$0xff]  }
 0x1fe   :  { %8137 = vmatpush3.bf16.msra.mxu1 %v9052_v49  ;;  %v1216_v49 = vpack.c.bf16 %v1198_v11, %v1197_v34  ;;  %v9062_v11 = vld [vmem:[%s11342_s2 + $0x138] sm:$0xff]   ;;  %v9063_v34 = vld [vmem:[%s11342_s2 + $0x140] sm:$0xff]  }
 0x1ff   :  { %8138 = vmatprep.subr.bf16.mxu1 %v9053_v10 }
 0x201   :  { %8107 = vmatmul.mubr.bf16.gmra.mrb[12].mxu1 %v1210_v39  ;;  %v1218_v39 = vpack.c.bf16 %v1202_v19, %v1201_v36  ;;  %v1521_v19 = vpack.c.bf16 %v9712_v5, %v9698_v22  ;;  %v1523_v36 = vpack.c.bf16 %v9744_v2, %v9730_v50  ;;  %v2707_v2 = vld [vmem:[#allocation2 + $0x4f] sm:$0xff] }
 0x202   :  { %8110 = vmatprep.mubr.bf16.mxu1 %v1211_v43  ;;  %8139 = vmatpush3.bf16.msra.mxu1 %v9053_v10  ;;  %v1217_v10 = vpack.c.bf16 %v1200_v21, %v1199_v1  ;;  %v1479_v43 = vld [vmem:[#allocation2 + $0x16] sm:$0xff]  ;;  %v1517_v21 = vpack.c.bf16 %v9648_v7, %v9634_v26  ;;  %v1519_v1 = vpack.c.bf16 %v9680_v31, %v9666_v42 }
 0x203   :  { %8140 = vmatprep.subr.bf16.mxu1 %v9054_v27  ;;  %v1510_v14 = vpack.c.bf16 %v9517_v32, %v1479_v43 }
 0x206   :  { %8141 = vmatpush3.bf16.msra.mxu1 %v9054_v27  ;;  %v1509_v27 = vpack.c.bf16 %v1478_v23, %v1477_v60  ;;  %v1522_v23 = vpack.c.bf16 %v9728_v13, %v9714_v29 }
 0x207   :  { %8174 = vmatprep.subr.bf16.mxu1 %v9055_v9 }
 0x209   :  { %8111 = vmatmul.mubr.bf16.gmra.mrb[16].mxu1 %v1212_v61  ;;  %v9057_v61 = vld [vmem:[%s11342_s2 + $0x110] sm:$0xff]  }
 0x20a   :  { %8114 = vmatprep.mubr.bf16.mxu1 %v1213_v54  ;;  %v9058_v54 = vld [vmem:[%s11342_s2 + $0x118] sm:$0xff]  }
 0x211   :  { %8115 = vmatmul.mubr.bf16.gmra.mrb[20].mxu1 %v1214_v55  ;;  %v1515_v55 = vpack.c.bf16 %v9616_v58, %v9602_v38 }
 0x212   :  { %8118 = vmatprep.mubr.bf16.mxu1 %v1215_v4  ;;  %v1516_v4 = vpack.c.bf16 %v9632_v25, %v9618_v59 }
 0x219   :  { %8119 = vmatmul.mubr.bf16.gmra.mrb[24].mxu1 %v1216_v49  ;;  %v1518_v49 = vpack.c.bf16 %v9664_v52, %v9650_v8 }
 0x21a   :  { %8122 = vmatprep.mubr.bf16.mxu1 %v1217_v10  ;;  %v1520_v10 = vpack.c.bf16 %v9696_v45, %v9682_v15 }
 0x221   :  { %8123 = vmatmul.mubr.bf16.gmra.mrb[28].mxu1 %v1218_v39  ;;  %v9872_v39 = vld [vmem:[#allocation2 + $0xfe] sm:$0xff] }
 0x222   :  { %8142 = vmatprep.mubr.bf16.mxu1 %v1509_v27  ;;  %v1524_v60 = vpack.c.bf16 %v9872_v39, %v9746_v40  ;;  %v1783_v27 = vld [vmem:[#allocation2 + $0x19] sm:$0xff]  ;;  %v2710_v40 = vld [vmem:[#allocation2 + $0x67] sm:$0xff] }
 0x223   :  { %v1815_v43 = vpack.c.bf16 %v9528_v41, %v1783_v27  ;;  %v9065_v41 = vld [vmem:[%s11342_s2 + $0x150] sm:$0xff]  }
 0x224   :  { %v11405_v27 = vld [vmem:[#allocation19_spill] sm:$0xff] }
 0x229   :  { %8143 = vmatmul.mubr.bf16.vlgmr.msra.gmra.mrb[0].mxu1 %v1510_v14  ;;  %v1785_v14 = vld [vmem:[#allocation2 + $0x29] sm:$0xff] }
 0x22a   :  { %8146 = vmatprep.mubr.bf16.mxu1 %v1511_v3  ;;  %8175 = vmatpush3.bf16.msra.mxu1 %v9055_v9  ;;  %v9059_v9 = vld [vmem:[%s11342_s2 + $0x120] sm:$0xff]   ;;  %v9064_v3 = vld [vmem:[%s11342_s2 + $0x148] sm:$0xff]  }
 0x22b   :  { %8176 = vmatprep.subr.bf16.mxu1 %v9056_v44 }
 0x22e   :  { %8177 = vmatpush3.bf16.msra.mxu1 %v9056_v44  ;;  %v1816_v44 = vpack.c.bf16 %v9545_v56, %v1785_v14  ;;  %v9066_v56 = vld [vmem:[%s11342_s2 + $0x158] sm:$0xff]  }
 0x22f   :  { %8178 = vmatprep.subr.bf16.mxu1 %v9057_v61 }
 0x231   :  { %8147 = vmatmul.mubr.bf16.gmra.mrb[4].mxu1 %v1512_v30  ;;  %v11388_v30 = vld [vmem:[#allocation7_spill] sm:$0xff] }
 0x232   :  { %8150 = vmatprep.mubr.bf16.mxu1 %v1513_v46  ;;  %8179 = vmatpush3.bf16.msra.mxu1 %v9057_v61  ;;  %v11387_v61 = vpack.c.bf16 %v9554_v62, %v9547_v57  ;;  %v11390_v46 = vld [vmem:[#allocation9_spill] sm:$0xff] }
 0x233   :  { %8180 = vmatprep.subr.bf16.mxu1 %v9058_v54  ;;  %v9067_v62 = vld [vmem:[%s11342_s2 + $0x160] sm:$0xff]  }
 0x236   :  { %8181 = vmatpush3.bf16.msra.mxu1 %v9058_v54  ;;  %v11389_v54 = vpack.c.bf16 %v9576_v16, %v11388_v30 }
 0x237   :  { %8182 = vmatprep.subr.bf16.mxu1 %v9059_v9 }
 0x239   :  { %8151 = vmatmul.mubr.bf16.gmra.mrb[8].mxu1 %v1514_v20  ;;  %v9068_v20 = vld [vmem:[%s11342_s2 + $0x168] sm:$0xff]  }
 0x23a   :  { %8154 = vmatprep.mubr.bf16.mxu1 %v1515_v55  ;;  %8183 = vmatpush3.bf16.msra.mxu1 %v9059_v9  ;;  %v11391_v9 = vld [vmem:[#allocation8_spill] sm:$0xff]  ;;  %v11394_v55 = vld [vmem:[#allocation10_spill] sm:$0xff] }
 0x23b   :  { %8184 = vmatprep.subr.bf16.mxu1 %v9060_v28  ;;  %v11392_v57 = vpack.c.bf16 %v11390_v46, %v11391_v9  ;;  %v11415_v46 = vld [vmem:[#allocation24_spill] sm:$0xff] }
 0x23e   :  { %8185 = vmatpush3.bf16.msra.mxu1 %v9060_v28  ;;  %v11393_v28 = vld [vmem:[#allocation11_spill] sm:$0xff] }
 0x23f   :  { %8186 = vmatprep.subr.bf16.mxu1 %v9061_v35  ;;  %v11395_v16 = vpack.c.bf16 %v11393_v28, %v11394_v55  ;;  %v2090_v28 = vld [vmem:[#allocation2 + $0x22] sm:$0xff] }
 0x240   :  { %v1813_v55 = vld [vmem:[#allocation2 + $0x109] sm:$0xff] }
 0x241   :  { %8155 = vmatmul.mubr.bf16.gmra.mrb[12].mxu1 %v1516_v4  ;;  %v11397_v4 = vld [vmem:[#allocation12_spill] sm:$0xff] }
 0x242   :  { %8158 = vmatprep.mubr.bf16.mxu1 %v1517_v21  ;;  %8187 = vmatpush3.bf16.msra.mxu1 %v9061_v35  ;;  %v11396_v35 = vld [vmem:[#allocation13_spill] sm:$0xff]  ;;  %v9069_v21 = vld [vmem:[%s11342_s2 + $0x170] sm:$0xff]  }
 0x243   :  { %8188 = vmatprep.subr.bf16.mxu1 %v9062_v11 }
 0x246   :  { %8189 = vmatpush3.bf16.msra.mxu1 %v9062_v11  ;;  %v11398_v11 = vpack.c.bf16 %v11396_v35, %v11397_v4  ;;  %v2089_v35 = vld [vmem:[#allocation2 + $0x1a] sm:$0xff] }
 0x247   :  { %8222 = vmatprep.subr.bf16.mxu1 %v9063_v34  ;;  %v2121_v4 = vpack.c.bf16 %v2090_v28, %v2089_v35  ;;  %v9078_v28 = vld [vmem:[%s11342_s2 + $0x1b8] sm:$0xff]  }
 0x248   :  { %v2108_v35 = vld [vmem:[#allocation2 + $0xb2] sm:$0xff] }
 0x249   :  { %8159 = vmatmul.mubr.bf16.gmra.mrb[16].mxu1 %v1518_v49  ;;  %v11399_v49 = vld [vmem:[#allocation15_spill] sm:$0xff] }
 0x24a   :  { %8162 = vmatprep.mubr.bf16.mxu1 %v1519_v1  ;;  %v11400_v1 = vld [vmem:[#allocation14_spill] sm:$0xff] }
 0x251   :  { %8163 = vmatmul.mubr.bf16.gmra.mrb[20].mxu1 %v1520_v10  ;;  %v11401_v10 = vpack.c.bf16 %v11399_v49, %v11400_v1  ;;  %v2093_v1 = vld [vmem:[#allocation2 + $0x3a] sm:$0xff] }
 0x252   :  { %8166 = vmatprep.mubr.bf16.mxu1 %v1521_v19  ;;  %v11402_v19 = vld [vmem:[#allocation17_spill] sm:$0xff] }
 0x259   :  { %8167 = vmatmul.mubr.bf16.gmra.mrb[24].mxu1 %v1522_v23  ;;  %v11403_v23 = vld [vmem:[#allocation16_spill] sm:$0xff] }
 0x25a   :  { %8170 = vmatprep.mubr.bf16.mxu1 %v1523_v36  ;;  %v11404_v36 = vpack.c.bf16 %v11402_v19, %v11403_v23  ;;  %v2095_v19 = vld [vmem:[#allocation2 + $0x4a] sm:$0xff] }
 0x261   :  { %8171 = vmatmul.mubr.bf16.gmra.mrb[28].mxu1 %v1524_v60  ;;  %v9071_v60 = vld [vmem:[%s11342_s2 + $0x180] sm:$0xff]  }
 0x262   :  { %8190 = vmatprep.mubr.bf16.mxu1 %v1815_v43  ;;  %v11406_v43 = vld [vmem:[#allocation18_spill] sm:$0xff] }
 0x263   :  { %v11407_v14 = vpack.c.bf16 %v11405_v27, %v11406_v43  ;;  %v9074_v27 = vld [vmem:[%s11342_s2 + $0x198] sm:$0xff]  }
 0x269   :  { %8191 = vmatmul.mubr.bf16.vlgmr.msra.gmra.mrb[0].mxu1 %v1816_v44  ;;  %v11408_v44 = vld [vmem:[#allocation21_spill] sm:$0xff] }
 0x26a   :  { %8194 = vmatprep.mubr.bf16.mxu1 %v11387_v61  ;;  %8223 = vmatpush3.bf16.msra.mxu1 %v9063_v34  ;;  %v9070_v34 = vld [vmem:[%s11342_s2 + $0x178] sm:$0xff]  }
 0x26b   :  { %8224 = vmatprep.subr.bf16.mxu1 %v9064_v3 }
 0x26e   :  { %8225 = vmatpush3.bf16.msra.mxu1 %v9064_v3  ;;  %v11409_v3 = vld [vmem:[#allocation20_spill] sm:$0xff] }
 0x26f   :  { %8226 = vmatprep.subr.bf16.mxu1 %v9065_v41  ;;  %v11410_v61 = vpack.c.bf16 %v11408_v44, %v11409_v3  ;;  %v2102_v44 = vld [vmem:[#allocation2 + $0x82] sm:$0xff]  ;;  %v2099_v3 = vld [vmem:[#allocation2 + $0x6a] sm:$0xff] }
 0x271   :  { %8195 = vmatmul.mubr.bf16.gmra.mrb[4].mxu1 %v11389_v54  ;;  %v11414_v54 = vld [vmem:[#allocation25_spill] sm:$0xff] }
 0x272   :  { %8198 = vmatprep.mubr.bf16.mxu1 %v11392_v57  ;;  %8227 = vmatpush3.bf16.msra.mxu1 %v9065_v41  ;;  %v11411_v41 = vld [vmem:[#allocation23_spill] sm:$0xff]  ;;  %v11416_v9 = vpack.c.bf16 %v11414_v54, %v11415_v46  ;;  %v1812_v57 = vld [vmem:[#allocation2 + $0x101] sm:$0xff] }
 0x273   :  { %8228 = vmatprep.subr.bf16.mxu1 %v9066_v56  ;;  %v9077_v54 = vld [vmem:[%s11342_s2 + $0x1b0] sm:$0xff]  }
 0x274   :  { %v2104_v46 = vld [vmem:[#allocation2 + $0x92] sm:$0xff] }
 0x276   :  { %8229 = vmatpush3.bf16.msra.mxu1 %v9066_v56  ;;  %v11412_v56 = vld [vmem:[#allocation22_spill] sm:$0xff] }
 0x277   :  { %8230 = vmatprep.subr.bf16.mxu1 %v9067_v62  ;;  %v11413_v30 = vpack.c.bf16 %v11411_v41, %v11412_v56  ;;  %v2101_v41 = vld [vmem:[#allocation2 + $0x7a] sm:$0xff]  ;;  %v9076_v56 = vld [vmem:[%s11342_s2 + $0x1a8] sm:$0xff]  }
 0x279   :  { %8199 = vmatmul.mubr.bf16.gmra.mrb[8].mxu1 %v11395_v16 }
 0x27a   :  { %8202 = vmatprep.mubr.bf16.mxu1 %v11398_v11  ;;  %8231 = vmatpush3.bf16.msra.mxu1 %v9067_v62  ;;  %v1829_v62 = vpack.c.bf16 %v1812_v57, %v9752_v6  ;;  %v2092_v11 = vld [vmem:[#allocation2 + $0x32] sm:$0xff]  ;;  %v9072_v6 = vld [vmem:[%s11342_s2 + $0x188] sm:$0xff]  }
 0x27b   :  { %8232 = vmatprep.subr.bf16.mxu1 %v9068_v20  ;;  %v2103_v57 = vld [vmem:[#allocation2 + $0x8a] sm:$0xff] }
 0x27e   :  { %8233 = vmatpush3.bf16.msra.mxu1 %v9068_v20  ;;  %v1814_v20 = vld [vmem:[#allocation2 + $0x111] sm:$0xff] }
 0x27f   :  { %8234 = vmatprep.subr.bf16.mxu1 %v9069_v21  ;;  %v1830_v16 = vpack.c.bf16 %v1814_v20, %v1813_v55  ;;  %v2105_v20 = vld [vmem:[#allocation2 + $0x9a] sm:$0xff] }
 0x281   :  { %8203 = vmatmul.mubr.bf16.gmra.mrb[12].mxu1 %v11401_v10  ;;  %v2098_v10 = vld [vmem:[#allocation2 + $0x62] sm:$0xff] }
 0x282   :  { %8206 = vmatprep.mubr.bf16.mxu1 %v11404_v36  ;;  %8235 = vmatpush3.bf16.msra.mxu1 %v9069_v21  ;;  %v2094_v21 = vld [vmem:[#allocation2 + $0x42] sm:$0xff]  ;;  %v2097_v36 = vld [vmem:[#allocation2 + $0x5a] sm:$0xff] }
 0x283   :  { %8236 = vmatprep.subr.bf16.mxu1 %v9070_v34  ;;  %v2123_v51 = vpack.c.bf16 %v2094_v21, %v2093_v1  ;;  %v2125_v43 = vpack.c.bf16 %v2098_v10, %v2097_v36  ;;  %v2112_v1 = vld [vmem:[#allocation2 + $0xd2] sm:$0xff]  ;;  %v2115_v36 = vld [vmem:[#allocation2 + $0xea] sm:$0xff] }
 0x286   :  { %8237 = vmatpush3.bf16.msra.mxu1 %v9070_v34  ;;  %v2091_v34 = vld [vmem:[#allocation2 + $0x2a] sm:$0xff] }
 0x287   :  { %8270 = vmatprep.subr.bf16.mxu1 %v9071_v60  ;;  %v2122_v49 = vpack.c.bf16 %v2092_v11, %v2091_v34  ;;  %v2107_v11 = vld [vmem:[#allocation2 + $0xaa] sm:$0xff]  ;;  %v2109_v34 = vld [vmem:[#allocation2 + $0xba] sm:$0xff] }
 0x288   :  { %v2130_v21 = vpack.c.bf16 %v2108_v35, %v2107_v11 }
 0x289   :  { %8207 = vmatmul.mubr.bf16.gmra.mrb[16].mxu1 %v11407_v14  ;;  %v2100_v14 = vld [vmem:[#allocation2 + $0x72] sm:$0xff] }
 0x28a   :  { %8210 = vmatprep.mubr.bf16.mxu1 %v11410_v61  ;;  %v2126_v61 = vpack.c.bf16 %v2100_v14, %v2099_v3  ;;  %v2120_v14 = vld [vmem:[#allocation2 + $0x112] sm:$0xff] }
 0x291   :  { %8211 = vmatmul.mubr.bf16.gmra.mrb[20].mxu1 %v11413_v30  ;;  %v2127_v30 = vpack.c.bf16 %v2102_v44, %v2101_v41  ;;  %v2119_v44 = vld [vmem:[#allocation2 + $0x10a] sm:$0xff] }
 0x292   :  { %8214 = vmatprep.mubr.bf16.mxu1 %v11416_v9  ;;  %v2106_v9 = vld [vmem:[#allocation2 + $0xa2] sm:$0xff]  ;;  %v2136_v3 = vpack.c.bf16 %v2120_v14, %v2119_v44 }
 0x293   :  { %v2129_v55 = vpack.c.bf16 %v2106_v9, %v2105_v20  ;;  %v9080_v41 = vld [vmem:[%s11342_s2 + $0x1c8] sm:$0xff]   ;;  %v2705_v9 = vld [vmem:[#allocation2 + $0x3f] sm:$0xff] }
 0x294   :  { %v2725_v44 = vld [vmem:[#allocation2 + $0xdf] sm:$0xff] }
 0x299   :  { %8215 = vmatmul.mubr.bf16.gmra.mrb[24].mxu1 %v1828_v53  ;;  %v2096_v53 = vld [vmem:[#allocation2 + $0x52] sm:$0xff] }
 0x29a   :  { %8218 = vmatprep.mubr.bf16.mxu1 %v1829_v62  ;;  %v2124_v23 = vpack.c.bf16 %v2096_v53, %v2095_v19  ;;  %v2128_v62 = vpack.c.bf16 %v2104_v46, %v2103_v57  ;;  %v2113_v53 = vld [vmem:[#allocation2 + $0xda] sm:$0xff]  ;;  %v2116_v19 = vld [vmem:[#allocation2 + $0xf2] sm:$0xff] }
 0x2a1   :  { %8219 = vmatmul.mubr.bf16.gmra.mrb[28].mxu1 %v1830_v16  ;;  %v9079_v16 = vld [vmem:[%s11342_s2 + $0x1c0] sm:$0xff]  }
 0x2a2   :  { %8238 = vmatprep.mubr.bf16.mxu1 %v2121_v4  ;;  %v2110_v4 = vld [vmem:[#allocation2 + $0xc2] sm:$0xff] }
 0x2a9   :  { %8239 = vmatmul.mubr.bf16.vlgmr.msra.gmra.mrb[0].mxu1 %v2122_v49  ;;  %v2131_v49 = vpack.c.bf16 %v2110_v4, %v2109_v34  ;;  %v2713_v4 = vld [vmem:[#allocation2 + $0x7f] sm:$0xff]  ;;  %v2718_v34 = vld [vmem:[#allocation2 + $0xa7] sm:$0xff] }
 0x2aa   :  { %8242 = vmatprep.mubr.bf16.mxu1 %v2123_v51  ;;  %8271 = vmatpush3.bf16.msra.mxu1 %v9071_v60  ;;  %v9075_v60 = vld [vmem:[%s11342_s2 + $0x1a0] sm:$0xff]   ;;  %v2111_v51 = vld [vmem:[#allocation2 + $0xca] sm:$0xff] }
 0x2ab   :  { %8272 = vmatprep.subr.bf16.mxu1 %v9072_v6 }
 0x2ae   :  { %8273 = vmatpush3.bf16.msra.mxu1 %v9072_v6  ;;  %v2114_v6 = vld [vmem:[#allocation2 + $0xe2] sm:$0xff] }
 0x2af   :  { %8274 = vmatprep.subr.bf16.mxu1 %v9073_v12  ;;  %v2133_v10 = vpack.c.bf16 %v2114_v6, %v2113_v53  ;;  %v2717_v6 = vld [vmem:[#allocation2 + $0x9f] sm:$0xff]  ;;  %v2722_v53 = vld [vmem:[#allocation2 + $0xc7] sm:$0xff] }
 0x2b1   :  { %8243 = vmatmul.mubr.bf16.gmra.mrb[4].mxu1 %v2124_v23  ;;  %v2118_v23 = vld [vmem:[#allocation2 + $0x102] sm:$0xff] }
 0x2b2   :  { %8246 = vmatprep.mubr.bf16.mxu1 %v2125_v43  ;;  %8275 = vmatpush3.bf16.msra.mxu1 %v9073_v12  ;;  %v2132_v12 = vpack.c.bf16 %v2112_v1, %v2111_v51  ;;  %v2117_v43 = vld [vmem:[#allocation2 + $0xfa] sm:$0xff]  ;;  %v2741_v51 = vpack.c.bf16 %v2718_v34, %v2717_v6 }
 0x2b3   :  { %8276 = vmatprep.subr.bf16.mxu1 %v9074_v27 }
 0x2b6   :  { %8277 = vmatpush3.bf16.msra.mxu1 %v9074_v27  ;;  %v2134_v27 = vpack.c.bf16 %v2116_v19, %v2115_v36 }
 0x2b7   :  { %8278 = vmatprep.subr.bf16.mxu1 %v9075_v60 }
 0x2b9   :  { %8247 = vmatmul.mubr.bf16.gmra.mrb[8].mxu1 %v2126_v61  ;;  %v11417_v61 = vpack.c.bf16 %v9519_v33, %v9517_v32  ;;  %v9082_v32 = vld [vmem:[%s11342_s2 + $0x1d8] sm:$0xff]   ;;  %v11420_v33 = vpack.c.bf16 %v9580_v18, %v9578_v17  ;;  %v11423_v17 = vpack.c.bf16 %v9634_v26, %v9632_v25  ;;  %v9085_v18 = vld [vmem:[%s11342_s2 + $0x1f0] sm:$0xff]   ;;  %v11427_v25 = vpack.c.bf16 %v9698_v22, %v9696_v45 }
 0x2ba   :  { %8250 = vmatprep.mubr.bf16.mxu1 %v2127_v30  ;;  %8279 = vmatpush3.bf16.msra.mxu1 %v9075_v60  ;;  %v2135_v60 = vpack.c.bf16 %v2118_v23, %v2117_v43  ;;  %v11419_v30 = vpack.c.bf16 %v9558_v0, %v9556_v63  ;;  %v9084_v63 = vld [vmem:[%s11342_s2 + $0x1e8] sm:$0xff]   ;;  %v11422_v0 = vpack.c.bf16 %v9618_v59, %v9616_v58  ;;  %v2701_v45 = vld [vmem:[#allocation2 + $0x1f] sm:$0xff] }
 0x2bb   :  { %8280 = vmatprep.subr.bf16.mxu1 %v9076_v56  ;;  %v11425_v58 = vpack.c.bf16 %v9666_v42, %v9664_v52  ;;  %v11426_v59 = vpack.c.bf16 %v9682_v15, %v9680_v31  ;;  %v11428_v26 = vpack.c.bf16 %v9714_v29, %v9712_v5  ;;  %v2424_v42 = vld [vmem:[#allocation2 + $0x106] sm:$0xff]  ;;  %v2426_v52 = vld [vmem:[#allocation2 + $0x116] sm:$0xff]  ;;  %v2425_v31 = vld [vmem:[#allocation2 + $0x10e] sm:$0xff] }
 0x2bc   :  { %v2702_v15 = vld [vmem:[#allocation2 + $0x27] sm:$0xff]  ;;  %v2442_v22 = vpack.c.bf16 %v2426_v52, %v2425_v31  ;;  %v2704_v29 = vld [vmem:[#allocation2 + $0x37] sm:$0xff]  ;;  %v2721_v23 = vld [vmem:[#allocation2 + $0xbf] sm:$0xff] }
 0x2bd   :  { %v2733_v46 = vpack.c.bf16 %v2702_v15, %v2701_v45  ;;  %v2706_v5 = vld [vmem:[#allocation2 + $0x47] sm:$0xff]  ;;  %v2743_v36 = vpack.c.bf16 %v2722_v53, %v2721_v23 }
 0x2be   :  { %8281 = vmatpush3.bf16.msra.mxu1 %v9076_v56  ;;  %v11418_v56 = vpack.c.bf16 %v9536_v48, %v9534_v47  ;;  %v11421_v47 = vpack.c.bf16 %v9602_v38, %v9600_v37  ;;  %v9083_v48 = vld [vmem:[%s11342_s2 + $0x1e0] sm:$0xff]   ;;  %v9086_v37 = vld [vmem:[%s11342_s2 + $0x1f8] sm:$0xff]   ;;  %v11424_v38 = vpack.c.bf16 %v9650_v8, %v9648_v7  ;;  %v11429_v7 = vpack.c.bf16 %v9730_v50, %v9728_v13  ;;  %v2703_v50 = vld [vmem:[#allocation2 + $0x2f] sm:$0xff] }
 0x2bf   :  { %8282 = vmatprep.subr.bf16.mxu1 %v9077_v54  ;;  %v2441_v8 = vpack.c.bf16 %v2424_v42, %v9872_v39  ;;  %v2734_v13 = vpack.c.bf16 %v2704_v29, %v2703_v50  ;;  %v2735_v57 = vpack.c.bf16 %v2706_v5, %v2705_v9  ;;  %v2708_v39 = vld [vmem:[#allocation2 + $0x57] sm:$0xff]  ;;  %v2726_v43 = vld [vmem:[#allocation2 + $0xe7] sm:$0xff] }
 0x2c1   :  { %8251 = vmatmul.mubr.bf16.gmra.mrb[12].mxu1 %v2128_v62  ;;  %v2709_v62 = vld [vmem:[#allocation2 + $0x5f] sm:$0xff] }
 0x2c2   :  { %8254 = vmatprep.mubr.bf16.mxu1 %v2129_v55  ;;  %8283 = vmatpush3.bf16.msra.mxu1 %v9077_v54  ;;  %v9081_v54 = vld [vmem:[%s11342_s2 + $0x1d0] sm:$0xff]   ;;  %v2737_v20 = vpack.c.bf16 %v2710_v40, %v2709_v62  ;;  %v2714_v55 = vld [vmem:[#allocation2 + $0x87] sm:$0xff] }
 0x2c3   :  { %8284 = vmatprep.subr.bf16.mxu1 %v9078_v28  ;;  %v2739_v11 = vpack.c.bf16 %v2714_v55, %v2713_v4 }
 0x2c6   :  { %8285 = vmatpush3.bf16.msra.mxu1 %v9078_v28  ;;  %v2712_v28 = vld [vmem:[#allocation2 + $0x77] sm:$0xff] }
 0x2c7   :  { %8318 = vmatprep.subr.bf16.mxu1 %v9079_v16 }
 0x2c9   :  { %8255 = vmatmul.mubr.bf16.gmra.mrb[16].mxu1 %v2130_v21  ;;  %v2716_v21 = vld [vmem:[#allocation2 + $0x97] sm:$0xff] }
 0x2ca   :  { %8258 = vmatprep.mubr.bf16.mxu1 %v2131_v49  ;;  %v2715_v49 = vld [vmem:[#allocation2 + $0x8f] sm:$0xff] }
 0x2cb   :  { %v2740_v1 = vpack.c.bf16 %v2716_v21, %v2715_v49 }
 0x2d1   :  { %8259 = vmatmul.mubr.bf16.gmra.mrb[20].mxu1 %v2132_v12  ;;  %v2720_v12 = vld [vmem:[#allocation2 + $0xb7] sm:$0xff] }
 0x2d2   :  { %8262 = vmatprep.mubr.bf16.mxu1 %v2133_v10  ;;  %v2719_v10 = vld [vmem:[#allocation2 + $0xaf] sm:$0xff] }
 0x2d3   :  { %v2742_v19 = vpack.c.bf16 %v2720_v12, %v2719_v10 }
 0x2d9   :  { %8263 = vmatmul.mubr.bf16.gmra.mrb[24].mxu1 %v2134_v27  ;;  %v2724_v27 = vld [vmem:[#allocation2 + $0xd7] sm:$0xff] }
 0x2da   :  { %8266 = vmatprep.mubr.bf16.mxu1 %v2135_v60  ;;  %v2723_v60 = vld [vmem:[#allocation2 + $0xcf] sm:$0xff] }
 0x2db   :  { %v2744_v14 = vpack.c.bf16 %v2724_v27, %v2723_v60 }
 0x2e1   :  { %8267 = vmatmul.mubr.bf16.gmra.mrb[28].mxu1 %v2136_v3  ;;  %v2745_v3 = vpack.c.bf16 %v2726_v43, %v2725_v44 }
 0x2e2   :  { %8286 = vmatprep.mubr.bf16.mxu1 %v11417_v61  ;;  %v2728_v61 = vld [vmem:[#allocation2 + $0xf7] sm:$0xff] }
 0x2e9   :  { %8287 = vmatmul.mubr.bf16.vlgmr.msra.gmra.mrb[0].mxu1 %v11418_v56  ;;  %v2727_v56 = vld [vmem:[#allocation2 + $0xef] sm:$0xff] }
 0x2ea   :  { %8290 = vmatprep.mubr.bf16.mxu1 %v11419_v30  ;;  %8319 = vmatpush3.bf16.msra.mxu1 %v9079_v16  ;;  %v2711_v16 = vld [vmem:[#allocation2 + $0x6f] sm:$0xff]  ;;  %v2746_v30 = vpack.c.bf16 %v2728_v61, %v2727_v56 }
 0x2eb   :  { %8320 = vmatprep.subr.bf16.mxu1 %v9080_v41  ;;  %v2738_v35 = vpack.c.bf16 %v2712_v28, %v2711_v16 }
 0x2ee   :  { %8321 = vmatpush3.bf16.msra.mxu1 %v9080_v41  ;;  %v2730_v41 = vld [vmem:[#allocation2 + $0x107] sm:$0xff] }
 0x2ef   :  { %8322 = vmatprep.subr.bf16.mxu1 %v9081_v54 }
 0x2f1   :  { %8291 = vmatmul.mubr.bf16.gmra.mrb[4].mxu1 %v11420_v33  ;;  %v2732_v33 = vld [vmem:[#allocation2 + $0x117] sm:$0xff] }
 0x2f2   :  { %8294 = vmatprep.mubr.bf16.mxu1 %v11421_v47  ;;  %8323 = vmatpush3.bf16.msra.mxu1 %v9081_v54  ;;  %v2729_v54 = vld [vmem:[#allocation2 + $0xff] sm:$0xff]  ;;  %v2731_v47 = vld [vmem:[#allocation2 + $0x10f] sm:$0xff] }
 0x2f3   :  { %8324 = vmatprep.subr.bf16.mxu1 %v9082_v32 }
 0x2f6   :  { %8325 = vmatpush3.bf16.msra.mxu1 %v9082_v32  ;;  %v2747_v32 = vpack.c.bf16 %v2730_v41, %v2729_v54 }
 0x2f7   :  { %8326 = vmatprep.subr.bf16.mxu1 %v9083_v48 }
 0x2f9   :  { %8295 = vmatmul.mubr.bf16.gmra.mrb[8].mxu1 %v11422_v0  ;;  %v9090_v0 = vld [vmem:[%s11343_s3 + $0x50] sm:$0xff]  }
 0x2fa   :  { %8298 = vmatprep.mubr.bf16.mxu1 %v11423_v17  ;;  %8327 = vmatpush3.bf16.msra.mxu1 %v9083_v48  ;;  %v2748_v48 = vpack.c.bf16 %v2732_v33, %v2731_v47  ;;  %v10036_v17 = vld [vmem:[%s11345_s5] ss:$0 sm:$0xff]  ;;  %s9275_s5 = smov 96  }
 0x2fb   :  { %8328 = vmatprep.subr.bf16.mxu1 %v9084_v63 }
 0x2fe   :  { %8329 = vmatpush3.bf16.msra.mxu1 %v9084_v63  ;;  %v9087_v63 = vld [vmem:[%s11343_s3] sm:$0xff]  }
 0x2ff   :  { %8330 = vmatprep.subr.bf16.mxu1 %v9085_v18  ;;  %8382 = vmatprep.mubr.bf16.mxu0 %v9087_v63 }
 0x301   :  { %8299 = vmatmul.mubr.bf16.gmra.mrb[12].mxu1 %v11424_v38 }
 0x302   :  { %8302 = vmatprep.mubr.bf16.mxu1 %v11425_v58  ;;  %8331 = vmatpush3.bf16.msra.mxu1 %v9085_v18 }
 0x303   :  { %8332 = vmatprep.subr.bf16.mxu1 %v9086_v37 }
 0x306   :  { %8333 = vmatpush3.bf16.msra.mxu1 %v9086_v37 }
 0x309   :  { %8303 = vmatmul.mubr.bf16.gmra.mrb[16].mxu1 %v11426_v59 }
 0x30a   :  { %8306 = vmatprep.mubr.bf16.mxu1 %v11427_v25 }
 0x311   :  { %8307 = vmatmul.mubr.bf16.gmra.mrb[20].mxu1 %v11428_v26 }
 0x312   :  { %8310 = vmatprep.mubr.bf16.mxu1 %v11429_v7 }
 0x319   :  { %8311 = vmatmul.mubr.bf16.gmra.mrb[24].mxu1 %v2440_v24  ;;  %v2736_v24 = vpack.c.bf16 %v2708_v39, %v2707_v2 }
 0x31a   :  { %8314 = vmatprep.mubr.bf16.mxu1 %v2441_v8 }
 0x321   :  { %8315 = vmatmul.mubr.bf16.gmra.mrb[28].mxu1 %v2442_v22 }
 0x322   :  { %8334 = vmatprep.mubr.bf16.mxu1 %v2733_v46 }
 0x329   :  { %8335 = vmatmul.mubr.bf16.vlgmr.msra.gmra.mrb[0].mxu1 %v2734_v13 }
 0x32a   :  { %8338 = vmatprep.mubr.bf16.mxu1 %v2735_v57 }
 0x331   :  { %8339 = vmatmul.mubr.bf16.gmra.mrb[4].mxu1 %v2736_v24 }
 0x332   :  { %8342 = vmatprep.mubr.bf16.mxu1 %v2737_v20 }
 0x339   :  { %8343 = vmatmul.mubr.bf16.gmra.mrb[8].mxu1 %v2738_v35 }
 0x33a   :  { %8346 = vmatprep.mubr.bf16.mxu1 %v2739_v11 }
 0x341   :  { %8347 = vmatmul.mubr.bf16.gmra.mrb[12].mxu1 %v2740_v1 }
 0x342   :  { %8350 = vmatprep.mubr.bf16.mxu1 %v2741_v51 }
 0x349   :  { %8351 = vmatmul.mubr.bf16.gmra.mrb[16].mxu1 %v2742_v19 }
 0x34a   :  { %8354 = vmatprep.mubr.bf16.mxu1 %v2743_v36 }
 0x351   :  { %8355 = vmatmul.mubr.bf16.gmra.mrb[20].mxu1 %v2744_v14 }
 0x352   :  { %8358 = vmatprep.mubr.bf16.mxu1 %v2745_v3 }
 0x359   :  { %8359 = vmatmul.mubr.bf16.gmra.mrb[24].mxu1 %v2746_v30 }
 0x35a   :  { %8362 = vmatprep.mubr.bf16.mxu1 %v2747_v32 }
 0x361   :  { %8363 = vmatmul.mubr.bf16.gmra.mrb[28].mxu1 %v2748_v48 }
 0x362   :  { %8602 = vmatprep.mubr.bf16.mxu1 %v9090_v0 }
 0x3fc   :  { %v8336_v18 = vpop.f32.mrb[0].mxu1 }
 0x3fd   :  { %v3016_v37 = vadd.f32 %v8336_v18, %v10036_v17  ;;  %v2848_v38 = vpop.f32.mrb[1].mxu1 }
 0x3fe   :  { %v3014_v58 = vadd.f32 %v10036_v17, %v2848_v38  ;;  %v8337_v59 = vpop.f32.mrb[2].mxu1 }
 0x3ff   :  { %v3017_v25 = vadd.f32 %v8337_v59, %v10036_v17  ;;  %v2851_v26 = vpop.f32.mrb[3].mxu1  ;;  %v3048_v42 = vmax.f32 %v3016_v37, 0.0 }
 0x400   :  { %v3015_v7 = vadd.f32 %v10036_v17, %v2851_v26  ;;  %v3046_v52 = vmax.f32 %v3014_v58, 0.0  ;;  %v9088_v26 = vld [vmem:[%s11343_s3 + $0x8] sm:$0xff]  }
 0x401   :  { %v3049_v8 = vmax.f32 %v3017_v25, 0.0 }
 0x402   :  { %v3047_v15 = vmax.f32 %v3015_v7, 0.0 }
 0x403   :  { %v10042_v31 = vpack.c.bf16 %v3049_v8, %v3048_v42 }
 0x404   :  { %v10044_v22 = vpack.c.bf16 %v3047_v15, %v3046_v52  ;;  %v8340_v45 = vpop.f32.mrb[4].mxu1  ;;  %v9089_v15 = vld [vmem:[%s11343_s3] sm:$0xff]  }
 0x405   :  { %v3020_v46 = vadd.f32 %v8340_v45, %v10036_v17  ;;  %v2864_v29 = vpop.f32.mrb[5].mxu1 }
 0x406   :  { %v3018_v5 = vadd.f32 %v10036_v17, %v2864_v29  ;;  %v8341_v50 = vpop.f32.mrb[6].mxu1  ;;  %8366 = vmatprep.subr.bf16.mxu0 %v10044_v22 }
 0x407   :  { %v3021_v13 = vadd.f32 %v8341_v50, %v10036_v17  ;;  %v2867_v9 = vpop.f32.mrb[7].mxu1  ;;  %8367 = vmatpush3.bf16.msra.mxu0 %v10044_v22  ;;  %v3052_v39 = vmax.f32 %v3020_v46, 0.0 }
 0x408   :  { %v3019_v57 = vadd.f32 %v10036_v17, %v2867_v9  ;;  %8368 = vmatprep.subr.bf16.mxu0 %v10042_v31  ;;  %v3050_v2 = vmax.f32 %v3018_v5, 0.0 }
 0x409   :  { %v3053_v40 = vmax.f32 %v3021_v13, 0.0 }
 0x40a   :  { %v3051_v24 = vmax.f32 %v3019_v57, 0.0 }
 0x40b   :  { %v10053_v62 = vpack.c.bf16 %v3053_v40, %v3052_v39  ;;  %8369 = vmatpush3.bf16.msra.mxu0 %v10042_v31 }
 0x40c   :  { %v10056_v20 = vpack.c.bf16 %v3051_v24, %v3050_v2  ;;  %v8344_v28 = vpop.f32.mrb[8].mxu1 }
 0x40d   :  { %v3024_v55 = vadd.f32 %v8344_v28, %v10036_v17  ;;  %v2880_v16 = vpop.f32.mrb[9].mxu1 }
 0x40e   :  { %v3022_v35 = vadd.f32 %v10036_v17, %v2880_v16  ;;  %v8345_v4 = vpop.f32.mrb[10].mxu1  ;;  %8370 = vmatprep.subr.bf16.mxu0 %v10056_v20 }
 0x40f   :  { %v3025_v11 = vadd.f32 %v8345_v4, %v10036_v17  ;;  %v2883_v21 = vpop.f32.mrb[11].mxu1  ;;  %8371 = vmatpush3.bf16.msra.mxu0 %v10056_v20  ;;  %v3056_v49 = vmax.f32 %v3024_v55, 0.0 }
 0x410   :  { %v3023_v34 = vadd.f32 %v10036_v17, %v2883_v21  ;;  %8372 = vmatprep.subr.bf16.mxu0 %v10053_v62  ;;  %v3054_v6 = vmax.f32 %v3022_v35, 0.0 }
 0x411   :  { %v3057_v1 = vmax.f32 %v3025_v11, 0.0 }
 0x412   :  { %v3055_v51 = vmax.f32 %v3023_v34, 0.0 }
 0x413   :  { %v10065_v12 = vpack.c.bf16 %v3057_v1, %v3056_v49  ;;  %8373 = vmatpush3.bf16.msra.mxu0 %v10053_v62 }
 0x414   :  { %v10068_v53 = vpack.c.bf16 %v3055_v51, %v3054_v6  ;;  %v8348_v10 = vpop.f32.mrb[12].mxu1 }
 0x415   :  { %v3028_v19 = vadd.f32 %v8348_v10, %v10036_v17  ;;  %v2896_v23 = vpop.f32.mrb[13].mxu1 }
 0x416   :  { %v3026_v36 = vadd.f32 %v10036_v17, %v2896_v23  ;;  %v8349_v27 = vpop.f32.mrb[14].mxu1  ;;  %8374 = vmatprep.subr.bf16.mxu0 %v10068_v53 }
 0x417   :  { %v3029_v43 = vadd.f32 %v8349_v27, %v10036_v17  ;;  %v2899_v60 = vpop.f32.mrb[15].mxu1  ;;  %8375 = vmatpush3.bf16.msra.mxu0 %v10068_v53  ;;  %v3060_v44 = vmax.f32 %v3028_v19, 0.0 }
 0x418   :  { %v3027_v14 = vadd.f32 %v10036_v17, %v2899_v60  ;;  %8376 = vmatprep.subr.bf16.mxu0 %v10065_v12  ;;  %v3058_v61 = vmax.f32 %v3026_v36, 0.0 }
 0x419   :  { %v3061_v3 = vmax.f32 %v3029_v43, 0.0 }
 0x41a   :  { %v3059_v41 = vmax.f32 %v3027_v14, 0.0 }
 0x41b   :  { %v10077_v56 = vpack.c.bf16 %v3061_v3, %v3060_v44  ;;  %8377 = vmatpush3.bf16.msra.mxu0 %v10065_v12 }
 0x41c   :  { %v10080_v30 = vpack.c.bf16 %v3059_v41, %v3058_v61  ;;  %v8352_v54 = vpop.f32.mrb[16].mxu1 }
 0x41d   :  { %v3032_v32 = vadd.f32 %v8352_v54, %v10036_v17  ;;  %v2912_v33 = vpop.f32.mrb[17].mxu1 }
 0x41e   :  { %v3030_v47 = vadd.f32 %v10036_v17, %v2912_v33  ;;  %v8353_v48 = vpop.f32.mrb[18].mxu1  ;;  %8378 = vmatprep.subr.bf16.mxu0 %v10080_v30 }
 0x41f   :  { %v3033_v63 = vadd.f32 %v8353_v48, %v10036_v17  ;;  %v2915_v0 = vpop.f32.mrb[19].mxu1  ;;  %8379 = vmatpush3.bf16.msra.mxu0 %v10080_v30  ;;  %v3064_v37 = vmax.f32 %v3032_v32, 0.0  ;;  %v9093_v48 = vld [vmem:[%s11343_s3 + $0x10] sm:$0xff]  }
 0x420   :  { %v3031_v18 = vadd.f32 %v10036_v17, %v2915_v0  ;;  %8380 = vmatprep.subr.bf16.mxu0 %v10077_v56  ;;  %v3062_v58 = vmax.f32 %v3030_v47, 0.0  ;;  %v9091_v47 = vld [vmem:[%s11343_s3 + $0x8] sm:$0xff]  }
 0x421   :  { %v3065_v38 = vmax.f32 %v3033_v63, 0.0  ;;  %v9094_v63 = vld [vmem:[%s11343_s3 + $0x60] sm:$0xff]   ;;  %v9096_v0 = vld [vmem:[%s11343_s3 + $0x68] sm:$0xff]  }
 0x422   :  { %v3063_v59 = vmax.f32 %v3031_v18, 0.0  ;;  %v9095_v18 = vld [vmem:[%s11343_s3 + $0x18] sm:$0xff]  }
 0x423   :  { %v10089_v25 = vpack.c.bf16 %v3065_v38, %v3064_v37  ;;  %8381 = vmatpush3.bf16.msra.mxu0 %v10077_v56  ;;  %v9097_v37 = vld [vmem:[%s11343_s3 + $0x10] sm:$0xff]  }
 0x424   :  { %v10095_v7 = vpack.c.bf16 %v3063_v59, %v3062_v58  ;;  %v8356_v42 = vpop.f32.mrb[20].mxu1  ;;  %v9106_v38 = vld [vmem:[%s11343_s3 + $0x70] sm:$0xff]   ;;  %v9108_v58 = vld [vmem:[%s11343_s3 + $0x78] sm:$0xff]  }
 0x425   :  { %v3036_v8 = vadd.f32 %v8356_v42, %v10036_v17  ;;  %v2928_v52 = vpop.f32.mrb[21].mxu1  ;;  %v9098_v59 = vld [vmem:[%s11343_s3 + $0x18] sm:$0xff]   ;;  %v9100_v42 = vld [vmem:[%s11343_s3 + $0x28] sm:$0xff]  }
 0x426   :  { %v3034_v45 = vadd.f32 %v10036_v17, %v2928_v52  ;;  %v8357_v46 = vpop.f32.mrb[22].mxu1  ;;  %8386 = vmatprep.subr.bf16.mxu0 %v10095_v7  ;;  %8586 = vmatprep.subr.bf16.mxu1 %v10095_v7  ;;  %v9102_v52 = vld [vmem:[%s11343_s3 + $0x28] sm:$0xff]  }
 0x427   :  { %v3037_v29 = vadd.f32 %v8357_v46, %v10036_v17  ;;  %v2931_v5 = vpop.f32.mrb[23].mxu1  ;;  %8383 = vmatmul.mubr.bf16.vlgmr.msra.gmra.mrb[72].mxu0 %v9088_v26  ;;  %8587 = vmatpush3.bf16.msra.mxu1 %v10095_v7  ;;  %v3068_v13 = vmax.f32 %v3036_v8, 0.0  ;;  %v9099_v26 = vld [vmem:[%s11343_s3 + $0x20] sm:$0xff]   ;;  %v9105_v46 = vld [vmem:[%s11343_s3 + $0x30] sm:$0xff]  }
 0x428   :  { %v3035_v50 = vadd.f32 %v10036_v17, %v2931_v5  ;;  %8387 = vmatpush3.bf16.msra.mxu0 %v10095_v7  ;;  %8588 = vmatprep.subr.bf16.mxu1 %v10089_v25  ;;  %v3066_v57 = vmax.f32 %v3034_v45, 0.0  ;;  %v9101_v8 = vld [vmem:[%s11343_s3 + $0x20] sm:$0xff]   ;;  %v9104_v45 = vld [vmem:[%s11343_s3 + $0x38] sm:$0xff]  }
 0x429   :  { %v3069_v9 = vmax.f32 %v3037_v29, 0.0  ;;  %8388 = vmatprep.subr.bf16.mxu0 %v10089_v25  ;;  %8402 = vmatprep.mubr.bf16.mxu0 %v9089_v15  ;;  %v9103_v15 = vld [vmem:[%s11343_s3 + $0x30] sm:$0xff]  }
 0x42a   :  { %v3067_v39 = vmax.f32 %v3035_v50, 0.0 }
 0x42b   :  { %v10110_v40 = vpack.c.bf16 %v3069_v9, %v3068_v13  ;;  %8589 = vmatpush3.bf16.msra.mxu1 %v10089_v25  ;;  %v9107_v9 = vld [vmem:[%s11343_s3 + $0x38] sm:$0xff]  }
 0x42c   :  { %v10113_v2 = vpack.c.bf16 %v3067_v39, %v3066_v57  ;;  %8389 = vmatpush3.bf16.msra.mxu0 %v10089_v25  ;;  %v8360_v24 = vpop.f32.mrb[24].mxu1  ;;  %v9109_v57 = vld [vmem:[%s11343_s3 + $0x40] sm:$0xff]  }
 0x42d   :  { %v3040_v28 = vadd.f32 %v8360_v24, %v10036_v17  ;;  %v2944_v55 = vpop.f32.mrb[25].mxu1 }
 0x42e   :  { %v3038_v16 = vadd.f32 %v10036_v17, %v2944_v55  ;;  %v8361_v35 = vpop.f32.mrb[26].mxu1  ;;  %8390 = vmatprep.subr.bf16.mxu0 %v10113_v2  ;;  %8590 = vmatprep.subr.bf16.mxu1 %v10113_v2 }
 0x42f   :  { %v3041_v4 = vadd.f32 %v8361_v35, %v10036_v17  ;;  %v2947_v11 = vpop.f32.mrb[27].mxu1  ;;  %8591 = vmatpush3.bf16.msra.mxu1 %v10113_v2  ;;  %v3072_v34 = vmax.f32 %v3040_v28, 0.0 }
 0x430   :  { %v3039_v21 = vadd.f32 %v10036_v17, %v2947_v11  ;;  %8391 = vmatpush3.bf16.msra.mxu0 %v10113_v2  ;;  %8592 = vmatprep.subr.bf16.mxu1 %v10110_v40  ;;  %v3070_v1 = vmax.f32 %v3038_v16, 0.0 }
 0x431   :  { %v3073_v49 = vmax.f32 %v3041_v4, 0.0  ;;  %8392 = vmatprep.subr.bf16.mxu0 %v10110_v40 }
 0x432   :  { %v3071_v6 = vmax.f32 %v3039_v21, 0.0  ;;  %v9110_v21 = vld [vmem:[%s11343_s3 + $0x48] sm:$0xff]  }
 0x433   :  { %v10126_v51 = vpack.c.bf16 %v3073_v49, %v3072_v34  ;;  %8593 = vmatpush3.bf16.msra.mxu1 %v10110_v40  ;;  %v9111_v34 = vld [vmem:[%s11343_s3 + $0x40] sm:$0xff]  }
 0x434   :  { %v10129_v10 = vpack.c.bf16 %v3071_v6, %v3070_v1  ;;  %8393 = vmatpush3.bf16.msra.mxu0 %v10110_v40  ;;  %v8364_v19 = vpop.f32.mrb[28].mxu1 }
 0x435   :  { %v3044_v23 = vadd.f32 %v8364_v19, %v10036_v17  ;;  %v2960_v36 = vpop.f32.mrb[29].mxu1  ;;  %v9113_v19 = vld [vmem:[%s11343_s3 + $0x50] sm:$0xff]  }
 0x436   :  { %v3042_v27 = vadd.f32 %v10036_v17, %v2960_v36  ;;  %v8365_v43 = vpop.f32.mrb[30].mxu1  ;;  %8394 = vmatprep.subr.bf16.mxu0 %v10129_v10  ;;  %8594 = vmatprep.subr.bf16.mxu1 %v10129_v10 }
 0x437   :  { %v3045_v60 = vadd.f32 %v8365_v43, %v10036_v17  ;;  %v2963_v14 = vpop.f32.mrb[31].mxu1  ;;  %8595 = vmatpush3.bf16.msra.mxu1 %v10129_v10  ;;  %v3076_v3 = vmax.f32 %v3044_v23, 0.0 }
 0x438   :  { %v3043_v44 = vadd.f32 %v10036_v17, %v2963_v14  ;;  %8395 = vmatpush3.bf16.msra.mxu0 %v10129_v10  ;;  %8596 = vmatprep.subr.bf16.mxu1 %v10126_v51  ;;  %v3074_v41 = vmax.f32 %v3042_v27, 0.0  ;;  %v9092_v17 = vld [vmem:[%s11343_s3 + $0x58] sm:$0xff]  }
 0x439   :  { %v3077_v61 = vmax.f32 %v3045_v60, 0.0  ;;  %8396 = vmatprep.subr.bf16.mxu0 %v10126_v51 }
 0x43a   :  { %v3075_v54 = vmax.f32 %v3043_v44, 0.0 }
 0x43b   :  { %v10142_v32 = vpack.c.bf16 %v3077_v61, %v3076_v3  ;;  %8597 = vmatpush3.bf16.msra.mxu1 %v10126_v51  ;;  %v9114_v61 = vld [vmem:[%s11343_s3 + $0x58] sm:$0xff]  }
 0x43c   :  { %v10145_v33 = vpack.c.bf16 %v3075_v54, %v3074_v41  ;;  %8397 = vmatpush3.bf16.msra.mxu0 %v10126_v51  ;;  %v9115_v41 = vld [vmem:[%s11343_s3 + $0x60] sm:$0xff]  }
 0x43e   :  { %8398 = vmatprep.subr.bf16.mxu0 %v10145_v33  ;;  %8598 = vmatprep.subr.bf16.mxu1 %v10145_v33 }
 0x43f   :  { %8599 = vmatpush3.bf16.msra.mxu1 %v10145_v33 }
 0x440   :  { %8399 = vmatpush3.bf16.msra.mxu0 %v10145_v33  ;;  %8600 = vmatprep.subr.bf16.mxu1 %v10142_v32 }
 0x441   :  { %8400 = vmatprep.subr.bf16.mxu0 %v10142_v32 }
 0x443   :  { %8601 = vmatpush3.bf16.msra.mxu1 %v10142_v32 }
 0x444   :  { %8401 = vmatpush3.bf16.msra.mxu0 %v10142_v32  ;;  %8626 = vmatprep.subr.bf16.mxu1 %v10095_v7 }
 0x445   :  { %8406 = vmatprep.subr.bf16.mxu0 %v10044_v22 }
 0x446   :  { %8603 = vmatmul.mubr.bf16.vlgmr.msra.gmra.mrb[32].mxu1 %v9092_v17 }
 0x447   :  { %8403 = vmatmul.mubr.bf16.vlgmr.msra.gmra.mrb[76].mxu0 %v9091_v47  ;;  %8627 = vmatpush3.bf16.msra.mxu1 %v10095_v7  ;;  %v9116_v47 = vld [vmem:[%s11343_s3 + $0x68] sm:$0xff]  }
 0x448   :  { %8407 = vmatpush3.bf16.msra.mxu0 %v10044_v22  ;;  %8628 = vmatprep.subr.bf16.mxu1 %v10089_v25 }
 0x449   :  { %8408 = vmatprep.subr.bf16.mxu0 %v10042_v31  ;;  %8422 = vmatprep.mubr.bf16.mxu0 %v9093_v48  ;;  %v9117_v48 = vld [vmem:[%s11343_s3 + $0x70] sm:$0xff]  }
 0x44a   :  { %8642 = vmatprep.mubr.bf16.mxu1 %v9094_v63 }
 0x44b   :  { %8629 = vmatpush3.bf16.msra.mxu1 %v10089_v25 }
 0x44c   :  { %8409 = vmatpush3.bf16.msra.mxu0 %v10042_v31  ;;  %8630 = vmatprep.subr.bf16.mxu1 %v10113_v2 }
 0x44d   :  { %8410 = vmatprep.subr.bf16.mxu0 %v10056_v20 }
 0x44f   :  { %8631 = vmatpush3.bf16.msra.mxu1 %v10113_v2 }
 0x450   :  { %8411 = vmatpush3.bf16.msra.mxu0 %v10056_v20  ;;  %8632 = vmatprep.subr.bf16.mxu1 %v10110_v40 }
 0x451   :  { %8412 = vmatprep.subr.bf16.mxu0 %v10053_v62 }
 0x453   :  { %8633 = vmatpush3.bf16.msra.mxu1 %v10110_v40 }
 0x454   :  { %8413 = vmatpush3.bf16.msra.mxu0 %v10053_v62  ;;  %8634 = vmatprep.subr.bf16.mxu1 %v10129_v10 }
 0x455   :  { %8414 = vmatprep.subr.bf16.mxu0 %v10068_v53 }
 0x457   :  { %8635 = vmatpush3.bf16.msra.mxu1 %v10129_v10 }
 0x458   :  { %8415 = vmatpush3.bf16.msra.mxu0 %v10068_v53  ;;  %8636 = vmatprep.subr.bf16.mxu1 %v10126_v51 }
 0x459   :  { %8416 = vmatprep.subr.bf16.mxu0 %v10065_v12 }
 0x45b   :  { %8637 = vmatpush3.bf16.msra.mxu1 %v10126_v51 }
 0x45c   :  { %8417 = vmatpush3.bf16.msra.mxu0 %v10065_v12  ;;  %8638 = vmatprep.subr.bf16.mxu1 %v10145_v33 }
 0x45d   :  { %8418 = vmatprep.subr.bf16.mxu0 %v10080_v30 }
 0x45f   :  { %8639 = vmatpush3.bf16.msra.mxu1 %v10145_v33 }
 0x460   :  { %8419 = vmatpush3.bf16.msra.mxu0 %v10080_v30  ;;  %8640 = vmatprep.subr.bf16.mxu1 %v10142_v32 }
 0x461   :  { %8420 = vmatprep.subr.bf16.mxu0 %v10077_v56 }
 0x463   :  { %8641 = vmatpush3.bf16.msra.mxu1 %v10142_v32 }
 0x464   :  { %8421 = vmatpush3.bf16.msra.mxu0 %v10077_v56  ;;  %8666 = vmatprep.subr.bf16.mxu1 %v10095_v7 }
 0x465   :  { %8426 = vmatprep.subr.bf16.mxu0 %v10095_v7 }
 0x466   :  { %8643 = vmatmul.mubr.bf16.vlgmr.msra.gmra.mrb[36].mxu1 %v9096_v0 }
 0x467   :  { %8423 = vmatmul.mubr.bf16.vlgmr.msra.gmra.mrb[80].mxu0 %v9095_v18  ;;  %8667 = vmatpush3.bf16.msra.mxu1 %v10095_v7 }
 0x468   :  { %8427 = vmatpush3.bf16.msra.mxu0 %v10095_v7  ;;  %8668 = vmatprep.subr.bf16.mxu1 %v10089_v25 }
 0x469   :  { %8428 = vmatprep.subr.bf16.mxu0 %v10089_v25  ;;  %8442 = vmatprep.mubr.bf16.mxu0 %v9097_v37 }
 0x46a   :  { %8682 = vmatprep.mubr.bf16.mxu1 %v9106_v38 }
 0x46b   :  { %8669 = vmatpush3.bf16.msra.mxu1 %v10089_v25 }
 0x46c   :  { %8429 = vmatpush3.bf16.msra.mxu0 %v10089_v25  ;;  %8670 = vmatprep.subr.bf16.mxu1 %v10113_v2 }
 0x46d   :  { %8430 = vmatprep.subr.bf16.mxu0 %v10113_v2 }
 0x46f   :  { %8671 = vmatpush3.bf16.msra.mxu1 %v10113_v2 }
 0x470   :  { %8431 = vmatpush3.bf16.msra.mxu0 %v10113_v2  ;;  %8672 = vmatprep.subr.bf16.mxu1 %v10110_v40 }
 0x471   :  { %8432 = vmatprep.subr.bf16.mxu0 %v10110_v40 }
 0x473   :  { %8673 = vmatpush3.bf16.msra.mxu1 %v10110_v40 }
 0x474   :  { %8433 = vmatpush3.bf16.msra.mxu0 %v10110_v40  ;;  %8674 = vmatprep.subr.bf16.mxu1 %v10129_v10 }
 0x475   :  { %8434 = vmatprep.subr.bf16.mxu0 %v10129_v10 }
 0x477   :  { %8675 = vmatpush3.bf16.msra.mxu1 %v10129_v10 }
 0x478   :  { %8435 = vmatpush3.bf16.msra.mxu0 %v10129_v10  ;;  %8676 = vmatprep.subr.bf16.mxu1 %v10126_v51 }
 0x479   :  { %8436 = vmatprep.subr.bf16.mxu0 %v10126_v51 }
 0x47b   :  { %8677 = vmatpush3.bf16.msra.mxu1 %v10126_v51 }
 0x47c   :  { %8437 = vmatpush3.bf16.msra.mxu0 %v10126_v51  ;;  %8678 = vmatprep.subr.bf16.mxu1 %v10145_v33 }
 0x47d   :  { %8438 = vmatprep.subr.bf16.mxu0 %v10145_v33 }
 0x47f   :  { %8679 = vmatpush3.bf16.msra.mxu1 %v10145_v33 }
 0x480   :  { %8439 = vmatpush3.bf16.msra.mxu0 %v10145_v33  ;;  %8680 = vmatprep.subr.bf16.mxu1 %v10142_v32 }
 0x481   :  { %8440 = vmatprep.subr.bf16.mxu0 %v10142_v32 }
 0x483   :  { %8681 = vmatpush3.bf16.msra.mxu1 %v10142_v32 }
 0x484   :  { %8441 = vmatpush3.bf16.msra.mxu0 %v10142_v32 }
 0x485   :  { %8446 = vmatprep.subr.bf16.mxu0 %v10044_v22 }
 0x486   :  { %8683 = vmatmul.mubr.bf16.vlgmr.msra.gmra.mrb[40].mxu1 %v9108_v58 }
 0x487   :  { %8443 = vmatmul.mubr.bf16.vlgmr.msra.gmra.mrb[84].mxu0 %v9098_v59 }
 0x488   :  { %8447 = vmatpush3.bf16.msra.mxu0 %v10044_v22  ;;  %8462 = vmatprep.mubr.bf16.mxu0 %v9099_v26 }
 0x489   :  { %8448 = vmatprep.subr.bf16.mxu0 %v10042_v31 }
 0x48c   :  { %8449 = vmatpush3.bf16.msra.mxu0 %v10042_v31 }
 0x48d   :  { %8450 = vmatprep.subr.bf16.mxu0 %v10056_v20 }
 0x490   :  { %8451 = vmatpush3.bf16.msra.mxu0 %v10056_v20 }
 0x491   :  { %8452 = vmatprep.subr.bf16.mxu0 %v10053_v62 }
 0x494   :  { %8453 = vmatpush3.bf16.msra.mxu0 %v10053_v62 }
 0x495   :  { %8454 = vmatprep.subr.bf16.mxu0 %v10068_v53 }
 0x498   :  { %8455 = vmatpush3.bf16.msra.mxu0 %v10068_v53 }
 0x499   :  { %8456 = vmatprep.subr.bf16.mxu0 %v10065_v12 }
 0x49c   :  { %8457 = vmatpush3.bf16.msra.mxu0 %v10065_v12 }
 0x49d   :  { %8458 = vmatprep.subr.bf16.mxu0 %v10080_v30 }
 0x4a0   :  { %8459 = vmatpush3.bf16.msra.mxu0 %v10080_v30 }
 0x4a1   :  { %8460 = vmatprep.subr.bf16.mxu0 %v10077_v56 }
 0x4a4   :  { %8461 = vmatpush3.bf16.msra.mxu0 %v10077_v56 }
 0x4a5   :  { %8466 = vmatprep.subr.bf16.mxu0 %v10095_v7 }
 0x4a7   :  { %8463 = vmatmul.mubr.bf16.vlgmr.msra.gmra.mrb[88].mxu0 %v9100_v42 }
 0x4a8   :  { %8467 = vmatpush3.bf16.msra.mxu0 %v10095_v7  ;;  %8482 = vmatprep.mubr.bf16.mxu0 %v9101_v8 }
 0x4a9   :  { %8468 = vmatprep.subr.bf16.mxu0 %v10089_v25 }
 0x4ac   :  { %8469 = vmatpush3.bf16.msra.mxu0 %v10089_v25 }
 0x4ad   :  { %8470 = vmatprep.subr.bf16.mxu0 %v10113_v2 }
 0x4b0   :  { %8471 = vmatpush3.bf16.msra.mxu0 %v10113_v2 }
 0x4b1   :  { %8472 = vmatprep.subr.bf16.mxu0 %v10110_v40 }
 0x4b4   :  { %8473 = vmatpush3.bf16.msra.mxu0 %v10110_v40 }
 0x4b5   :  { %8474 = vmatprep.subr.bf16.mxu0 %v10129_v10 }
 0x4b8   :  { %8475 = vmatpush3.bf16.msra.mxu0 %v10129_v10 }
 0x4b9   :  { %8476 = vmatprep.subr.bf16.mxu0 %v10126_v51 }
 0x4bc   :  { %8477 = vmatpush3.bf16.msra.mxu0 %v10126_v51 }
 0x4bd   :  { %8478 = vmatprep.subr.bf16.mxu0 %v10145_v33 }
 0x4c0   :  { %8479 = vmatpush3.bf16.msra.mxu0 %v10145_v33 }
 0x4c1   :  { %8480 = vmatprep.subr.bf16.mxu0 %v10142_v32 }
 0x4c4   :  { %8481 = vmatpush3.bf16.msra.mxu0 %v10142_v32 }
 0x4c5   :  { %8486 = vmatprep.subr.bf16.mxu0 %v10044_v22 }
 0x4c7   :  { %8483 = vmatmul.mubr.bf16.vlgmr.msra.gmra.mrb[92].mxu0 %v9102_v52 }
 0x4c8   :  { %8487 = vmatpush3.bf16.msra.mxu0 %v10044_v22  ;;  %8502 = vmatprep.mubr.bf16.mxu0 %v9103_v15 }
 0x4c9   :  { %8488 = vmatprep.subr.bf16.mxu0 %v10042_v31 }
 0x4cc   :  { %8489 = vmatpush3.bf16.msra.mxu0 %v10042_v31 }
 0x4cd   :  { %8490 = vmatprep.subr.bf16.mxu0 %v10056_v20 }
 0x4d0   :  { %8491 = vmatpush3.bf16.msra.mxu0 %v10056_v20 }
 0x4d1   :  { %8492 = vmatprep.subr.bf16.mxu0 %v10053_v62 }
 0x4d4   :  { %8493 = vmatpush3.bf16.msra.mxu0 %v10053_v62 }
 0x4d5   :  { %8494 = vmatprep.subr.bf16.mxu0 %v10068_v53 }
 0x4d8   :  { %8495 = vmatpush3.bf16.msra.mxu0 %v10068_v53 }
 0x4d9   :  { %8496 = vmatprep.subr.bf16.mxu0 %v10065_v12 }
 0x4dc   :  { %8497 = vmatpush3.bf16.msra.mxu0 %v10065_v12 }
 0x4dd   :  { %8498 = vmatprep.subr.bf16.mxu0 %v10080_v30 }
 0x4e0   :  { %8499 = vmatpush3.bf16.msra.mxu0 %v10080_v30 }
 0x4e1   :  { %8500 = vmatprep.subr.bf16.mxu0 %v10077_v56 }
 0x4e4   :  { %8501 = vmatpush3.bf16.msra.mxu0 %v10077_v56 }
 0x4e5   :  { %8506 = vmatprep.subr.bf16.mxu0 %v10095_v7 }
 0x4e7   :  { %8503 = vmatmul.mubr.bf16.vlgmr.msra.gmra.mrb[96].mxu0 %v9104_v45 }
 0x4e8   :  { %8507 = vmatpush3.bf16.msra.mxu0 %v10095_v7  ;;  %8522 = vmatprep.mubr.bf16.mxu0 %v9105_v46 }
 0x4e9   :  { %8508 = vmatprep.subr.bf16.mxu0 %v10089_v25 }
 0x4ec   :  { %8509 = vmatpush3.bf16.msra.mxu0 %v10089_v25 }
 0x4ed   :  { %8510 = vmatprep.subr.bf16.mxu0 %v10113_v2 }
 0x4f0   :  { %8511 = vmatpush3.bf16.msra.mxu0 %v10113_v2 }
 0x4f1   :  { %8512 = vmatprep.subr.bf16.mxu0 %v10110_v40 }
 0x4f4   :  { %8513 = vmatpush3.bf16.msra.mxu0 %v10110_v40 }
 0x4f5   :  { %8514 = vmatprep.subr.bf16.mxu0 %v10129_v10 }
 0x4f8   :  { %8515 = vmatpush3.bf16.msra.mxu0 %v10129_v10 }
 0x4f9   :  { %8516 = vmatprep.subr.bf16.mxu0 %v10126_v51 }
 0x4fa   :  { %v8384_v29 = vpop.f32.mrb[72].mxu0 }
 0x4fb   :  { %3166 = vst.msk [vmem:[#allocation3 + $0x20] sm:$0xff] %vm3163_vm0, %v8384_v29  ;;  %v3148_v5 = vpop.f32.mrb[73].mxu0 }
 0x4fc   :  { %8517 = vmatpush3.bf16.msra.mxu0 %v10126_v51  ;;  %3164 = vst.msk [vmem:[#allocation3] sm:$0xff] %vm3163_vm0, %v3148_v5  ;;  %v8385_v50 = vpop.f32.mrb[74].mxu0 }
 0x4fd   :  { %8518 = vmatprep.subr.bf16.mxu0 %v10145_v33  ;;  %3167 = vst.msk [vmem:[#allocation3 + $0x30] sm:$0xff] %vm3163_vm0, %v8385_v50  ;;  %v3151_v13 = vpop.f32.mrb[75].mxu0 }
 0x4fe   :  { %3165 = vst.msk [vmem:[#allocation3 + $0x10] sm:$0xff] %vm3163_vm0, %v3151_v13 }
 0x500   :  { %8519 = vmatpush3.bf16.msra.mxu0 %v10145_v33 }
 0x501   :  { %8520 = vmatprep.subr.bf16.mxu0 %v10142_v32 }
 0x504   :  { %8521 = vmatpush3.bf16.msra.mxu0 %v10142_v32 }
 0x505   :  { %8526 = vmatprep.subr.bf16.mxu0 %v10044_v22 }
 0x507   :  { %8523 = vmatmul.mubr.bf16.vlgmr.msra.gmra.mrb[100].mxu0 %v9107_v9 }
 0x508   :  { %8527 = vmatpush3.bf16.msra.mxu0 %v10044_v22  ;;  %8542 = vmatprep.mubr.bf16.mxu0 %v9109_v57 }
 0x509   :  { %8528 = vmatprep.subr.bf16.mxu0 %v10042_v31 }
 0x50c   :  { %8529 = vmatpush3.bf16.msra.mxu0 %v10042_v31 }
 0x50d   :  { %8530 = vmatprep.subr.bf16.mxu0 %v10056_v20 }
 0x510   :  { %8531 = vmatpush3.bf16.msra.mxu0 %v10056_v20 }
 0x511   :  { %8532 = vmatprep.subr.bf16.mxu0 %v10053_v62 }
 0x514   :  { %8533 = vmatpush3.bf16.msra.mxu0 %v10053_v62 }
 0x515   :  { %8534 = vmatprep.subr.bf16.mxu0 %v10068_v53 }
 0x518   :  { %8535 = vmatpush3.bf16.msra.mxu0 %v10068_v53 }
 0x519   :  { %8536 = vmatprep.subr.bf16.mxu0 %v10065_v12  ;;  %v8604_v39 = vpop.f32.mrb[32].mxu1 }
 0x51a   :  { %v8404_v24 = vpop.f32.mrb[76].mxu0  ;;  %v4028_v28 = vpop.f32.mrb[33].mxu1  ;;  %4051 = vrot.lane.b32.xlu0 %v8604_v39, %s9273_s22 }
 0x51b   :  { %3235 = vst.msk [vmem:[#allocation3 + $0x60] sm:$0xff] %vm3163_vm0, %v8404_v24  ;;  %v3218_v55 = vpop.f32.mrb[77].mxu0  ;;  %v8605_v16 = vpop.f32.mrb[34].mxu1 }
 0x51c   :  { %8537 = vmatpush3.bf16.msra.mxu0 %v10065_v12  ;;  %3233 = vst.msk [vmem:[#allocation3 + $0x40] sm:$0xff] %vm3163_vm0, %v3218_v55  ;;  %v8405_v35 = vpop.f32.mrb[78].mxu0  ;;  %4053 = vrot.lane.b32.xlu1 %v8605_v16, %s9273_s22  ;;  %v4031_v4 = vpop.f32.mrb[35].mxu1 }
 0x51d   :  { %8538 = vmatprep.subr.bf16.mxu0 %v10080_v30  ;;  %3236 = vst.msk [vmem:[#allocation3 + $0x70] sm:$0xff] %vm3163_vm0, %v8405_v35  ;;  %v3221_v11 = vpop.f32.mrb[79].mxu0 }
 0x51e   :  { %3234 = vst.msk [vmem:[#allocation3 + $0x50] sm:$0xff] %vm3163_vm0, %v3221_v11  ;;  %4047 = vrot.lane.b32.xlu0 %v4028_v28, %s9273_s22 }
 0x520   :  { %8539 = vmatpush3.bf16.msra.mxu0 %v10080_v30  ;;  %4049 = vrot.lane.b32.xlu1 %v4031_v4, %s9273_s22 }
 0x521   :  { %8540 = vmatprep.subr.bf16.mxu0 %v10077_v56 }
 0x524   :  { %8541 = vmatpush3.bf16.msra.mxu0 %v10077_v56 }
 0x525   :  { %8546 = vmatprep.subr.bf16.mxu0 %v10095_v7 }
 0x527   :  { %8543 = vmatmul.mubr.bf16.vlgmr.msra.gmra.mrb[104].mxu0 %v9110_v21 }
 0x528   :  { %8547 = vmatpush3.bf16.msra.mxu0 %v10095_v7  ;;  %8562 = vmatprep.mubr.bf16.mxu0 %v9111_v34 }
 0x529   :  { %8548 = vmatprep.subr.bf16.mxu0 %v10089_v25 }
 0x52c   :  { %8549 = vmatpush3.bf16.msra.mxu0 %v10089_v25 }
 0x52d   :  { %8550 = vmatprep.subr.bf16.mxu0 %v10113_v2 }
 0x530   :  { %8551 = vmatpush3.bf16.msra.mxu0 %v10113_v2 }
 0x531   :  { %8552 = vmatprep.subr.bf16.mxu0 %v10110_v40 }
 0x534   :  { %8553 = vmatpush3.bf16.msra.mxu0 %v10110_v40 }
 0x535   :  { %8554 = vmatprep.subr.bf16.mxu0 %v10129_v10 }
 0x538   :  { %8555 = vmatpush3.bf16.msra.mxu0 %v10129_v10 }
 0x539   :  { %8556 = vmatprep.subr.bf16.mxu0 %v10126_v51  ;;  %v10386_v7 = vpop.f32.mrb[36].mxu1 }
 0x53a   :  { %v8424_v49 = vpop.f32.mrb[80].mxu0  ;;  %v4199_v1 = vpop.f32.mrb[37].mxu1 }
 0x53b   :  { %v3288_v6 = vpop.f32.mrb[81].mxu0  ;;  %3311 = vrot.lane.b32.xlu0 %v8424_v49, %s9273_s22  ;;  %v10389_v25 = vpop.f32.mrb[38].mxu1 }
 0x53c   :  { %8557 = vmatpush3.bf16.msra.mxu0 %v10126_v51  ;;  %3307 = vrot.lane.b32.xlu1 %v3288_v6, %s9273_s22  ;;  %v8425_v40 = vpop.f32.mrb[82].mxu0  ;;  %v4202_v2 = vpop.f32.mrb[39].mxu1  ;;  %v9112_v51 = vld [vmem:[%s11343_s3 + $0x48] sm:$0xff]  }
 0x53d   :  { %8558 = vmatprep.subr.bf16.mxu0 %v10145_v33  ;;  %v3291_v10 = vpop.f32.mrb[83].mxu0 }
 0x53f   :  { %4218 = vrot.lane.b32.xlu0 %v4199_v1, %s9274_s25 }
 0x540   :  { %8559 = vmatpush3.bf16.msra.mxu0 %v10145_v33  ;;  %3313 = vrot.lane.b32.xlu1 %v8425_v40, %s9273_s22 }
 0x541   :  { %8560 = vmatprep.subr.bf16.mxu0 %v10142_v32 }
 0x544   :  { %8561 = vmatpush3.bf16.msra.mxu0 %v10142_v32  ;;  %3309 = vrot.lane.b32.xlu1 %v3291_v10, %s9273_s22 }
 0x545   :  { %8566 = vmatprep.subr.bf16.mxu0 %v10044_v22 }
 0x547   :  { %8563 = vmatmul.mubr.bf16.vlgmr.msra.gmra.mrb[108].mxu0 %v9112_v51  ;;  %v9119_v51 = vld [vmem:[%s11344_s4 + $0x40] sm:$0xff]  }
 0x548   :  { %8567 = vmatpush3.bf16.msra.mxu0 %v10044_v22  ;;  %8582 = vmatprep.mubr.bf16.mxu0 %v9113_v19  ;;  %v9120_v19 = vld [vmem:[%s11344_s4] sm:$0xff]  }
 0x549   :  { %8568 = vmatprep.subr.bf16.mxu0 %v10042_v31  ;;  %4220 = vrot.lane.b32.xlu1 %v4202_v2, %s9274_s25 }
 0x54a   :  { %7692 = vmatprep.subr.bf16.mxu1 %v9119_v51 }
 0x54b   :  { %7693 = vmatpush3.bf16.msra.mxu1 %v9120_v19 }
 0x54c   :  { %8569 = vmatpush3.bf16.msra.mxu0 %v10042_v31 }
 0x54d   :  { %8570 = vmatprep.subr.bf16.mxu0 %v10056_v20 }
 0x550   :  { %8571 = vmatpush3.bf16.msra.mxu0 %v10056_v20 }
 0x551   :  { %8572 = vmatprep.subr.bf16.mxu0 %v10053_v62 }
 0x554   :  { %8573 = vmatpush3.bf16.msra.mxu0 %v10053_v62 }
 0x555   :  { %8574 = vmatprep.subr.bf16.mxu0 %v10068_v53 }
 0x558   :  { %8575 = vmatpush3.bf16.msra.mxu0 %v10068_v53 }
 0x559   :  { %8576 = vmatprep.subr.bf16.mxu0 %v10065_v12  ;;  %v10418_v23 = vpop.f32.mrb[40].mxu1 }
 0x55a   :  { %v10420_v36 = vpop.f32.mrb[84].mxu0  ;;  %v4370_v27 = vpop.f32.mrb[41].mxu1 }
 0x55b   :  { %v3374_v43 = vpop.f32.mrb[85].mxu0  ;;  %v10422_v60 = vpop.f32.mrb[42].mxu1 }
 0x55c   :  { %8577 = vmatpush3.bf16.msra.mxu0 %v10065_v12  ;;  %v10425_v14 = vpop.f32.mrb[86].mxu0  ;;  %3393 = vrot.lane.b32.xlu0 %v3374_v43, %s9273_s22  ;;  %v4373_v44 = vpop.f32.mrb[43].mxu1  ;;  %v9121_v43 = vld [vmem:[%s11344_s4 + $0x48] sm:$0xff]  }
 0x55d   :  { %8578 = vmatprep.subr.bf16.mxu0 %v10080_v30  ;;  %v3377_v3 = vpop.f32.mrb[87].mxu0  ;;  %7694 = vmatprep.subr.bf16.mxu1 %v9121_v43 }
 0x55e   :  { %3395 = vrot.lane.b32.xlu1 %v3377_v3, %s9273_s22 }
 0x560   :  { %8579 = vmatpush3.bf16.msra.mxu0 %v10080_v30  ;;  %4389 = vrot.lane.b32.xlu0 %v4370_v27, %s9275_s5 }
 0x561   :  { %8580 = vmatprep.subr.bf16.mxu0 %v10077_v56 }
 0x562   :  { %4391 = vrot.lane.b32.xlu1 %v4373_v44, %s9275_s5  ;;  %v9122_v44 = vld [vmem:[%s11344_s4 + $0x8] sm:$0xff]  }
 0x563   :  { %7695 = vmatpush3.bf16.msra.mxu1 %v9122_v44 }
 0x564   :  { %8581 = vmatpush3.bf16.msra.mxu0 %v10077_v56 }
 0x565   :  { %8606 = vmatprep.subr.bf16.mxu0 %v10044_v22 }
 0x567   :  { %8583 = vmatmul.mubr.bf16.vlgmr.msra.gmra.mrb[112].mxu0 %v9114_v61 }
 0x568   :  { %8607 = vmatpush3.bf16.msra.mxu0 %v10044_v22  ;;  %8622 = vmatprep.mubr.bf16.mxu0 %v9115_v41 }
 0x569   :  { %8608 = vmatprep.subr.bf16.mxu0 %v10042_v31 }
 0x56c   :  { %8609 = vmatpush3.bf16.msra.mxu0 %v10042_v31 }
 0x56d   :  { %8610 = vmatprep.subr.bf16.mxu0 %v10056_v20 }
 0x570   :  { %8611 = vmatpush3.bf16.msra.mxu0 %v10056_v20 }
 0x571   :  { %8612 = vmatprep.subr.bf16.mxu0 %v10053_v62 }
 0x574   :  { %8613 = vmatpush3.bf16.msra.mxu0 %v10053_v62 }
 0x575   :  { %8614 = vmatprep.subr.bf16.mxu0 %v10068_v53 }
 0x578   :  { %8615 = vmatpush3.bf16.msra.mxu0 %v10068_v53 }
 0x579   :  { %8616 = vmatprep.subr.bf16.mxu0 %v10065_v12 }
 0x57a   :  { %v8464_v54 = vpop.f32.mrb[88].mxu0 }
 0x57b   :  { %v3460_v32 = vpop.f32.mrb[89].mxu0  ;;  %3483 = vrot.lane.b32.xlu0 %v8464_v54, %s9274_s25 }
 0x57c   :  { %8617 = vmatpush3.bf16.msra.mxu0 %v10065_v12  ;;  %v8465_v33 = vpop.f32.mrb[90].mxu0 }
 0x57d   :  { %8618 = vmatprep.subr.bf16.mxu0 %v10080_v30  ;;  %3485 = vrot.lane.b32.xlu1 %v8465_v33, %s9274_s25  ;;  %v3463_v17 = vpop.f32.mrb[91].mxu0  ;;  %v9123_v33 = vld [vmem:[%s11344_s4 + $0xc0] sm:$0xff]  }
 0x57f   :  { %3479 = vrot.lane.b32.xlu0 %v3460_v32, %s9274_s25 }
 0x580   :  { %8619 = vmatpush3.bf16.msra.mxu0 %v10080_v30 }
 0x581   :  { %8620 = vmatprep.subr.bf16.mxu0 %v10077_v56  ;;  %3481 = vrot.lane.b32.xlu1 %v3463_v17, %s9274_s25  ;;  %v9124_v17 = vld [vmem:[%s11344_s4 + $0x80] sm:$0xff]  }
 0x584   :  { %8621 = vmatpush3.bf16.msra.mxu0 %v10077_v56 }
 0x585   :  { %8646 = vmatprep.subr.bf16.mxu0 %v10044_v22 }
 0x587   :  { %8623 = vmatmul.mubr.bf16.vlgmr.msra.gmra.mrb[116].mxu0 %v9116_v47  ;;  %v9125_v47 = vld [vmem:[%s11344_s4 + $0x50] sm:$0xff]  }
 0x588   :  { %8647 = vmatpush3.bf16.msra.mxu0 %v10044_v22  ;;  %8662 = vmatprep.mubr.bf16.mxu0 %v9117_v48 }
 0x589   :  { %8648 = vmatprep.subr.bf16.mxu0 %v10042_v31  ;;  %7696 = vmatprep.subr.bf16.mxu1 %v9125_v47 }
 0x58c   :  { %8649 = vmatpush3.bf16.msra.mxu0 %v10042_v31 }
 0x58d   :  { %8650 = vmatprep.subr.bf16.mxu0 %v10056_v20 }
 0x590   :  { %8651 = vmatpush3.bf16.msra.mxu0 %v10056_v20 }
 0x591   :  { %8652 = vmatprep.subr.bf16.mxu0 %v10053_v62 }
 0x594   :  { %8653 = vmatpush3.bf16.msra.mxu0 %v10053_v62  ;;  %v4052_v62 = vpop.permute.xlu0 %4051 }
 0x595   :  { %8654 = vmatprep.subr.bf16.mxu0 %v10068_v53 }
 0x598   :  { %8655 = vmatpush3.bf16.msra.mxu0 %v10068_v53  ;;  %v10488_v53 = vpop.permute.xlu1 %4053  ;;  %v4048_v0 = vpop.permute.xlu0 %4047 }
 0x599   :  { %8656 = vmatprep.subr.bf16.mxu0 %v10065_v12 }
 0x59a   :  { %v10478_v22 = vpop.f32.mrb[92].mxu0 }
 0x59b   :  { %v3546_v63 = vpop.f32.mrb[93].mxu0 }
 0x59c   :  { %8657 = vmatpush3.bf16.msra.mxu0 %v10065_v12  ;;  %v10481_v31 = vpop.f32.mrb[94].mxu0  ;;  %3565 = vrot.lane.b32.xlu0 %v3546_v63, %s9274_s25  ;;  %v9118_v12 = vld [vmem:[%s11343_s3 + $0x78] sm:$0xff]   ;;  %v10494_v18 = vpop.permute.xlu1 %4049  ;;  %v9126_v63 = vld [vmem:[%s11344_s4 + $0x10] sm:$0xff]  }
 0x59d   :  { %8658 = vmatprep.subr.bf16.mxu0 %v10080_v30  ;;  %v3549_v20 = vpop.f32.mrb[95].mxu0  ;;  %7697 = vmatpush3.bf16.msra.mxu1 %v9126_v63 }
 0x59e   :  { %3567 = vrot.lane.b32.xlu1 %v3549_v20, %s9274_s25  ;;  %v9127_v20 = vld [vmem:[%s11344_s4 + $0xc8] sm:$0xff]  }
 0x5a0   :  { %8659 = vmatpush3.bf16.msra.mxu0 %v10080_v30 }
 0x5a1   :  { %8660 = vmatprep.subr.bf16.mxu0 %v10077_v56 }
 0x5a4   :  { %8661 = vmatpush3.bf16.msra.mxu0 %v10077_v56 }
 0x5a5   :  { %7652 = vmatprep.subr.bf16.mxu0 %v9123_v33 }
 0x5a7   :  { %8663 = vmatmul.mubr.bf16.vlgmr.msra.gmra.mrb[120].mxu0 %v9118_v12  ;;  %v9130_v12 = vld [vmem:[%s11344_s4 + $0x18] sm:$0xff]  }
 0x5a8   :  { %7653 = vmatpush3.bf16.msra.mxu0 %v9124_v17 }
 0x5a9   :  { %7654 = vmatprep.subr.bf16.mxu0 %v9127_v20 }
 0x5ad   :  { %v3312_v37 = vpop.permute.xlu0 %3311 }
 0x5ae   :  { %v3308_v38 = vpop.permute.xlu1 %3307  ;;  %3322 = vst.msk [vmem:[#allocation3 + $0x20] sm:$0xff] %vm3319_vm1, %v3312_v37 }
 0x5af   :  { %3320 = vst.msk [vmem:[#allocation3] sm:$0xff] %vm3319_vm1, %v3308_v38 }
 0x5b1   :  { %v4219_v8 = vpop.permute.xlu0 %4218 }
 0x5b2   :  { %v3314_v30 = vpop.permute.xlu1 %3313 }
 0x5b3   :  { %3323 = vst.msk [vmem:[#allocation3 + $0x30] sm:$0xff] %vm3319_vm1, %v3314_v30  ;;  %v9131_v30 = vld [vmem:[%s11344_s4 + $0xd0] sm:$0xff]  }
 0x5b6   :  { %v3310_v58 = vpop.permute.xlu1 %3309 }
 0x5b7   :  { %3321 = vst.msk [vmem:[#allocation3 + $0x10] sm:$0xff] %vm3319_vm1, %v3310_v58  ;;  %v9132_v58 = vld [vmem:[%s11344_s4 + $0x90] sm:$0xff]  }
 0x5ba   :  { %v8504_v59 = vpop.f32.mrb[96].mxu0 }
 0x5bb   :  { %3655 = vrot.lane.b32.xlu0 %v8504_v59, %s9275_s5  ;;  %v3632_v56 = vpop.f32.mrb[97].mxu0  ;;  %v4221_v52 = vpop.permute.xlu1 %4220  ;;  %v9133_v59 = vld [vmem:[%s11344_s4 + $0x60] sm:$0xff]  }
 0x5bc   :  { %v8505_v26 = vpop.f32.mrb[98].mxu0 }
 0x5bd   :  { %3657 = vrot.lane.b32.xlu1 %v8505_v26, %s9275_s5  ;;  %v3635_v42 = vpop.f32.mrb[99].mxu0  ;;  %v9135_v26 = vld [vmem:[%s11344_s4 + $0xd8] sm:$0xff]  }
 0x5bf   :  { %3651 = vrot.lane.b32.xlu0 %v3632_v56, %s9275_s5  ;;  %v9134_v56 = vld [vmem:[%s11344_s4 + $0x20] sm:$0xff]  }
 0x5c1   :  { %3653 = vrot.lane.b32.xlu1 %v3635_v42, %s9275_s5  ;;  %v9136_v42 = vld [vmem:[%s11344_s4 + $0x98] sm:$0xff]  }
 0x5ce   :  { %v3394_v15 = vpop.permute.xlu0 %3393 }
 0x5cf   :  { %3405 = vst.msk [vmem:[#allocation3 + $0x40] sm:$0xff] %vm3319_vm1, %v3394_v15  ;;  %v9139_v15 = vld [vmem:[%s11344_s4 + $0xe0] sm:$0xff]  }
 0x5d0   :  { %v3396_v45 = vpop.permute.xlu1 %3395 }
 0x5d1   :  { %3406 = vst.msk [vmem:[#allocation3 + $0x50] sm:$0xff] %vm3319_vm1, %v3396_v45  ;;  %v9140_v45 = vld [vmem:[%s11344_s4 + $0xa0] sm:$0xff]  }
 0x5d2   :  { %v4390_v13 = vpop.permute.xlu0 %4389 }
 0x5d4   :  { %v4392_v9 = vpop.permute.xlu1 %4391 }
 0x5da   :  { %v10506_v46 = vpop.f32.mrb[100].mxu0 }
 0x5db   :  { %v3718_v29 = vpop.f32.mrb[101].mxu0 }
 0x5dc   :  { %3737 = vrot.lane.b32.xlu0 %v3718_v29, %s9275_s5  ;;  %v10509_v5 = vpop.f32.mrb[102].mxu0  ;;  %v9141_v29 = vld [vmem:[%s11344_s4 + $0x70] sm:$0xff]  }
 0x5dd   :  { %v3721_v50 = vpop.f32.mrb[103].mxu0 }
 0x5de   :  { %3739 = vrot.lane.b32.xlu1 %v3721_v50, %s9275_s5  ;;  %v9142_v50 = vld [vmem:[%s11344_s4 + $0x30] sm:$0xff]  }
 0x5ed   :  { %v3484_v57 = vpop.permute.xlu0 %3483 }
 0x5ee   :  { %3494 = vst.msk [vmem:[#allocation3 + $0x20] sm:$0xff] %vm3491_vm2, %v3484_v57  ;;  %v9145_v57 = vld [vmem:[%s11344_s4 + $0x78] sm:$0xff]  }
 0x5ef   :  { %v3486_v39 = vpop.permute.xlu1 %3485 }
 0x5f0   :  { %3495 = vst.msk [vmem:[#allocation3 + $0x30] sm:$0xff] %vm3491_vm2, %v3486_v39 }
 0x5f1   :  { %v3480_v24 = vpop.permute.xlu0 %3479 }
 0x5f2   :  { %3492 = vst.msk [vmem:[#allocation3] sm:$0xff] %vm3491_vm2, %v3480_v24  ;;  %v9146_v24 = vld [vmem:[%s11344_s4 + $0x38] sm:$0xff]  }
 0x5f3   :  { %v3482_v28 = vpop.permute.xlu1 %3481 }
 0x5f4   :  { %3493 = vst.msk [vmem:[#allocation3 + $0x10] sm:$0xff] %vm3491_vm2, %v3482_v28 }
 0x5fa   :  { %v8544_v55 = vpop.f32.mrb[104].mxu0 }
 0x5fb   :  { %3821 = vst.msk [vmem:[#allocation3 + $0x28] sm:$0xff] %vm3163_vm0, %v8544_v55  ;;  %v3804_v16 = vpop.f32.mrb[105].mxu0 }
 0x5fc   :  { %3819 = vst.msk [vmem:[#allocation3 + $0x8] sm:$0xff] %vm3163_vm0, %v3804_v16  ;;  %v8545_v35 = vpop.f32.mrb[106].mxu0  ;;  %v9147_v16 = vld [vmem:[%s11344_s4 + $0xf0] sm:$0xff]  }
 0x5fd   :  { %3822 = vst.msk [vmem:[#allocation3 + $0x38] sm:$0xff] %vm3163_vm0, %v8545_v35  ;;  %v3807_v4 = vpop.f32.mrb[107].mxu0 }
 0x5fe   :  { %3820 = vst.msk [vmem:[#allocation3 + $0x18] sm:$0xff] %vm3163_vm0, %v3807_v4  ;;  %v9148_v4 = vld [vmem:[%s11344_s4 + $0xb0] sm:$0xff]  }
 0x60e   :  { %v3566_v11 = vpop.permute.xlu0 %3565 }
 0x60f   :  { %3577 = vst.msk [vmem:[#allocation3 + $0x40] sm:$0xff] %vm3491_vm2, %v3566_v11  ;;  %v9149_v11 = vld [vmem:[%s11344_s4 + $0x1c0] sm:$0xff]  }
 0x610   :  { %v3568_v21 = vpop.permute.xlu1 %3567 }
 0x611   :  { %3578 = vst.msk [vmem:[#allocation3 + $0x50] sm:$0xff] %vm3491_vm2, %v3568_v21  ;;  %v9151_v21 = vld [vmem:[%s11344_s4 + $0xf8] sm:$0xff]  }
 0x61a   :  { %v8564_v34 = vpop.f32.mrb[108].mxu0 }
 0x61b   :  { %3890 = vst.msk [vmem:[#allocation3 + $0x68] sm:$0xff] %vm3163_vm0, %v8564_v34  ;;  %v3873_v49 = vpop.f32.mrb[109].mxu0  ;;  %v9152_v34 = vld [vmem:[%s11344_s4 + $0xb8] sm:$0xff]  }
 0x61c   :  { %4061 = vst.msk [vmem:[#allocation3 + $0x68] sm:$0xff] %vm3319_vm1, %v4052_v62  ;;  %v8565_v1 = vpop.f32.mrb[110].mxu0  ;;  %v9128_v62 = vld [vmem:[%s11344_s4 + $0x88] sm:$0xff]  }
 0x61d   :  { %3888 = vst.msk [vmem:[#allocation3 + $0x48] sm:$0xff] %vm3163_vm0, %v3873_v49  ;;  %3891 = vst.msk [vmem:[#allocation3 + $0x78] sm:$0xff] %vm3163_vm0, %v8565_v1  ;;  %v3876_v6 = vpop.f32.mrb[111].mxu0  ;;  %7655 = vmatpush3.bf16.msra.mxu0 %v9128_v62  ;;  %v9155_v49 = vld [vmem:[%s11344_s4 + $0x140] sm:$0xff]   ;;  %v9276_v1 = vmov 0.0  }
 0x61e   :  { %4059 = vst.msk [vmem:[#allocation3 + $0x48] sm:$0xff] %vm3319_vm1, %v4048_v0  ;;  %4062 = vst.msk [vmem:[#allocation3 + $0x78] sm:$0xff] %vm3319_vm1, %v10488_v53  ;;  %v9129_v53 = vld [vmem:[%s11344_s4 + $0x58] sm:$0xff]   ;;  %7656 = vmatprep.subr.bf16.mxu0 %v9131_v30 }
 0x61f   :  { %4230 = vst.msk [vmem:[#allocation3 + $0x48] sm:$0xff] %vm3491_vm2, %v4219_v8  ;;  %7698 = vmatprep.subr.bf16.mxu1 %v9129_v53  ;;  %v9137_v8 = vld [vmem:[%s11344_s4 + $0x68] sm:$0xff]   ;;  %3095 = vst [vmem:[#allocation3 + $0x88] sm:$0xff] %v9276_v1 }
 0x620   :  { %3889 = vst.msk [vmem:[#allocation3 + $0x58] sm:$0xff] %vm3163_vm0, %v3876_v6  ;;  %7699 = vmatpush3.bf16.msra.mxu1 %v9130_v12  ;;  %3094 = vst [vmem:[#allocation3 + $0x80] sm:$0xff] %v9276_v1 }
 0x621   :  { %4401 = vst.msk [vmem:[#allocation3 + $0x48] sm:$0xff] %vm3663_vm3, %v4390_v13  ;;  %7657 = vmatpush3.bf16.msra.mxu0 %v9132_v58  ;;  %7700 = vmatprep.subr.bf16.mxu1 %v9133_v59  ;;  %v9143_v13 = vld [vmem:[%s11344_s4 + $0xe8] sm:$0xff]   ;;  %3096 = vst [vmem:[#allocation3 + $0x90] sm:$0xff] %v9276_v1 }
 0x622   :  { %4060 = vst.msk [vmem:[#allocation3 + $0x58] sm:$0xff] %vm3319_vm1, %v10494_v18  ;;  %7658 = vmatprep.subr.bf16.mxu0 %v9135_v26  ;;  %3097 = vst [vmem:[#allocation3 + $0x98] sm:$0xff] %v9276_v1  ;;  %v9153_v58 = vld [vmem:[%s11344_s4 + $0x1c8] sm:$0xff]  }
 0x623   :  { %4231 = vst.msk [vmem:[#allocation3 + $0x58] sm:$0xff] %vm3491_vm2, %v4221_v52  ;;  %v9138_v52 = vld [vmem:[%s11344_s4 + $0x28] sm:$0xff]  }
 0x624   :  { %4402 = vst.msk [vmem:[#allocation3 + $0x58] sm:$0xff] %vm3663_vm3, %v4392_v9  ;;  %7701 = vmatpush3.bf16.msra.mxu1 %v9134_v56  ;;  %v9144_v9 = vld [vmem:[%s11344_s4 + $0xa8] sm:$0xff]  }
 0x625   :  { %7659 = vmatpush3.bf16.msra.mxu0 %v9136_v42  ;;  %7702 = vmatprep.subr.bf16.mxu1 %v9137_v8 }
 0x626   :  { %7660 = vmatprep.subr.bf16.mxu0 %v9139_v15 }
 0x628   :  { %7703 = vmatpush3.bf16.msra.mxu1 %v9138_v52  ;;  %v10710_v33 = vld [vmem:[#allocation3 + $0x48] sm:$0xff] }
 0x629   :  { %7661 = vmatpush3.bf16.msra.mxu0 %v9140_v45  ;;  %7704 = vmatprep.subr.bf16.mxu1 %v9141_v29  ;;  %v9154_v45 = vld [vmem:[%s11344_s4 + $0x188] sm:$0xff]  }
 0x62a   :  { %7662 = vmatprep.subr.bf16.mxu0 %v9143_v13 }
 0x62b   :  { %v10712_v17 = vld [vmem:[#allocation3 + $0x58] sm:$0xff] }
 0x62c   :  { %7705 = vmatpush3.bf16.msra.mxu1 %v9142_v50  ;;  %v10734_v26 = vpack.c.bf16 %v10712_v17, %v10710_v33 }
 0x62d   :  { %v3656_v40 = vpop.permute.xlu0 %3655  ;;  %7663 = vmatpush3.bf16.msra.mxu0 %v9144_v9  ;;  %7706 = vmatprep.subr.bf16.mxu1 %v9145_v57 }
 0x62e   :  { %3666 = vst.msk [vmem:[#allocation3 + $0x20] sm:$0xff] %vm3663_vm3, %v3656_v40  ;;  %7664 = vmatprep.subr.bf16.mxu0 %v9147_v16 }
 0x62f   :  { %v3658_v2 = vpop.permute.xlu1 %3657 }
 0x630   :  { %3667 = vst.msk [vmem:[#allocation3 + $0x30] sm:$0xff] %vm3663_vm3, %v3658_v2  ;;  %7707 = vmatpush3.bf16.msra.mxu1 %v9146_v24  ;;  %v9156_v24 = vld [vmem:[%s11344_s4 + $0x1d0] sm:$0xff]  }
 0x631   :  { %v3652_v10 = vpop.permute.xlu0 %3651  ;;  %7665 = vmatpush3.bf16.msra.mxu0 %v9148_v4  ;;  %7772 = vmatprep.subr.bf16.mxu1 %v9149_v11 }
 0x632   :  { %3664 = vst.msk [vmem:[#allocation3] sm:$0xff] %vm3663_vm3, %v3652_v10  ;;  %7666 = vmatprep.subr.bf16.mxu0 %v9151_v21  ;;  %v9157_v21 = vld [vmem:[%s11344_s4 + $0x100] sm:$0xff]  }
 0x633   :  { %v3654_v27 = vpop.permute.xlu1 %3653 }
 0x634   :  { %3665 = vst.msk [vmem:[#allocation3 + $0x10] sm:$0xff] %vm3663_vm3, %v3654_v27 }
 0x635   :  { %7667 = vmatpush3.bf16.msra.mxu0 %v9152_v34 }
 0x636   :  { %7732 = vmatprep.subr.bf16.mxu0 %v9155_v49  ;;  %v9158_v49 = vld [vmem:[%s11344_s4 + $0x190] sm:$0xff]  }
 0x639   :  { %v4461_v10 = vld [vmem:[#allocation3] sm:$0xfe] }
 0x63a   :  { %v8584_v3 = vpop.f32.mrb[112].mxu0  ;;  %v4405_v12 = vld [vmem:[#allocation3] sm:$0xff] }
 0x63b   :  { %3966 = vrot.lane.b32.xlu0 %v8584_v3, %s9273_s22  ;;  %v3943_v61 = vpop.f32.mrb[113].mxu0  ;;  %v10691_v40 = vld [vmem:[#allocation3 + $0x10] sm:$0xff] }
 0x63c   :  { %v8585_v41 = vpop.f32.mrb[114].mxu0  ;;  %v4465_v19 = vpack.c.bf16 %v10691_v40, %v4461_v10  ;;  %v4421_v30 = vpack.c.bf16 %v10691_v40, %v4405_v12  ;;  %v4464_v10 = vld [vmem:[#allocation3 + $0x88] sm:$0x1]  ;;  %v9167_v12 = vld [vmem:[%s11344_s4 + $0x158] sm:$0xff]  }
 0x63d   :  { %v3946_v54 = vpop.f32.mrb[115].mxu0  ;;  %3968 = vrot.lane.b32.xlu1 %v8585_v41, %s9273_s22  ;;  %v10707_v41 = vld [vmem:[#allocation3 + $0x30] sm:$0xff] }
 0x63e   :  { %v4504_v52 = vshrl.u32 %v4465_v19, 16 }
 0x63f   :  { %3962 = vrot.lane.b32.xlu0 %v3943_v61, %s9273_s22  ;;  %v10705_v61 = vld [vmem:[#allocation3 + $0x20] sm:$0xff] }
 0x640   :  { %v10718_v62 = vpack.c.bf16 %v10707_v41, %v10705_v61 }
 0x642   :  { %v4511_v15 = vshll.u32 %v10718_v62, 16 }
 0x643   :  { %3964 = vrot.lane.b32.xlu0 %v3946_v54, %s9273_s22 }
 0x644   :  { %v4513_v11 = vrot.slane %v4511_v15, 1 }
 0x64e   :  { %v3738_v32 = vpop.permute.xlu0 %3737 }
 0x64f   :  { %3749 = vst.msk [vmem:[#allocation3 + $0x40] sm:$0xff] %vm3663_vm3, %v3738_v32  ;;  %v4506_v32 = vshll.u32 %v4465_v19, 16 }
 0x650   :  { %v3740_v48 = vpop.permute.xlu1 %3739 }
 0x651   :  { %3750 = vst.msk [vmem:[#allocation3 + $0x50] sm:$0xff] %vm3663_vm3, %v3740_v48  ;;  %v4508_v59 = vrot.slane %v4506_v32, 1  ;;  %v9165_v32 = vld [vmem:[%s11344_s4 + $0x110] sm:$0xff]  }
 0x656   :  { %v10746_v9 = vld [vmem:[#allocation3 + $0x40] sm:$0xff] }
 0x658   :  { %v10736_v42 = vld [vmem:[#allocation3 + $0x50] sm:$0xff] }
 0x65a   :  { %v8624_v0 = vpop.f32.mrb[116].mxu0 }
 0x65b   :  { %4137 = vrot.lane.b32.xlu0 %v8624_v0, %s9274_s25  ;;  %v4114_v18 = vpop.f32.mrb[117].mxu0  ;;  %v9150_v0 = vld [vmem:[%s11344_s4 + $0x180] sm:$0xff]  }
 0x65c   :  { %v8625_v37 = vpop.f32.mrb[118].mxu0 }
 0x65d   :  { %4139 = vrot.lane.b32.xlu1 %v8625_v37, %s9274_s25  ;;  %v4117_v38 = vpop.f32.mrb[119].mxu0 }
 0x65f   :  { %4133 = vrot.lane.b32.xlu0 %v4114_v18, %s9274_s25 }
 0x661   :  { %4135 = vrot.lane.b32.xlu1 %v4117_v38, %s9274_s25 }
 0x67a   :  { %v8664_v39 = vpop.f32.mrb[120].mxu0 }
 0x67b   :  { %4308 = vrot.lane.b32.xlu0 %v8664_v39, %s9275_s5  ;;  %v4285_v28 = vpop.f32.mrb[121].mxu0  ;;  %v4509_v39 = vor.u32 %v4508_v59, %v4504_v52  ;;  %v9170_v59 = vld [vmem:[%s11344_s4 + $0x1a8] sm:$0xff]  }
 0x67c   :  { %v8665_v55 = vpop.f32.mrb[122].mxu0 }
 0x67d   :  { %4310 = vrot.lane.b32.xlu1 %v8665_v55, %s9275_s5  ;;  %v4288_v35 = vpop.f32.mrb[123].mxu0 }
 0x67f   :  { %4304 = vrot.lane.b32.xlu0 %v4285_v28, %s9275_s5  ;;  %v10753_v28 = vpack.c.bf16 %v10736_v42, %v10746_v9 }
 0x681   :  { %4306 = vrot.lane.b32.xlu1 %v4288_v35, %s9275_s5  ;;  %v4539_v35 = vshll.u32 %v10734_v26, 16 }
 0x683   :  { %3397 = vrot.lane.b32.xlu0 %v10420_v36, %s9273_s22 }
 0x685   :  { %3399 = vrot.lane.b32.xlu1 %v10425_v14, %s9273_s22 }
 0x687   :  { %4222 = vrot.lane.b32.xlu0 %v10386_v7, %s9274_s25 }
 0x689   :  { %4224 = vrot.lane.b32.xlu1 %v10389_v25, %s9274_s25 }
 0x68b   :  { %3569 = vrot.lane.b32.xlu0 %v10478_v22, %s9274_s25 }
 0x68d   :  { %3571 = vrot.lane.b32.xlu1 %v10481_v31, %s9274_s25 }
 0x68f   :  { %4393 = vrot.lane.b32.xlu0 %v10418_v23, %s9275_s5 }
 0x691   :  { %4395 = vrot.lane.b32.xlu1 %v10422_v60, %s9275_s5 }
 0x693   :  { %3741 = vrot.lane.b32.xlu0 %v10506_v46, %s9275_s5 }
 0x695   :  { %3743 = vrot.lane.b32.xlu1 %v10509_v5, %s9275_s5 }
 0x6ad   :  { %v3967_v7 = vpop.permute.xlu0 %3966 }
 0x6ae   :  { %3976 = vst.msk [vmem:[#allocation3 + $0x28] sm:$0xff] %vm3319_vm1, %v3967_v7  ;;  %v9159_v7 = vld [vmem:[%s11344_s4 + $0x148] sm:$0xff]  }
 0x6af   :  { %v3969_v25 = vpop.permute.xlu1 %3968 }
 0x6b0   :  { %3977 = vst.msk [vmem:[#allocation3 + $0x38] sm:$0xff] %vm3319_vm1, %v3969_v25 }
 0x6b1   :  { %v3963_v36 = vpop.permute.xlu0 %3962 }
 0x6b2   :  { %3974 = vst.msk [vmem:[#allocation3 + $0x8] sm:$0xff] %vm3319_vm1, %v3963_v36 }
 0x6b5   :  { %v3965_v14 = vpop.permute.xlu0 %3964 }
 0x6b6   :  { %3975 = vst.msk [vmem:[#allocation3 + $0x18] sm:$0xff] %vm3319_vm1, %v3965_v14  ;;  %v4514_v14 = vsel %vm4502_vm4, %v4509_v39, %v4513_v11  ;;  %v9171_v39 = vld [vmem:[%s11344_s4 + $0x160] sm:$0xff]  }
 0x6cd   :  { %v4138_v23 = vpop.permute.xlu0 %4137 }
 0x6ce   :  { %4147 = vst.msk [vmem:[#allocation3 + $0x28] sm:$0xff] %vm3491_vm2, %v4138_v23  ;;  %v9160_v23 = vld [vmem:[%s11344_s4 + $0x1d8] sm:$0xff]  }
 0x6cf   :  { %v4140_v60 = vpop.permute.xlu1 %4139 }
 0x6d0   :  { %4148 = vst.msk [vmem:[#allocation3 + $0x38] sm:$0xff] %vm3491_vm2, %v4140_v60  ;;  %v4531_v60 = vshll.u32 %v10753_v28, 16 }
 0x6d1   :  { %v4134_v22 = vpop.permute.xlu0 %4133 }
 0x6d2   :  { %4145 = vst.msk [vmem:[#allocation3 + $0x8] sm:$0xff] %vm3491_vm2, %v4134_v22  ;;  %v4541_v22 = vrot.slane %v4539_v35, 1  ;;  %v4533_v19 = vrot.slane %v4531_v60, 1 }
 0x6d3   :  { %v4136_v31 = vpop.permute.xlu1 %4135 }
 0x6d4   :  { %4146 = vst.msk [vmem:[#allocation3 + $0x18] sm:$0xff] %vm3491_vm2, %v4136_v31 }
 0x6ed   :  { %v4309_v46 = vpop.permute.xlu0 %4308 }
 0x6ee   :  { %4318 = vst.msk [vmem:[#allocation3 + $0x28] sm:$0xff] %vm3663_vm3, %v4309_v46  ;;  %v9161_v46 = vld [vmem:[%s11344_s4 + $0x108] sm:$0xff]  }
 0x6ef   :  { %v4311_v5 = vpop.permute.xlu1 %4310 }
 0x6f0   :  { %4319 = vst.msk [vmem:[#allocation3 + $0x38] sm:$0xff] %vm3663_vm3, %v4311_v5  ;;  %v9162_v5 = vld [vmem:[%s11344_s4 + $0x198] sm:$0xff]  }
 0x6f1   :  { %v4305_v6 = vpop.permute.xlu0 %4304 }
 0x6f2   :  { %4316 = vst.msk [vmem:[#allocation3 + $0x8] sm:$0xff] %vm3663_vm3, %v4305_v6 }
 0x6f3   :  { %v4307_v2 = vpop.permute.xlu1 %4306 }
 0x6f4   :  { %4317 = vst.msk [vmem:[#allocation3 + $0x18] sm:$0xff] %vm3663_vm3, %v4307_v2  ;;  %v9163_v2 = vld [vmem:[%s11344_s4 + $0x150] sm:$0xff]  }
 0x6f5   :  { %v3398_v51 = vpop.permute.xlu0 %3397  ;;  %v10696_v43 = vld [vmem:[#allocation3 + $0x28] sm:$0xff] }
 0x6f6   :  { %3407 = vst.msk [vmem:[#allocation3 + $0x60] sm:$0xff] %vm3319_vm1, %v3398_v51  ;;  %v4527_v51 = vshrl.u32 %v10718_v62, 16 }
 0x6f7   :  { %v3400_v27 = vpop.permute.xlu1 %3399  ;;  %v10698_v44 = vld [vmem:[#allocation3 + $0x38] sm:$0xff] }
 0x6f8   :  { %3408 = vst.msk [vmem:[#allocation3 + $0x70] sm:$0xff] %vm3319_vm1, %v3400_v27  ;;  %v10703_v3 = vpack.c.bf16 %v10698_v44, %v10696_v43  ;;  %v9164_v27 = vld [vmem:[%s11344_s4 + $0x1e0] sm:$0xff]  }
 0x6f9   :  { %v4223_v54 = vpop.permute.xlu0 %4222  ;;  %v4406_v48 = vld [vmem:[#allocation3 + $0x8] sm:$0xff] }
 0x6fa   :  { %4232 = vst.msk [vmem:[#allocation3 + $0x68] sm:$0xff] %vm3491_vm2, %v4223_v54  ;;  %v4462_v20 = vld [vmem:[#allocation3 + $0x8] sm:$0xfe]  ;;  %v4523_v37 = vshll.u32 %v10703_v3, 16  ;;  %v4535_v16 = vshrl.u32 %v10703_v3, 16  ;;  %v4529_v54 = vor.u32 %v4527_v51, %v4513_v11 }
 0x6fb   :  { %v4225_v47 = vpop.permute.xlu1 %4224  ;;  %v10714_v63 = vld [vmem:[#allocation3 + $0x18] sm:$0xff] }
 0x6fc   :  { %4233 = vst.msk [vmem:[#allocation3 + $0x78] sm:$0xff] %vm3491_vm2, %v4225_v47  ;;  %v4422_v53 = vpack.c.bf16 %v10714_v63, %v4406_v48  ;;  %v4466_v18 = vpack.c.bf16 %v10714_v63, %v4462_v20  ;;  %v4525_v13 = vrot.slane %v4523_v37, 1  ;;  %v4468_v20 = vpack.c.bf16 %v4464_v10, %v4464_v10  ;;  %v9176_v10 = vld [vmem:[%s11344_s4 + $0x1f8] sm:$0xff]  }
 0x6fd   :  { %v3570_v38 = vpop.permute.xlu0 %3569 }
 0x6fe   :  { %3579 = vst.msk [vmem:[#allocation3 + $0x60] sm:$0xff] %vm3491_vm2, %v3570_v38  ;;  %4872 = vmatprep.mubr.bf16.mxu1 %v4422_v53  ;;  %v4518_v56 = vshll.u32 %v4466_v18, 16  ;;  %v4516_v29 = vshrl.u32 %v4466_v18, 16  ;;  %v4537_v25 = vor.u32 %v4535_v16, %v4525_v13  ;;  %v9166_v53 = vld [vmem:[%s11344_s4 + $0x1a0] sm:$0xff]   ;;  %v4551_v18 = vshrl.u32 %v10734_v26, 16 }
 0x6ff   :  { %v3572_v8 = vpop.permute.xlu1 %3571  ;;  %4873 = vmatmul.mubr.bf16.vlgmr.msra.gmra.mrb[44].mxu1 %v4421_v30  ;;  %v4534_v38 = vsel %vm4502_vm4, %v4529_v54, %v4533_v19  ;;  %v9168_v30 = vld [vmem:[%s11344_s4 + $0x1e8] sm:$0xff]  }
 0x700   :  { %3580 = vst.msk [vmem:[#allocation3 + $0x70] sm:$0xff] %vm3491_vm2, %v3572_v8  ;;  %7773 = vmatpush3.bf16.msra.mxu1 %v9150_v0  ;;  %v4520_v50 = vrot.slane %v4518_v56, 1  ;;  %4880 = vmatprep.mubr.bf16.mxu1 %v10703_v3  ;;  %v4542_v6 = vsel %vm4502_vm4, %v4537_v25, %v4541_v22 }
 0x701   :  { %v4394_v57 = vpop.permute.xlu0 %4393  ;;  %7774 = vmatprep.subr.bf16.mxu1 %v9153_v58  ;;  %v9169_v58 = vld [vmem:[%s11344_s4 + $0x118] sm:$0xff]  }
 0x702   :  { %4403 = vst.msk [vmem:[#allocation3 + $0x68] sm:$0xff] %vm3663_vm3, %v4394_v57  ;;  %v4521_v55 = vor.u32 %v4520_v50, %v4516_v29  ;;  %v4463_v29 = vld [vmem:[#allocation3 + $0x80] sm:$0x1]  ;;  %v4553_v50 = vor.u32 %v4551_v18, %v4541_v22 }
 0x703   :  { %v4396_v4 = vpop.permute.xlu1 %4395  ;;  %v4467_v25 = vpack.c.bf16 %v4463_v29, %v4463_v29 }
 0x704   :  { %4404 = vst.msk [vmem:[#allocation3 + $0x78] sm:$0xff] %vm3663_vm3, %v4396_v4  ;;  %7775 = vmatpush3.bf16.msra.mxu1 %v9154_v45  ;;  %v4526_v34 = vsel %vm4502_vm4, %v4521_v55, %v4525_v13  ;;  %v4571_v45 = vshll.u32 %v4468_v20, 16  ;;  %v4906_v55 = vld [vmem:[#allocation3 + $0x8] sm:$0xf8]  ;;  %v9172_v4 = vld [vmem:[%s11344_s4 + $0x1f0] sm:$0xff]  }
 0x705   :  { %v3742_v36 = vpop.permute.xlu0 %3741  ;;  %4711 = vmatprep.mubr.bf16.mxu0 %v4526_v34  ;;  %7776 = vmatprep.subr.bf16.mxu1 %v9156_v24  ;;  %v5183_v24 = vld [vmem:[#allocation3 + $0x8] sm:$0xf0] }
 0x706   :  { %3751 = vst.msk [vmem:[#allocation3 + $0x60] sm:$0xff] %vm3663_vm3, %v3742_v36  ;;  %4712 = vmatmul.mubr.bf16.vlgmr.msra.gmra.mrb[124].mxu0 %v4514_v14  ;;  %v5187_v11 = vpack.c.bf16 %v10714_v63, %v5183_v24  ;;  %v5182_v14 = vld [vmem:[#allocation3] sm:$0xf0] }
 0x707   :  { %v3744_v31 = vpop.permute.xlu1 %3743  ;;  %4881 = vmatmul.mubr.bf16.gmra.mrb[48].mxu1 %v10718_v62  ;;  %7733 = vmatpush3.bf16.msra.mxu0 %v9157_v21  ;;  %v4910_v21 = vpack.c.bf16 %v10714_v63, %v4906_v55  ;;  %v9173_v63 = vld [vmem:[%s11344_s4 + $0x120] sm:$0xff]  }
 0x708   :  { %3752 = vst.msk [vmem:[#allocation3 + $0x70] sm:$0xff] %vm3663_vm3, %v3744_v31  ;;  %7777 = vmatpush3.bf16.msra.mxu1 %v9158_v49  ;;  %7734 = vmatprep.subr.bf16.mxu0 %v9159_v7  ;;  %v4543_v49 = vshrl.u32 %v10753_v28, 16  ;;  %v9174_v31 = vld [vmem:[%s11344_s4 + $0x1b0] sm:$0xff]  }
 0x709   :  { %7778 = vmatprep.subr.bf16.mxu1 %v9160_v23  ;;  %4719 = vmatprep.mubr.bf16.mxu0 %v4542_v6  ;;  %v10805_v47 = vld [vmem:[#allocation3 + $0x68] sm:$0xff]  ;;  %v4905_v6 = vld [vmem:[#allocation3] sm:$0xf8]  ;;  %v4960_v54 = vshrl.u32 %v4910_v21, 16 }
 0x70a   :  { %4888 = vmatprep.mubr.bf16.mxu1 %v10734_v26  ;;  %v4545_v23 = vor.u32 %v4543_v49, %v4533_v19 }
 0x70b   :  { %7735 = vmatpush3.bf16.msra.mxu0 %v9161_v46  ;;  %v10807_v48 = vld [vmem:[#allocation3 + $0x78] sm:$0xff]  ;;  %v4573_v46 = vrot.slane %v4571_v45, 1 }
 0x70c   :  { %7779 = vmatpush3.bf16.msra.mxu1 %v9162_v5  ;;  %7736 = vmatprep.subr.bf16.mxu0 %v9163_v2  ;;  %v10817_v0 = vpack.c.bf16 %v10807_v48, %v10805_v47  ;;  %v5186_v5 = vpack.c.bf16 %v10691_v40, %v5182_v14  ;;  %v9175_v2 = vld [vmem:[%s11344_s4 + $0x168] sm:$0xff]   ;;  %v5235_v14 = vrot.slane %v10718_v62, 2  ;;  %v9187_v62 = vld [vmem:[%s11344_s4 + $0x240] sm:$0xff]  }
 0x70d   :  { %7780 = vmatprep.subr.bf16.mxu1 %v9164_v27  ;;  %v10832_v8 = vld [vmem:[#allocation3 + $0x60] sm:$0xff]  ;;  %v5237_v27 = vrot.slane %v5187_v11, 2 }
 0x70e   :  { %4720 = vmatmul.mubr.bf16.gmra.mrb[128].mxu0 %v4534_v38  ;;  %v4555_v56 = vshll.u32 %v10817_v0, 16  ;;  %v4567_v36 = vshrl.u32 %v10817_v0, 16  ;;  %v5238_v38 = vrot.slane %v10703_v3, 2  ;;  %v5234_v45 = vrot.slane %v5186_v5, 2  ;;  %v9184_v3 = vld [vmem:[%s11344_s4 + $0x2c8] sm:$0xff]  }
 0x70f   :  { %4889 = vmatmul.mubr.bf16.gmra.mrb[52].mxu1 %v10753_v28  ;;  %7737 = vmatpush3.bf16.msra.mxu0 %v9165_v32  ;;  %v10834_v52 = vld [vmem:[#allocation3 + $0x70] sm:$0xff]  ;;  %v4963_v32 = vshll.u32 %v4910_v21, 16 }
 0x710   :  { %7781 = vmatpush3.bf16.msra.mxu1 %v9166_v53  ;;  %7738 = vmatprep.subr.bf16.mxu0 %v9167_v12  ;;  %v4557_v13 = vrot.slane %v4555_v56, 1  ;;  %v10842_v57 = vpack.c.bf16 %v10834_v52, %v10832_v8  ;;  %v4563_v53 = vshll.u32 %v4467_v25, 16  ;;  %v4909_v12 = vpack.c.bf16 %v10691_v40, %v4905_v6 }
 0x711   :  { %7782 = vmatprep.subr.bf16.mxu1 %v9168_v30  ;;  %4896 = vmatprep.mubr.bf16.mxu1 %v10817_v0  ;;  %v9177_v30 = vld [vmem:[%s11344_s4 + $0x128] sm:$0xff]   ;;  %v5239_v29 = vsel %vm5233_vm5, %v5237_v27, %v5238_v38  ;;  %v4965_v24 = vrot.slane %v4963_v32, 2  ;;  %v4968_v25 = vrot.slane %v4523_v37, 2  ;;  %v9185_v27 = vld [vmem:[%s11344_s4 + $0x138] sm:$0xff]  }
 0x712   :  { %v4558_v34 = vsel %vm4502_vm4, %v4553_v50, %v4557_v13  ;;  %v4547_v7 = vshll.u32 %v10842_v57, 16  ;;  %v4569_v19 = vor.u32 %v4567_v36, %v4557_v13  ;;  %v9179_v50 = vld [vmem:[%s11344_s4 + $0x170] sm:$0xff]   ;;  %v9180_v13 = vld [vmem:[%s11344_s4 + $0x2c0] sm:$0xff]   ;;  %v4948_v11 = vshrl.u32 %v4909_v12, 16 }
 0x713   :  { %7739 = vmatpush3.bf16.msra.mxu0 %v9169_v58  ;;  %4727 = vmatprep.mubr.bf16.mxu0 %v4558_v34  ;;  %v9178_v58 = vld [vmem:[%s11344_s4 + $0x1b8] sm:$0xff]   ;;  %v4951_v21 = vshll.u32 %v4909_v12, 16  ;;  %v4967_v34 = vrot.slane %v4535_v16, 1  ;;  %v4975_v12 = vrot.slane %v4551_v18, 1  ;;  %v4972_v18 = vrot.slane %v4531_v60, 2  ;;  %v9193_v60 = vld [vmem:[%s11344_s4 + $0x208] sm:$0xff]  }
 0x714   :  { %7783 = vmatpush3.bf16.msra.mxu1 %v9170_v59  ;;  %v4549_v22 = vrot.slane %v4547_v7, 1  ;;  %7740 = vmatprep.subr.bf16.mxu0 %v9171_v39  ;;  %v4559_v59 = vshrl.u32 %v10842_v57, 16  ;;  %v4574_v40 = vsel %vm4502_vm4, %v4569_v19, %v4573_v46  ;;  %v4962_v39 = vrot.slane %v4960_v54, 1  ;;  %v9183_v16 = vld [vmem:[%s11344_s4 + $0x178] sm:$0xff]   ;;  %v9186_v54 = vld [vmem:[%s11344_s4 + $0x288] sm:$0xff]  }
 0x715   :  { %7784 = vmatprep.subr.bf16.mxu1 %v9172_v4  ;;  %v4565_v4 = vrot.slane %v4563_v53, 1  ;;  %v4950_v46 = vrot.slane %v4948_v11, 1  ;;  %v4953_v5 = vrot.slane %v4951_v21, 2  ;;  %v4969_v6 = vor.u32 %v4968_v25, %v4967_v34  ;;  %v9195_v25 = vld [vmem:[%s11344_s4 + $0x250] sm:$0xff]  }
 0x716   :  { %v4550_v20 = vsel %vm4502_vm4, %v4545_v23, %v4549_v22  ;;  %v4561_v55 = vor.u32 %v4559_v59, %v4549_v22  ;;  %v9181_v23 = vld [vmem:[%s11344_s4 + $0x130] sm:$0xff]   ;;  %v9182_v22 = vld [vmem:[%s11344_s4 + $0x280] sm:$0xff]   ;;  %v4966_v37 = vor.u32 %v4965_v24, %v4962_v39  ;;  %v4955_v19 = vrot.slane %v4527_v51, 1  ;;  %v9194_v24 = vld [vmem:[%s11344_s4 + $0x298] sm:$0xff]  }
 0x717   :  { %4728 = vmatmul.mubr.bf16.gmra.mrb[132].mxu0 %v4550_v20  ;;  %4897 = vmatmul.mubr.bf16.gmra.mrb[56].mxu1 %v10842_v57  ;;  %v9188_v51 = vld [vmem:[%s11344_s4 + $0x2d0] sm:$0xff]   ;;  %v4954_v20 = vor.u32 %v4953_v5, %v4950_v46  ;;  %v5240_v53 = vrot.slane %v10753_v28, 2  ;;  %v9199_v5 = vld [vmem:[%s11344_s4 + $0x258] sm:$0xff]  }
 0x718   :  { %7741 = vmatpush3.bf16.msra.mxu0 %v9173_v63  ;;  %7785 = vmatpush3.bf16.msra.mxu1 %v9174_v31  ;;  %v4566_v63 = vsel %vm4502_vm4, %v4561_v55, %v4565_v4  ;;  %v5236_v31 = vsel %vm5233_vm5, %v5234_v45, %v5235_v14  ;;  %v4970_v32 = vsel %vm4946_vm6, %v4966_v37, %v4969_v6  ;;  %v9190_v45 = vld [vmem:[%s11344_s4 + $0x290] sm:$0xff]   ;;  %v5184_v37 = vld [vmem:[#allocation3 + $0x80] sm:$0xf] }
 0x719   :  { %7742 = vmatprep.subr.bf16.mxu0 %v9175_v2  ;;  %7786 = vmatprep.subr.bf16.mxu1 %v9176_v10  ;;  %v5242_v2 = vrot.slane %v10734_v26, 2  ;;  %v4956_v10 = vrot.slane %v4511_v15, 2  ;;  %v9191_v26 = vld [vmem:[%s11344_s4 + $0x248] sm:$0xff]  }
 0x71a   :  { %4735 = vmatprep.mubr.bf16.mxu0 %v4574_v40  ;;  %5388 = vmatprep.mubr.bf16.mxu1 %v5239_v29  ;;  %v4971_v40 = vrot.slane %v4543_v49, 1  ;;  %v5185_v29 = vld [vmem:[#allocation3 + $0x88] sm:$0xf]  ;;  %v5241_v49 = vsel %vm5233_vm5, %v5235_v14, %v5240_v53  ;;  %v9196_v14 = vld [vmem:[%s11344_s4 + $0x2e0] sm:$0xff]  }
 0x71b   :  { %v5243_v15 = vsel %vm5233_vm5, %v5238_v38, %v5242_v2  ;;  %v4957_v38 = vor.u32 %v4956_v10, %v4955_v19  ;;  %v5189_v4 = vpack.c.bf16 %v5185_v29, %v5185_v29  ;;  %v5740_v19 = vld [vmem:[#allocation3 + $0x18] sm:$0xfc]  ;;  %v11019_v29 = vpack.c.bf16 %v10710_v33, %v10698_v44 }
 0x71c   :  { %7743 = vmatpush3.bf16.msra.mxu0 %v9177_v30  ;;  %7787 = vmatpush3.bf16.msra.mxu1 %v9178_v58  ;;  %v4976_v30 = vrot.slane %v4539_v35, 2  ;;  %v9189_v58 = vld [vmem:[%s11344_s4 + $0x200] sm:$0xff]   ;;  %v9192_v35 = vld [vmem:[%s11344_s4 + $0x2d8] sm:$0xff]   ;;  %v10965_v55 = vor.u32 %v4972_v18, %v4971_v40  ;;  %v11030_v33 = vpack.c.bf16 %v10746_v9, %v10707_v41 }
 0x71d   :  { %7744 = vmatprep.subr.bf16.mxu0 %v9179_v50  ;;  %7852 = vmatprep.subr.bf16.mxu1 %v9180_v13  ;;  %v5246_v50 = vrot.slane %v10817_v0, 2  ;;  %v4908_v13 = vld [vmem:[#allocation3 + $0x88] sm:$0x7]  ;;  %v4958_v39 = vsel %vm4946_vm6, %v4954_v20, %v4957_v38  ;;  %v5430_v0 = vld [vmem:[#allocation3 + $0x18] sm:$0xfe]  ;;  %v5250_v10 = vrot.slane %v5189_v4, 2 }
 0x71e   :  { %v4977_v28 = vor.u32 %v4976_v30, %v4975_v12  ;;  %v4912_v11 = vpack.c.bf16 %v4908_v13, %v4908_v13  ;;  %v9201_v20 = vld [vmem:[%s11344_s4 + $0x218] sm:$0xff]   ;;  %v9205_v13 = vld [vmem:[%s11344_s4 + $0x220] sm:$0xff]  }
 0x71f   :  { %4736 = vmatmul.mubr.bf16.gmra.mrb[136].mxu0 %v4566_v63  ;;  %5389 = vmatmul.mubr.bf16.vlgmr.msra.gmra.mrb[60].mxu1 %v5236_v31  ;;  %v5247_v34 = vsel %vm5233_vm5, %v5242_v2, %v5246_v50  ;;  %v9197_v63 = vld [vmem:[%s11344_s4 + $0x210] sm:$0xff]   ;;  %v9198_v31 = vld [vmem:[%s11344_s4 + $0x2a0] sm:$0xff]   ;;  %v5251_v30 = vsel %vm5233_vm5, %v5246_v50, %v5250_v10 }
 0x720   :  { %7745 = vmatpush3.bf16.msra.mxu0 %v9181_v23  ;;  %7853 = vmatpush3.bf16.msra.mxu1 %v9182_v22  ;;  %v4978_v21 = vsel %vm4946_vm6, %v4969_v6, %v4977_v28  ;;  %v4983_v23 = vrot.slane %v4567_v36, 1  ;;  %v4984_v22 = vrot.slane %v4555_v56, 2  ;;  %v4997_v36 = vshrl.u32 %v4912_v11, 16  ;;  %v9200_v6 = vld [vmem:[%s11344_s4 + $0x2e8] sm:$0xff]   ;;  %v9214_v10 = vld [vmem:[%s11344_s4 + $0x380] sm:$0xff]  }
 0x721   :  { %7746 = vmatprep.subr.bf16.mxu0 %v9183_v16  ;;  %7854 = vmatprep.subr.bf16.mxu1 %v9184_v3  ;;  %v5244_v16 = vrot.slane %v10842_v57, 2  ;;  %v4907_v3 = vld [vmem:[#allocation3 + $0x80] sm:$0x7]  ;;  %v5000_v46 = vshll.u32 %v4912_v11, 16  ;;  %v4974_v56 = vsel %vm4946_vm6, %v4957_v38, %v10965_v55  ;;  %v5795_v11 = vrot.slane %v11019_v29, 1 }
 0x722   :  { %5141 = vmatprep.mubr.bf16.mxu0 %v4970_v32  ;;  %5396 = vmatprep.mubr.bf16.mxu1 %v5243_v15  ;;  %v4985_v2 = vor.u32 %v4984_v22, %v4983_v23  ;;  %v4979_v32 = vrot.slane %v4559_v59, 1  ;;  %v4980_v15 = vrot.slane %v4547_v7, 2  ;;  %v5744_v59 = vpack.c.bf16 %v10696_v43, %v5740_v19  ;;  %v9203_v38 = vld [vmem:[%s11344_s4 + $0x260] sm:$0xff]   ;;  %v9209_v22 = vld [vmem:[%s11344_s4 + $0x228] sm:$0xff]  }
 0x723   :  { %v4999_v57 = vrot.slane %v4997_v36, 1  ;;  %v5002_v7 = vrot.slane %v5000_v46, 2  ;;  %v5510_v36 = vshll.u32 %v11019_v29, 16 }
 0x724   :  { %7747 = vmatpush3.bf16.msra.mxu0 %v9185_v27  ;;  %7855 = vmatpush3.bf16.msra.mxu1 %v9186_v54  ;;  %v4911_v27 = vpack.c.bf16 %v4907_v3, %v4907_v3  ;;  %v5245_v54 = vsel %vm5233_vm5, %v5240_v53, %v5244_v16  ;;  %v9202_v53 = vld [vmem:[%s11344_s4 + $0x2a8] sm:$0xff]   ;;  %v4986_v12 = vsel %vm4946_vm6, %v4977_v28, %v4985_v2 }
 0x725   :  { %7812 = vmatprep.subr.bf16.mxu0 %v9187_v62  ;;  %7856 = vmatprep.subr.bf16.mxu1 %v9188_v51  ;;  %v5188_v62 = vpack.c.bf16 %v5184_v37, %v5184_v37  ;;  %v11000_v51 = vpack.c.bf16 %v10696_v43, %v5430_v0  ;;  %v4981_v40 = vor.u32 %v4980_v15, %v4979_v32  ;;  %v9211_v37 = vld [vmem:[%s11344_s4 + $0x270] sm:$0xff]   ;;  %v9216_v32 = vld [vmem:[%s11344_s4 + $0x3c8] sm:$0xff]   ;;  %v5498_v15 = vshll.u32 %v11030_v33, 16 }
 0x726   :  { %v5003_v28 = vor.u32 %v5002_v7, %v4999_v57  ;;  %v11054_v3 = vpack.c.bf16 %v10805_v47, %v10712_v17  ;;  %v5792_v17 = vrot.slane %v11030_v33, 1  ;;  %v9217_v57 = vld [vmem:[%s11344_s4 + $0x238] sm:$0xff]  }
 0x727   :  { %5142 = vmatmul.mubr.bf16.vlgmr.msra.gmra.mrb[140].mxu0 %v4958_v39  ;;  %5397 = vmatmul.mubr.bf16.gmra.mrb[64].mxu1 %v5241_v49  ;;  %v5248_v18 = vrot.slane %v5188_v62, 2  ;;  %v5505_v50 = vshll.u32 %v11000_v51, 16  ;;  %v9206_v39 = vld [vmem:[%s11344_s4 + $0x2b0] sm:$0xff]   ;;  %v5794_v49 = vrot.slane %v5744_v59, 1  ;;  %v11085_v62 = vpack.c.bf16 %v10832_v8, %v10736_v42  ;;  %v9218_v8 = vld [vmem:[%s11344_s4 + $0x388] sm:$0xff]  }
 0x728   :  { %7813 = vmatpush3.bf16.msra.mxu0 %v9189_v58  ;;  %7857 = vmatpush3.bf16.msra.mxu1 %v9190_v45  ;;  %v9204_v58 = vld [vmem:[%s11344_s4 + $0x2f0] sm:$0xff]   ;;  %v4988_v45 = vshrl.u32 %v4911_v27, 16  ;;  %v5004_v23 = vsel %vm4946_vm6, %v4985_v2, %v5003_v28  ;;  %v5512_v2 = vrot.slane %v5510_v36, 1 }
 0x729   :  { %7814 = vmatprep.subr.bf16.mxu0 %v9191_v26  ;;  %7858 = vmatprep.subr.bf16.mxu1 %v9192_v35  ;;  %v4991_v26 = vshll.u32 %v4911_v27, 16  ;;  %v5739_v35 = vld [vmem:[#allocation3 + $0x10] sm:$0xfc]  ;;  %v5249_v4 = vsel %vm5233_vm5, %v5244_v16, %v5248_v18  ;;  %v5507_v9 = vrot.slane %v5505_v50, 1  ;;  %v9210_v16 = vld [vmem:[%s11344_s4 + $0x2b8] sm:$0xff]  }
 0x72a   :  { %5149 = vmatprep.mubr.bf16.mxu0 %v4978_v21  ;;  %5404 = vmatprep.mubr.bf16.mxu1 %v5247_v34  ;;  %v4990_v44 = vrot.slane %v4988_v45, 1  ;;  %v9207_v21 = vld [vmem:[%s11344_s4 + $0x268] sm:$0xff]   ;;  %v9208_v34 = vld [vmem:[%s11344_s4 + $0x2f8] sm:$0xff]   ;;  %v5743_v41 = vpack.c.bf16 %v10705_v61, %v5739_v35  ;;  %v5522_v45 = vshrl.u32 %v11019_v29, 16 }
 0x72b   :  { %v6227_v35 = vld [vmem:[#allocation3 + $0x18] sm:$0xe0] }
 0x72c   :  { %7815 = vmatpush3.bf16.msra.mxu0 %v9193_v60  ;;  %7859 = vmatpush3.bf16.msra.mxu1 %v9194_v24  ;;  %v5429_v60 = vld [vmem:[#allocation3 + $0x10] sm:$0xfe]  ;;  %v4982_v24 = vsel %vm4946_vm6, %v10965_v55, %v4981_v40  ;;  %v5791_v0 = vrot.slane %v5743_v41, 1  ;;  %v5524_v50 = vor.u32 %v5522_v45, %v5512_v2  ;;  %v5446_v41 = vld [vmem:[#allocation3 + $0x98] sm:$0x1] }
 0x72d   :  { %7816 = vmatprep.subr.bf16.mxu0 %v9195_v25  ;;  %7860 = vmatprep.subr.bf16.mxu1 %v9196_v14  ;;  %v4993_v25 = vrot.slane %v4991_v26, 2  ;;  %v5447_v55 = vpack.c.bf16 %v10705_v61, %v5429_v60  ;;  %v5796_v14 = vsel %vm5790_vm7, %v5794_v49, %v5795_v11 }
 0x72e   :  { %v5793_v27 = vsel %vm5790_vm7, %v5791_v0, %v5792_v17 }
 0x72f   :  { %5150 = vmatmul.mubr.bf16.gmra.mrb[144].mxu0 %v4974_v56  ;;  %5405 = vmatmul.mubr.bf16.gmra.mrb[68].mxu1 %v5245_v54  ;;  %v4994_v46 = vor.u32 %v4993_v25, %v4990_v44  ;;  %v9213_v56 = vld [vmem:[%s11344_s4 + $0x230] sm:$0xff]   ;;  %v9215_v54 = vld [vmem:[%s11344_s4 + $0x278] sm:$0xff]   ;;  %v5491_v7 = vshrl.u32 %v5447_v55, 16  ;;  %v9223_v44 = vld [vmem:[%s11344_s4 + $0x348] sm:$0xff]  }
 0x730   :  { %7817 = vmatpush3.bf16.msra.mxu0 %v9197_v63  ;;  %7861 = vmatpush3.bf16.msra.mxu1 %v9198_v31  ;;  %v9212_v63 = vld [vmem:[%s11344_s4 + $0x3c0] sm:$0xff]   ;;  %v5503_v31 = vshrl.u32 %v11000_v51, 16 }
 0x731   :  { %7818 = vmatprep.subr.bf16.mxu0 %v9199_v5  ;;  %7862 = vmatprep.subr.bf16.mxu1 %v9200_v6  ;;  %v5799_v5 = vrot.slane %v11054_v3, 1  ;;  %v5493_v6 = vshll.u32 %v5447_v55, 16  ;;  %v4995_v19 = vsel %vm4946_vm6, %v4981_v40, %v4994_v46  ;;  %v5514_v55 = vshrl.u32 %v11030_v33, 16 }
 0x732   :  { %5157 = vmatprep.mubr.bf16.mxu0 %v4986_v12  ;;  %5412 = vmatprep.mubr.bf16.mxu1 %v5251_v30  ;;  %v5508_v47 = vor.u32 %v5507_v9, %v5503_v31  ;;  %v5500_v12 = vrot.slane %v5498_v15, 1  ;;  %v5797_v30 = vrot.slane %v11085_v62, 1  ;;  %v6231_v9 = vpack.c.bf16 %v10696_v43, %v6227_v35  ;;  %v5741_v31 = vld [vmem:[#allocation3 + $0x90] sm:$0x3] }
 0x733   :  { %v5800_v59 = vsel %vm5790_vm7, %v5795_v11, %v5799_v5  ;;  %v5495_v42 = vrot.slane %v5493_v6, 1  ;;  %v11132_v11 = vpack.c.bf16 %v9276_v1, %v10834_v52  ;;  %v9226_v52 = vld [vmem:[%s11344_s4 + $0x398] sm:$0xff]   ;;  %v5456_v46 = vpack.c.bf16 %v5446_v41, %v5446_v41  ;;  %v9229_v6 = vld [vmem:[%s11344_s4 + $0x310] sm:$0xff]  }
 0x734   :  { %7819 = vmatpush3.bf16.msra.mxu0 %v9201_v20  ;;  %7863 = vmatpush3.bf16.msra.mxu1 %v9202_v53  ;;  %v5513_v51 = vsel %vm4502_vm4, %v5508_v47, %v5512_v2  ;;  %v5526_v20 = vshll.u32 %v11054_v3, 16  ;;  %v11091_v53 = vpack.c.bf16 %v9276_v1, %v10807_v48  ;;  %v9219_v48 = vld [vmem:[%s11344_s4 + $0x340] sm:$0xff]   ;;  %v5798_v60 = vsel %vm5790_vm7, %v5792_v17, %v5797_v30  ;;  %v9225_v1 = vld [vmem:[%s11344_s4 + $0x308] sm:$0xff]  }
 0x735   :  { %7820 = vmatprep.subr.bf16.mxu0 %v9203_v38  ;;  %7864 = vmatprep.subr.bf16.mxu1 %v9204_v58  ;;  %v9220_v38 = vld [vmem:[%s11344_s4 + $0x3d0] sm:$0xff]   ;;  %v5742_v58 = vld [vmem:[#allocation3 + $0x98] sm:$0x3]  ;;  %v5496_v26 = vor.u32 %v5495_v42, %v5491_v7  ;;  %v6281_v0 = vshrl.u32 %v6231_v9, 16  ;;  %v9230_v2 = vld [vmem:[%s11344_s4 + $0x3a0] sm:$0xff]  }
 0x736   :  { %v5528_v40 = vrot.slane %v5526_v20, 1  ;;  %v5803_v18 = vrot.slane %v11091_v53, 1  ;;  %v5746_v49 = vpack.c.bf16 %v5742_v58, %v5742_v58  ;;  %v5542_v25 = vshll.u32 %v11091_v53, 16  ;;  %v9234_v58 = vld [vmem:[%s11344_s4 + $0x3a8] sm:$0xff]  }
 0x737   :  { %5158 = vmatmul.mubr.bf16.gmra.mrb[148].mxu0 %v4982_v24  ;;  %5413 = vmatmul.mubr.bf16.gmra.mrb[72].mxu1 %v5249_v4  ;;  %v5501_v28 = vsel %vm4502_vm4, %v5496_v26, %v5500_v12  ;;  %v9224_v24 = vld [vmem:[%s11344_s4 + $0x3d8] sm:$0xff]   ;;  %v5518_v4 = vshll.u32 %v11085_v62, 16  ;;  %v6289_v26 = vrot.slane %v5510_v36, 3 }
 0x738   :  { %7821 = vmatpush3.bf16.msra.mxu0 %v9205_v13  ;;  %7865 = vmatpush3.bf16.msra.mxu1 %v9206_v39  ;;  %v9221_v13 = vld [vmem:[%s11344_s4 + $0x300] sm:$0xff]   ;;  %v9222_v39 = vld [vmem:[%s11344_s4 + $0x390] sm:$0xff]   ;;  %v5544_v47 = vrot.slane %v5542_v25, 1 }
 0x739   :  { %5945 = vmatprep.mubr.bf16.mxu1 %v5796_v14  ;;  %5165 = vmatprep.mubr.bf16.mxu0 %v5004_v23  ;;  %v5538_v14 = vshrl.u32 %v11054_v3, 16  ;;  %v5807_v23 = vrot.slane %v5746_v49, 1  ;;  %v9235_v49 = vld [vmem:[%s11344_s4 + $0x360] sm:$0xff]  }
 0x73a   :  { %7822 = vmatprep.subr.bf16.mxu0 %v9207_v21  ;;  %7866 = vmatprep.subr.bf16.mxu1 %v9208_v34  ;;  %v5529_v21 = vsel %vm4502_vm4, %v5524_v50, %v5528_v40  ;;  %v5804_v34 = vsel %vm5790_vm7, %v5799_v5, %v5803_v18  ;;  %v5516_v5 = vor.u32 %v5514_v55, %v5500_v12  ;;  %v5445_v12 = vld [vmem:[#allocation3 + $0x90] sm:$0x1] }
 0x73b   :  { %v5540_v17 = vor.u32 %v5538_v14, %v5528_v40  ;;  %v5554_v40 = vshrl.u32 %v11091_v53, 16  ;;  %v5455_v36 = vpack.c.bf16 %v5445_v12, %v5445_v12 }
 0x73c   :  { %7823 = vmatpush3.bf16.msra.mxu0 %v9209_v22  ;;  %7867 = vmatpush3.bf16.msra.mxu1 %v9210_v16  ;;  %v5520_v22 = vrot.slane %v5518_v4, 1  ;;  %v5801_v16 = vrot.slane %v11132_v11, 1 }
 0x73d   :  { %7824 = vmatprep.subr.bf16.mxu0 %v9211_v37  ;;  %7932 = vmatprep.subr.bf16.mxu1 %v9212_v63  ;;  %v9227_v37 = vld [vmem:[%s11344_s4 + $0x350] sm:$0xff]   ;;  %v9228_v63 = vld [vmem:[%s11344_s4 + $0x3e0] sm:$0xff]   ;;  %v5545_v42 = vsel %vm4502_vm4, %v5540_v17, %v5544_v47  ;;  %v5546_v17 = vshrl.u32 %v11132_v11, 16 }
 0x73f   :  { %5166 = vmatmul.mubr.bf16.gmra.mrb[152].mxu0 %v4995_v19  ;;  %5946 = vmatmul.mubr.bf16.vlgmr.msra.gmra.mrb[76].mxu1 %v5793_v27  ;;  %v5521_v19 = vsel %vm4502_vm4, %v5516_v5, %v5520_v22  ;;  %v5802_v27 = vsel %vm5790_vm7, %v5797_v30, %v5801_v16  ;;  %v5530_v30 = vshrl.u32 %v11085_v62, 16 }
 0x740   :  { %7825 = vmatpush3.bf16.msra.mxu0 %v9213_v56  ;;  %5698 = vmatprep.mubr.bf16.mxu0 %v5513_v51  ;;  %v6284_v56 = vshll.u32 %v6231_v9, 16  ;;  %v5534_v51 = vshll.u32 %v11132_v11, 16 }
 0x741   :  { %5953 = vmatprep.mubr.bf16.mxu1 %v5800_v59  ;;  %7933 = vmatpush3.bf16.msra.mxu1 %v9214_v10  ;;  %v5745_v10 = vpack.c.bf16 %v5741_v31, %v5741_v31  ;;  %v5558_v59 = vshll.u32 %v5456_v46, 16  ;;  %v5532_v50 = vor.u32 %v5530_v30, %v5520_v22  ;;  %v9239_v22 = vld [vmem:[%s11344_s4 + $0x368] sm:$0xff]  }
 0x742   :  { %7826 = vmatprep.subr.bf16.mxu0 %v9215_v54  ;;  %7934 = vmatprep.subr.bf16.mxu1 %v9216_v32  ;;  %v9231_v54 = vld [vmem:[%s11344_s4 + $0x358] sm:$0xff]   ;;  %v9232_v32 = vld [vmem:[%s11344_s4 + $0x3e8] sm:$0xff]   ;;  %v6286_v7 = vrot.slane %v6284_v56, 3 }
 0x743   :  { %v9241_v56 = vld [vmem:[%s11344_s4 + $0x328] sm:$0xff]  }
 0x744   :  { %7827 = vmatpush3.bf16.msra.mxu0 %v9217_v57  ;;  %v6226_v57 = vld [vmem:[#allocation3 + $0x10] sm:$0xe0] }
 0x745   :  { %7935 = vmatpush3.bf16.msra.mxu1 %v9218_v8  ;;  %7892 = vmatprep.subr.bf16.mxu0 %v9219_v48  ;;  %v5808_v8 = vsel %vm5790_vm7, %v5803_v18, %v5807_v23  ;;  %v6283_v48 = vrot.slane %v6281_v0, 2  ;;  %v6288_v18 = vrot.slane %v5522_v45, 2  ;;  %v6230_v35 = vpack.c.bf16 %v10705_v61, %v6226_v57  ;;  %v9236_v45 = vld [vmem:[%s11344_s4 + $0x3f0] sm:$0xff]   ;;  %v6229_v57 = vld [vmem:[#allocation3 + $0x98] sm:$0x1f] }
 0x746   :  { %7936 = vmatprep.subr.bf16.mxu1 %v9220_v38  ;;  %v9233_v38 = vld [vmem:[%s11344_s4 + $0x318] sm:$0xff]   ;;  %v5556_v61 = vor.u32 %v5554_v40, %v5544_v47  ;;  %v6296_v47 = vrot.slane %v5538_v14, 2  ;;  %v6297_v0 = vrot.slane %v5526_v20, 3  ;;  %v9243_v20 = vld [vmem:[%s11344_s4 + $0x370] sm:$0xff]  }
 0x747   :  { %5699 = vmatmul.mubr.bf16.vlgmr.msra.gmra.mrb[156].mxu0 %v5501_v28  ;;  %5954 = vmatmul.mubr.bf16.gmra.mrb[80].mxu1 %v5798_v60  ;;  %v5560_v28 = vrot.slane %v5558_v59, 1  ;;  %v6287_v60 = vor.u32 %v6286_v7, %v6283_v48  ;;  %v6269_v41 = vshrl.u32 %v6230_v35, 16  ;;  %v6272_v9 = vshll.u32 %v6230_v35, 16  ;;  %v9247_v48 = vld [vmem:[#allocation3 + $0x20] sm:$0xff] }
 0x748   :  { %5706 = vmatprep.mubr.bf16.mxu0 %v5529_v21  ;;  %5961 = vmatprep.mubr.bf16.mxu1 %v5804_v34  ;;  %v9238_v21 = vld [vmem:[%s11344_s4 + $0x3b0] sm:$0xff]   ;;  %v6290_v34 = vor.u32 %v6289_v26, %v6288_v18  ;;  %v6035_v59 = vrot.slane %v11019_v29, 2  ;;  %v6293_v29 = vrot.slane %v5518_v4, 3  ;;  %v6304_v26 = vrot.slane %v5554_v40, 2 }
 0x749   :  { %7893 = vmatpush3.bf16.msra.mxu0 %v9221_v13  ;;  %7937 = vmatpush3.bf16.msra.mxu1 %v9222_v39  ;;  %v5536_v13 = vrot.slane %v5534_v51, 1  ;;  %v5805_v39 = vrot.slane %v5745_v10, 1  ;;  %v6274_v5 = vrot.slane %v6272_v9, 3  ;;  %v6305_v35 = vrot.slane %v5542_v25, 3 }
 0x74a   :  { %7894 = vmatprep.subr.bf16.mxu0 %v9223_v44  ;;  %7938 = vmatprep.subr.bf16.mxu1 %v9224_v24  ;;  %v5987_v44 = vld [vmem:[#allocation3 + $0x18] sm:$0xf0]  ;;  %v9237_v24 = vld [vmem:[%s11344_s4 + $0x320] sm:$0xff]   ;;  %v6291_v31 = vsel %vm6267_vm8, %v6287_v60, %v6290_v34  ;;  %v6032_v4 = vrot.slane %v11030_v33, 2  ;;  %v6300_v60 = vrot.slane %v5546_v17, 2 }
 0x74b   :  { %v5806_v23 = vsel %vm5790_vm7, %v5801_v16, %v5805_v39  ;;  %v6277_v16 = vrot.slane %v5498_v15, 3  ;;  %v5991_v46 = vpack.c.bf16 %v10696_v43, %v5987_v44  ;;  %v9242_v43 = vld [vmem:[%s11344_s4 + $0x3b8] sm:$0xff]   ;;  %v6271_v15 = vrot.slane %v6269_v41, 2 }
 0x74c   :  { %v6301_v44 = vrot.slane %v5534_v51, 3  ;;  %v6037_v41 = vrot.slane %v11085_v62, 2  ;;  %v5989_v51 = vld [vmem:[#allocation3 + $0x98] sm:$0xf] }
 0x74d   :  { %7895 = vmatpush3.bf16.msra.mxu0 %v9225_v1  ;;  %7939 = vmatpush3.bf16.msra.mxu1 %v9226_v52  ;;  %v6276_v1 = vrot.slane %v5514_v55, 2  ;;  %v5537_v52 = vsel %vm4502_vm4, %v5532_v50, %v5536_v13  ;;  %v5561_v55 = vsel %vm4502_vm4, %v5556_v61, %v5560_v28  ;;  %v6034_v10 = vrot.slane %v5991_v46, 2  ;;  %v6228_v61 = vld [vmem:[#allocation3 + $0x90] sm:$0x1f] }
 0x74e   :  { %7896 = vmatprep.subr.bf16.mxu0 %v9227_v37  ;;  %7940 = vmatprep.subr.bf16.mxu1 %v9228_v63  ;;  %v9240_v37 = vld [vmem:[%s11344_s4 + $0x3f8] sm:$0xff]   ;;  %v5550_v63 = vshll.u32 %v5455_v36, 16  ;;  %v6233_v50 = vpack.c.bf16 %v6229_v57, %v6229_v57  ;;  %v6302_v9 = vor.u32 %v6301_v44, %v6300_v60  ;;  %v5993_v62 = vpack.c.bf16 %v5989_v51, %v5989_v51 }
 0x74f   :  { %5707 = vmatmul.mubr.bf16.gmra.mrb[160].mxu0 %v5521_v19  ;;  %5962 = vmatmul.mubr.bf16.gmra.mrb[84].mxu1 %v5802_v27  ;;  %v6278_v14 = vor.u32 %v6277_v16, %v6276_v1  ;;  %v5986_v19 = vld [vmem:[#allocation3 + $0x10] sm:$0xf0]  ;;  %v6298_v27 = vor.u32 %v6297_v0, %v6296_v47  ;;  %v5988_v0 = vld [vmem:[#allocation3 + $0x90] sm:$0xf] }
 0x750   :  { %5714 = vmatprep.mubr.bf16.mxu0 %v5545_v42  ;;  %5969 = vmatprep.mubr.bf16.mxu1 %v5808_v8  ;;  %v9245_v8 = vld [vmem:[%s11344_s4 + $0x378] sm:$0xff]   ;;  %v5990_v7 = vpack.c.bf16 %v9247_v48, %v5986_v19  ;;  %v6318_v36 = vshrl.u32 %v6233_v50, 16  ;;  %v6321_v40 = vshll.u32 %v6233_v50, 16  ;;  %v6047_v47 = vrot.slane %v5993_v62, 2 }
 0x751   :  { %7897 = vmatpush3.bf16.msra.mxu0 %v9229_v6  ;;  %7941 = vmatpush3.bf16.msra.mxu1 %v9230_v2  ;;  %v5548_v6 = vor.u32 %v5546_v17, %v5536_v13  ;;  %v5552_v2 = vrot.slane %v5550_v63, 1  ;;  %v6299_v18 = vsel %vm6267_vm8, %v6290_v34, %v6298_v27  ;;  %v6041_v17 = vrot.slane %v11132_v11, 2 }
 0x752   :  { %7898 = vmatprep.subr.bf16.mxu0 %v9231_v54  ;;  %7942 = vmatprep.subr.bf16.mxu1 %v9232_v32  ;;  %v6275_v54 = vor.u32 %v6274_v5, %v6271_v15  ;;  %v9244_v32 = vld [vmem:[%s11344_s4 + $0x330] sm:$0xff]   ;;  %v6031_v13 = vrot.slane %v5990_v7, 2  ;;  %v6323_v34 = vrot.slane %v6321_v40, 3  ;;  %v5992_v15 = vpack.c.bf16 %v5988_v0, %v5988_v0  ;;  %v6526_v40 = vld [vmem:[%s11347_s7] sm:$0xff] }
 0x753   :  { %v5553_v42 = vsel %vm4502_vm4, %v5548_v6, %v5552_v2 }
 0x754   :  { %v6279_v12 = vsel %vm6267_vm8, %v6275_v54, %v6278_v14  ;;  %v6033_v25 = vsel %vm5233_vm5, %v6031_v13, %v6032_v4  ;;  %v6045_v6 = vrot.slane %v5992_v15, 2 }
 0x755   :  { %7899 = vmatpush3.bf16.msra.mxu0 %v9233_v38  ;;  %7943 = vmatpush3.bf16.msra.mxu1 %v9234_v58  ;;  %v6036_v38 = vsel %vm5233_vm5, %v6034_v10, %v6035_v59  ;;  %v6292_v58 = vrot.slane %v5530_v30, 2  ;;  %v9246_v30 = vld [vmem:[%s11344_s4 + $0x338] sm:$0xff]  }
 0x756   :  { %7900 = vmatprep.subr.bf16.mxu0 %v9235_v49  ;;  %7944 = vmatprep.subr.bf16.mxu1 %v9236_v45  ;;  %v6039_v49 = vrot.slane %v11054_v3, 2  ;;  %v6306_v45 = vor.u32 %v6305_v35, %v6304_v26  ;;  %v6046_v2 = vsel %vm5233_vm5, %v6041_v17, %v6045_v6 }
 0x757   :  { %5715 = vmatmul.mubr.bf16.gmra.mrb[164].mxu0 %v5537_v52  ;;  %5970 = vmatmul.mubr.bf16.gmra.mrb[88].mxu1 %v5806_v23  ;;  %v6294_v39 = vor.u32 %v6293_v29, %v6292_v58  ;;  %v6043_v23 = vrot.slane %v11091_v53, 2 }
 0x758   :  { %5722 = vmatprep.mubr.bf16.mxu0 %v5561_v55  ;;  %6462 = vmatprep.mubr.bf16.mxu1 %v6291_v31  ;;  %v6040_v33 = vsel %vm5233_vm5, %v6035_v59, %v6039_v49  ;;  %v6307_v3 = vsel %vm6267_vm8, %v6298_v27, %v6306_v45 }
 0x759   :  { %7901 = vmatpush3.bf16.msra.mxu0 %v9237_v24  ;;  %7945 = vmatpush3.bf16.msra.mxu1 %v9238_v21  ;;  %v6295_v28 = vsel %vm6267_vm8, %v6278_v14, %v6294_v39  ;;  %v6232_v24 = vpack.c.bf16 %v6228_v61, %v6228_v61  ;;  %v6320_v21 = vrot.slane %v6318_v36, 2  ;;  %v6303_v63 = vsel %vm6267_vm8, %v6294_v39, %v6302_v9 }
 0x75a   :  { %7902 = vmatprep.subr.bf16.mxu0 %v9239_v22  ;;  %7946 = vmatprep.subr.bf16.mxu1 %v9240_v37  ;;  %v6038_v37 = vsel %vm5233_vm5, %v6032_v4, %v6037_v41  ;;  %v6044_v16 = vsel %vm5233_vm5, %v6039_v49, %v6043_v23  ;;  %v6048_v5 = vsel %vm5233_vm5, %v6043_v23, %v6047_v47 }
 0x75b   :  { %v6309_v1 = vshrl.u32 %v6232_v24, 16  ;;  %v6312_v52 = vshll.u32 %v6232_v24, 16  ;;  %v6324_v22 = vor.u32 %v6323_v34, %v6320_v21 }
 0x75d   :  { %7903 = vmatpush3.bf16.msra.mxu0 %v9241_v56  ;;  %7947 = vmatpush3.bf16.msra.mxu1 %v9242_v43  ;;  %v6311_v55 = vrot.slane %v6309_v1, 2  ;;  %v6314_v31 = vrot.slane %v6312_v52, 3  ;;  %v6325_v46 = vsel %vm6267_vm8, %v6306_v45, %v6324_v22  ;;  %v6042_v56 = vsel %vm5233_vm5, %v6037_v41, %v6041_v17 }
 0x75e   :  { %7904 = vmatprep.subr.bf16.mxu0 %v9243_v20 }
 0x75f   :  { %5723 = vmatmul.mubr.bf16.gmra.mrb[168].mxu0 %v5553_v42  ;;  %v6315_v53 = vor.u32 %v6314_v31, %v6311_v55 }
 0x760   :  { %6463 = vmatmul.mubr.bf16.vlgmr.msra.gmra.mrb[92].mxu1 %v6279_v12  ;;  %6185 = vmatprep.mubr.bf16.mxu0 %v6036_v38 }
 0x761   :  { %7905 = vmatpush3.bf16.msra.mxu0 %v9244_v32  ;;  %6470 = vmatprep.mubr.bf16.mxu1 %v6299_v18  ;;  %v6316_v43 = vsel %vm6267_vm8, %v6302_v9, %v6315_v53 }
 0x762   :  { %7906 = vmatprep.subr.bf16.mxu0 %v9245_v8 }
 0x765   :  { %7907 = vmatpush3.bf16.msra.mxu0 %v9246_v30 }
 0x768   :  { %6186 = vmatmul.mubr.bf16.vlgmr.msra.gmra.mrb[172].mxu0 %v6033_v25  ;;  %6471 = vmatmul.mubr.bf16.gmra.mrb[96].mxu1 %v6295_v28 }
 0x769   :  { %6193 = vmatprep.mubr.bf16.mxu0 %v6040_v33  ;;  %6478 = vmatprep.mubr.bf16.mxu1 %v6307_v3 }
 0x770   :  { %6194 = vmatmul.mubr.bf16.gmra.mrb[176].mxu0 %v6038_v37  ;;  %6479 = vmatmul.mubr.bf16.gmra.mrb[100].mxu1 %v6303_v63 }
 0x771   :  { %6201 = vmatprep.mubr.bf16.mxu0 %v6044_v16  ;;  %6486 = vmatprep.mubr.bf16.mxu1 %v6325_v46 }
 0x778   :  { %6202 = vmatmul.mubr.bf16.gmra.mrb[180].mxu0 %v6042_v56  ;;  %6487 = vmatmul.mubr.bf16.gmra.mrb[104].mxu1 %v6316_v43 }
 0x779   :  { %6209 = vmatprep.mubr.bf16.mxu0 %v6048_v5 }
 0x780   :  { %6210 = vmatmul.mubr.bf16.gmra.mrb[184].mxu0 %v6046_v2 }
 0x781   :  { %8702 = vmatprep.mubr.msk.f32.mxu0 %vm6528_vm9, %v6526_v40 }
 0x7d2   :  { %v7708_v20 = vpop.f32.mrb[44].mxu1 }
 0x7d3   :  { %v7709_v14 = vpop.f32.mrb[45].mxu1 }
 0x7d4   :  { %v7710_v11 = vadd.f32 %v7709_v14, %v7708_v20  ;;  %v7711_v10 = vpop.f32.mrb[46].mxu1 }
 0x7d5   :  { %v7712_v19 = vpop.f32.mrb[47].mxu1 }
 0x7d6   :  { %v7713_v27 = vadd.f32 %v7712_v19, %v7711_v10 }
 0x7d9   :  { %v7668_v54 = vpop.f32.mrb[124].mxu0 }
 0x7da   :  { %v7669_v32 = vpop.f32.mrb[125].mxu0  ;;  %v7714_v59 = vpop.f32.mrb[48].mxu1 }
 0x7db   :  { %v7670_v57 = vadd.f32 %v7669_v32, %v7668_v54  ;;  %v7671_v42 = vpop.f32.mrb[126].mxu0  ;;  %v7715_v8 = vpop.f32.mrb[49].mxu1 }
 0x7dc   :  { %v7716_v48 = vadd.f32 %v7715_v8, %v7714_v59  ;;  %v7672_v7 = vpop.f32.mrb[127].mxu0  ;;  %v7717_v12 = vpop.f32.mrb[50].mxu1 }
 0x7dd   :  { %v4875_v38 = vadd.f32 %v7710_v11, %v7670_v57  ;;  %v7673_v58 = vadd.f32 %v7672_v7, %v7671_v42  ;;  %v7718_v29 = vpop.f32.mrb[51].mxu1 }
 0x7de   :  { %v7719_v18 = vadd.f32 %v7718_v29, %v7717_v12 }
 0x7df   :  { %v4878_v26 = vadd.f32 %v7713_v27, %v7673_v58 }
 0x7e1   :  { %v7674_v35 = vpop.f32.mrb[128].mxu0 }
 0x7e2   :  { %v7675_v50 = vpop.f32.mrb[129].mxu0  ;;  %v7720_v30 = vpop.f32.mrb[52].mxu1 }
 0x7e3   :  { %v7676_v4 = vadd.f32 %v7675_v50, %v7674_v35  ;;  %v7677_v13 = vpop.f32.mrb[130].mxu0  ;;  %v7721_v39 = vpop.f32.mrb[53].mxu1 }
 0x7e4   :  { %v7722_v49 = vadd.f32 %v7721_v39, %v7720_v30  ;;  %v7678_v45 = vpop.f32.mrb[131].mxu0  ;;  %v7723_v36 = vpop.f32.mrb[54].mxu1 }
 0x7e5   :  { %v4883_v61 = vadd.f32 %v7716_v48, %v7676_v4  ;;  %v7679_v25 = vadd.f32 %v7678_v45, %v7677_v13  ;;  %v7724_v28 = vpop.f32.mrb[55].mxu1 }
 0x7e6   :  { %v7725_v60 = vadd.f32 %v7724_v28, %v7723_v36 }
 0x7e7   :  { %v4886_v44 = vadd.f32 %v7719_v18, %v7679_v25 }
 0x7ea   :  { %v7680_v24 = vpop.f32.mrb[132].mxu0  ;;  %v7726_v33 = vpop.f32.mrb[56].mxu1 }
 0x7eb   :  { %v7681_v3 = vpop.f32.mrb[133].mxu0  ;;  %v7727_v21 = vpop.f32.mrb[57].mxu1 }
 0x7ec   :  { %v7682_v34 = vadd.f32 %v7681_v3, %v7680_v24  ;;  %v7728_v41 = vadd.f32 %v7727_v21, %v7726_v33  ;;  %v7683_v9 = vpop.f32.mrb[134].mxu0  ;;  %v7729_v1 = vpop.f32.mrb[58].mxu1 }
 0x7ed   :  { %v7684_v52 = vpop.f32.mrb[135].mxu0  ;;  %v7730_v23 = vpop.f32.mrb[59].mxu1 }
 0x7ee   :  { %v4891_v22 = vadd.f32 %v7722_v49, %v7682_v34  ;;  %v7685_v51 = vadd.f32 %v7684_v52, %v7683_v9  ;;  %v7731_v37 = vadd.f32 %v7730_v23, %v7729_v1 }
 0x7f0   :  { %v4894_v63 = vadd.f32 %v7725_v60, %v7685_v51 }
 0x7f2   :  { %v7686_v55 = vpop.f32.mrb[136].mxu0  ;;  %v7788_v31 = vpop.f32.mrb[60].mxu1 }
 0x7f3   :  { %v7687_v16 = vpop.f32.mrb[137].mxu0  ;;  %v7789_v46 = vpop.f32.mrb[61].mxu1 }
 0x7f4   :  { %v7688_v62 = vadd.f32 %v7687_v16, %v7686_v55  ;;  %v7790_v17 = vadd.f32 %v7789_v46, %v7788_v31  ;;  %v7689_v53 = vpop.f32.mrb[138].mxu0  ;;  %v7791_v47 = vpop.f32.mrb[62].mxu1 }
 0x7f5   :  { %v7690_v0 = vpop.f32.mrb[139].mxu0  ;;  %v7792_v56 = vpop.f32.mrb[63].mxu1 }
 0x7f6   :  { %v4899_v43 = vadd.f32 %v7728_v41, %v7688_v62  ;;  %v7691_v15 = vadd.f32 %v7690_v0, %v7689_v53  ;;  %v7793_v5 = vadd.f32 %v7792_v56, %v7791_v47 }
 0x7f8   :  { %v4902_v6 = vadd.f32 %v7731_v37, %v7691_v15 }
 0x7fa   :  { %v7748_v2 = vpop.f32.mrb[140].mxu0  ;;  %v7794_v20 = vpop.f32.mrb[64].mxu1 }
 0x7fb   :  { %v7749_v14 = vpop.f32.mrb[141].mxu0  ;;  %v7795_v11 = vpop.f32.mrb[65].mxu1 }
 0x7fc   :  { %v7750_v10 = vadd.f32 %v7749_v14, %v7748_v2  ;;  %v7796_v19 = vadd.f32 %v7795_v11, %v7794_v20  ;;  %v7751_v27 = vpop.f32.mrb[142].mxu0  ;;  %v7797_v54 = vpop.f32.mrb[66].mxu1 }
 0x7fd   :  { %v7752_v32 = vpop.f32.mrb[143].mxu0  ;;  %v7798_v59 = vpop.f32.mrb[67].mxu1 }
 0x7fe   :  { %v5174_v57 = vadd.f32 %v7750_v10, %v4875_v38  ;;  %v7753_v42 = vadd.f32 %v7752_v32, %v7751_v27  ;;  %v7799_v8 = vadd.f32 %v7798_v59, %v7797_v54 }
 0x800   :  { %v5175_v48 = vadd.f32 %v7753_v42, %v4878_v26  ;;  %v5421_v7 = vadd.f32 %v7790_v17, %v5174_v57 }
 0x802   :  { %v7754_v12 = vpop.f32.mrb[144].mxu0  ;;  %v7800_v58 = vpop.f32.mrb[68].mxu1  ;;  %v5422_v29 = vadd.f32 %v7793_v5, %v5175_v48 }
 0x803   :  { %v7755_v18 = vpop.f32.mrb[145].mxu0  ;;  %v7801_v35 = vpop.f32.mrb[69].mxu1 }
 0x804   :  { %v7756_v50 = vadd.f32 %v7755_v18, %v7754_v12  ;;  %v7802_v30 = vadd.f32 %v7801_v35, %v7800_v58  ;;  %v7757_v4 = vpop.f32.mrb[146].mxu0  ;;  %v7803_v13 = vpop.f32.mrb[70].mxu1 }
 0x805   :  { %v7758_v39 = vpop.f32.mrb[147].mxu0  ;;  %v7804_v49 = vpop.f32.mrb[71].mxu1 }
 0x806   :  { %v5176_v45 = vadd.f32 %v7756_v50, %v4883_v61  ;;  %v7759_v36 = vadd.f32 %v7758_v39, %v7757_v4  ;;  %v7805_v40 = vadd.f32 %v7804_v49, %v7803_v13 }
 0x808   :  { %v5177_v25 = vadd.f32 %v7759_v36, %v4886_v44  ;;  %v5423_v38 = vadd.f32 %v7796_v19, %v5176_v45 }
 0x80a   :  { %v7760_v28 = vpop.f32.mrb[148].mxu0  ;;  %v7806_v60 = vpop.f32.mrb[72].mxu1  ;;  %v5424_v26 = vadd.f32 %v7799_v8, %v5177_v25 }
 0x80b   :  { %v7761_v24 = vpop.f32.mrb[149].mxu0  ;;  %v7807_v33 = vpop.f32.mrb[73].mxu1 }
 0x80c   :  { %v7762_v3 = vadd.f32 %v7761_v24, %v7760_v28  ;;  %v7808_v21 = vadd.f32 %v7807_v33, %v7806_v60  ;;  %v7763_v34 = vpop.f32.mrb[150].mxu0  ;;  %v7809_v41 = vpop.f32.mrb[74].mxu1 }
 0x80d   :  { %v7764_v9 = vpop.f32.mrb[151].mxu0  ;;  %v7810_v1 = vpop.f32.mrb[75].mxu1 }
 0x80e   :  { %v5178_v52 = vadd.f32 %v7762_v3, %v4891_v22  ;;  %v7765_v23 = vadd.f32 %v7764_v9, %v7763_v34  ;;  %v7811_v51 = vadd.f32 %v7810_v1, %v7809_v41 }
 0x810   :  { %v5179_v37 = vadd.f32 %v7765_v23, %v4894_v63  ;;  %v5425_v61 = vadd.f32 %v7802_v30, %v5178_v52 }
 0x812   :  { %v7766_v55 = vpop.f32.mrb[152].mxu0  ;;  %v7868_v31 = vpop.f32.mrb[76].mxu1  ;;  %v5426_v44 = vadd.f32 %v7805_v40, %v5179_v37 }
 0x813   :  { %v7767_v16 = vpop.f32.mrb[153].mxu0  ;;  %v7869_v46 = vpop.f32.mrb[77].mxu1 }
 0x814   :  { %v7768_v62 = vadd.f32 %v7767_v16, %v7766_v55  ;;  %v7870_v17 = vadd.f32 %v7869_v46, %v7868_v31  ;;  %v7769_v53 = vpop.f32.mrb[154].mxu0  ;;  %v7871_v47 = vpop.f32.mrb[78].mxu1 }
 0x815   :  { %v7770_v0 = vpop.f32.mrb[155].mxu0  ;;  %v7872_v56 = vpop.f32.mrb[79].mxu1 }
 0x816   :  { %v5180_v15 = vadd.f32 %v7768_v62, %v4899_v43  ;;  %v7771_v5 = vadd.f32 %v7770_v0, %v7769_v53  ;;  %v7873_v2 = vadd.f32 %v7872_v56, %v7871_v47 }
 0x818   :  { %v5181_v20 = vadd.f32 %v7771_v5, %v4902_v6  ;;  %v5427_v22 = vadd.f32 %v7808_v21, %v5180_v15 }
 0x81a   :  { %v7828_v14 = vpop.f32.mrb[156].mxu0  ;;  %v7874_v11 = vpop.f32.mrb[80].mxu1  ;;  %v5428_v63 = vadd.f32 %v7811_v51, %v5181_v20 }
 0x81b   :  { %v7829_v10 = vpop.f32.mrb[157].mxu0  ;;  %v7875_v19 = vpop.f32.mrb[81].mxu1 }
 0x81c   :  { %v7830_v27 = vadd.f32 %v7829_v10, %v7828_v14  ;;  %v7876_v54 = vadd.f32 %v7875_v19, %v7874_v11  ;;  %v7831_v32 = vpop.f32.mrb[158].mxu0  ;;  %v7877_v59 = vpop.f32.mrb[82].mxu1 }
 0x81d   :  { %v7832_v57 = vpop.f32.mrb[159].mxu0  ;;  %v7878_v42 = vpop.f32.mrb[83].mxu1 }
 0x81e   :  { %v5731_v8 = vadd.f32 %v7830_v27, %v5421_v7  ;;  %v7833_v48 = vadd.f32 %v7832_v57, %v7831_v32  ;;  %v7879_v12 = vadd.f32 %v7878_v42, %v7877_v59 }
 0x820   :  { %v5732_v58 = vadd.f32 %v7833_v48, %v5422_v29  ;;  %v5978_v43 = vadd.f32 %v7870_v17, %v5731_v8 }
 0x822   :  { %v7834_v18 = vpop.f32.mrb[160].mxu0  ;;  %v7880_v35 = vpop.f32.mrb[84].mxu1  ;;  %v5979_v6 = vadd.f32 %v7873_v2, %v5732_v58 }
 0x823   :  { %v7835_v50 = vpop.f32.mrb[161].mxu0  ;;  %v7881_v30 = vpop.f32.mrb[85].mxu1 }
 0x824   :  { %v7836_v4 = vadd.f32 %v7835_v50, %v7834_v18  ;;  %v7882_v13 = vadd.f32 %v7881_v30, %v7880_v35  ;;  %v7837_v39 = vpop.f32.mrb[162].mxu0  ;;  %v7883_v49 = vpop.f32.mrb[86].mxu1 }
 0x825   :  { %v7838_v45 = vpop.f32.mrb[163].mxu0  ;;  %v7884_v36 = vpop.f32.mrb[87].mxu1 }
 0x826   :  { %v5733_v40 = vadd.f32 %v7836_v4, %v5423_v38  ;;  %v7839_v25 = vadd.f32 %v7838_v45, %v7837_v39  ;;  %v7885_v28 = vadd.f32 %v7884_v36, %v7883_v49 }
 0x828   :  { %v5734_v60 = vadd.f32 %v7839_v25, %v5424_v26  ;;  %v11291_v7 = vadd.f32 %v7876_v54, %v5733_v40 }
 0x82a   :  { %v7840_v24 = vpop.f32.mrb[164].mxu0  ;;  %v7886_v29 = vpop.f32.mrb[88].mxu1  ;;  %v11293_v33 = vadd.f32 %v7879_v12, %v5734_v60 }
 0x82b   :  { %v7841_v3 = vpop.f32.mrb[165].mxu0  ;;  %v7887_v21 = vpop.f32.mrb[89].mxu1 }
 0x82c   :  { %v7842_v34 = vadd.f32 %v7841_v3, %v7840_v24  ;;  %v7888_v41 = vadd.f32 %v7887_v21, %v7886_v29  ;;  %v7843_v9 = vpop.f32.mrb[166].mxu0  ;;  %v7889_v1 = vpop.f32.mrb[90].mxu1 }
 0x82d   :  { %v7844_v52 = vpop.f32.mrb[167].mxu0  ;;  %v7890_v23 = vpop.f32.mrb[91].mxu1 }
 0x82e   :  { %v5735_v51 = vadd.f32 %v7842_v34, %v5425_v61  ;;  %v7845_v37 = vadd.f32 %v7844_v52, %v7843_v9  ;;  %v7891_v38 = vadd.f32 %v7890_v23, %v7889_v1 }
 0x830   :  { %v5736_v55 = vadd.f32 %v7845_v37, %v5426_v44  ;;  %v11295_v31 = vadd.f32 %v7882_v13, %v5735_v51 }
 0x832   :  { %v7846_v26 = vpop.f32.mrb[168].mxu0  ;;  %v11297_v16 = vadd.f32 %v7885_v28, %v5736_v55 }
 0x833   :  { %v7948_v46 = vpop.f32.mrb[92].mxu1  ;;  %v7847_v62 = vpop.f32.mrb[169].mxu0 }
 0x834   :  { %v7848_v17 = vadd.f32 %v7847_v62, %v7846_v26  ;;  %v7949_v53 = vpop.f32.mrb[93].mxu1  ;;  %v7849_v47 = vpop.f32.mrb[170].mxu0 }
 0x835   :  { %v7950_v0 = vadd.f32 %v7949_v53, %v7948_v46  ;;  %v7951_v56 = vpop.f32.mrb[94].mxu1  ;;  %v7850_v15 = vpop.f32.mrb[171].mxu0 }
 0x836   :  { %v5737_v5 = vadd.f32 %v7848_v17, %v5427_v22  ;;  %v7851_v2 = vadd.f32 %v7850_v15, %v7849_v47  ;;  %v7952_v20 = vpop.f32.mrb[95].mxu1 }
 0x837   :  { %v7953_v61 = vadd.f32 %v7952_v20, %v7951_v56 }
 0x838   :  { %v5738_v14 = vadd.f32 %v7851_v2, %v5428_v63  ;;  %v11299_v11 = vadd.f32 %v7888_v41, %v5737_v5  ;;  %v11306_v63 = vld [vmem:[%s11346_s6] ss:$0 sm:$0xff] }
 0x83a   :  { %v11301_v44 = vadd.f32 %v7891_v38, %v5738_v14 }
 0x83b   :  { %v7908_v10 = vpop.f32.mrb[172].mxu0  ;;  %v7954_v19 = vpop.f32.mrb[96].mxu1 }
 0x83c   :  { %v7909_v27 = vpop.f32.mrb[173].mxu0  ;;  %v7955_v54 = vpop.f32.mrb[97].mxu1 }
 0x83d   :  { %v7910_v32 = vadd.f32 %v7909_v27, %v7908_v10  ;;  %v7956_v59 = vadd.f32 %v7955_v54, %v7954_v19  ;;  %v7911_v57 = vpop.f32.mrb[174].mxu0  ;;  %v7957_v42 = vpop.f32.mrb[98].mxu1 }
 0x83e   :  { %v7912_v8 = vpop.f32.mrb[175].mxu0  ;;  %v7958_v48 = vpop.f32.mrb[99].mxu1 }
 0x83f   :  { %v6218_v12 = vadd.f32 %v7910_v32, %v5978_v43  ;;  %v7913_v22 = vadd.f32 %v7912_v8, %v7911_v57  ;;  %v7959_v58 = vadd.f32 %v7958_v48, %v7957_v42 }
 0x841   :  { %v6495_v18 = vadd.f32 %v7950_v0, %v6218_v12  ;;  %v6219_v35 = vadd.f32 %v7913_v22, %v5979_v6 }
 0x843   :  { %v6496_v50 = vadd.f32 %v7953_v61, %v6219_v35  ;;  %v7914_v30 = vpop.f32.mrb[176].mxu0  ;;  %v7960_v4 = vpop.f32.mrb[100].mxu1  ;;  %v6510_v13 = vadd.f32 %v11306_v63, %v6495_v18 }
 0x844   :  { %v7915_v39 = vpop.f32.mrb[177].mxu0  ;;  %v7961_v49 = vpop.f32.mrb[101].mxu1 }
 0x845   :  { %v7916_v45 = vadd.f32 %v7915_v39, %v7914_v30  ;;  %v7962_v36 = vadd.f32 %v7961_v49, %v7960_v4  ;;  %v7917_v40 = vpop.f32.mrb[178].mxu0  ;;  %v7963_v43 = vpop.f32.mrb[102].mxu1  ;;  %v6511_v25 = vadd.f32 %v11306_v63, %v6496_v50  ;;  %v6518_v24 = vmax.f32 %v6510_v13, 0.0 }
 0x846   :  { %v7918_v28 = vpop.f32.mrb[179].mxu0  ;;  %v7964_v60 = vpop.f32.mrb[103].mxu1 }
 0x847   :  { %v6220_v29 = vadd.f32 %v7916_v45, %v11291_v7  ;;  %v7919_v3 = vadd.f32 %v7918_v28, %v7917_v40  ;;  %v7965_v6 = vadd.f32 %v7964_v60, %v7963_v43  ;;  %v6519_v21 = vmax.f32 %v6511_v25, 0.0 }
 0x849   :  { %v6497_v34 = vadd.f32 %v7956_v59, %v6220_v29  ;;  %v6221_v41 = vadd.f32 %v7919_v3, %v11293_v33  ;;  %v8705_v9 = vpack.c.bf16 %v6519_v21, %v6518_v24 }
 0x84b   :  { %v6498_v1 = vadd.f32 %v7959_v58, %v6221_v41  ;;  %v7920_v52 = vpop.f32.mrb[180].mxu0  ;;  %v7966_v23 = vpop.f32.mrb[104].mxu1  ;;  %8706 = vmatprep.subr.bf16.mxu0 %v8705_v9  ;;  %v6512_v51 = vadd.f32 %v11306_v63, %v6497_v34 }
 0x84c   :  { %v7921_v37 = vpop.f32.mrb[181].mxu0  ;;  %v7967_v38 = vpop.f32.mrb[105].mxu1  ;;  %8708 = vmatpush3.bf16.msra.mxu0 %v8705_v9 }
 0x84d   :  { %v7922_v55 = vadd.f32 %v7921_v37, %v7920_v52  ;;  %v7968_v26 = vadd.f32 %v7967_v38, %v7966_v23  ;;  %v7923_v46 = vpop.f32.mrb[182].mxu0  ;;  %v7969_v7 = vpop.f32.mrb[106].mxu1  ;;  %v6513_v62 = vadd.f32 %v11306_v63, %v6498_v1  ;;  %v6520_v47 = vmax.f32 %v6512_v51, 0.0 }
 0x84e   :  { %v7924_v17 = vpop.f32.mrb[183].mxu0  ;;  %v7970_v53 = vpop.f32.mrb[107].mxu1 }
 0x84f   :  { %v6222_v33 = vadd.f32 %v7922_v55, %v11295_v31  ;;  %v7925_v0 = vadd.f32 %v7924_v17, %v7923_v46  ;;  %v7971_v56 = vadd.f32 %v7970_v53, %v7969_v7  ;;  %v6521_v15 = vmax.f32 %v6513_v62, 0.0 }
 0x851   :  { %v6499_v5 = vadd.f32 %v7962_v36, %v6222_v33  ;;  %v6223_v2 = vadd.f32 %v7925_v0, %v11297_v16  ;;  %v8709_v20 = vpack.c.bf16 %v6521_v15, %v6520_v47 }
 0x853   :  { %v6500_v61 = vadd.f32 %v7965_v6, %v6223_v2  ;;  %v7926_v14 = vpop.f32.mrb[184].mxu0  ;;  %8710 = vmatprep.subr.bf16.mxu0 %v8709_v20  ;;  %v6514_v10 = vadd.f32 %v11306_v63, %v6499_v5 }
 0x854   :  { %v7927_v19 = vpop.f32.mrb[185].mxu0  ;;  %8712 = vmatpush3.bf16.msra.mxu0 %v8709_v20 }
 0x855   :  { %v7928_v27 = vadd.f32 %v7927_v19, %v7926_v14  ;;  %v7929_v54 = vpop.f32.mrb[186].mxu0  ;;  %v6515_v32 = vadd.f32 %v11306_v63, %v6500_v61  ;;  %v6522_v42 = vmax.f32 %v6514_v10, 0.0 }
 0x856   :  { %v7930_v59 = vpop.f32.mrb[187].mxu0 }
 0x857   :  { %v6224_v31 = vadd.f32 %v7928_v27, %v11299_v11  ;;  %v7931_v57 = vadd.f32 %v7930_v59, %v7929_v54  ;;  %v6523_v8 = vmax.f32 %v6515_v32, 0.0  ;;  %v6527_v11 = vld [vmem:[%s11347_s7 + $0x8] sm:$0xff] }
 0x859   :  { %v6501_v48 = vadd.f32 %v7968_v26, %v6224_v31  ;;  %v6225_v16 = vadd.f32 %v7931_v57, %v11301_v44  ;;  %v8713_v12 = vpack.c.bf16 %v6523_v8, %v6522_v42 }
 0x85b   :  { %v6502_v22 = vadd.f32 %v7971_v56, %v6225_v16  ;;  %8714 = vmatprep.subr.bf16.mxu0 %v8713_v12  ;;  %v6516_v58 = vadd.f32 %v11306_v63, %v6501_v48 }
 0x85c   :  { %8716 = vmatpush3.bf16.msra.mxu0 %v8713_v12 }
 0x85d   :  { %v6517_v18 = vadd.f32 %v11306_v63, %v6502_v22  ;;  %v6524_v35 = vmax.f32 %v6516_v58, 0.0 }
 0x85f   :  { %v6525_v50 = vmax.f32 %v6517_v18, 0.0 }
 0x861   :  { %v8717_v30 = vpack.c.bf16 %v6525_v50, %v6524_v35 }
 0x863   :  { %8718 = vmatprep.subr.bf16.mxu0 %v8717_v30 }
 0x864   :  { %8720 = vmatpush3.bf16.msra.mxu0 %v8717_v30 }
 0x867   :  { %8703 = vmatmul.mubr.msk.f32.vlgmr.msra.gmra.mrb[188].mxu0 %vm6528_vm9, %v6527_v11 }
 0x93a   :  { %v8704_v44 = vpop.f32.mrb[188].mxu0 }
 0x93b   :  { %6611 = vst.msk [vmem:[#allocation4 + $0x8] sm:$0xff] %vm6528_vm9, %v8704_v44  ;;  %v6601_v4 = vpop.f32.mrb[189].mxu0 }
 0x93c   :  { %6610 = vst.msk [vmem:[#allocation4] sm:$0xff] %vm6528_vm9, %v6601_v4 }
 0x93d   :  { %9259 = shalt.err (!%p9256_p4)
}
 0x93e   :  { %s9260_s3 = scalar_lea.hbm %s11348_s8, 256 }
 0x93f   :  { %p9261_p5 = scmp.ne.s32.totalorder %s11348_s8, %s9260_s3  ;;  %p9264_p6 = scmp.lt.u32.totalorder %s9260_s3, %s11348_s8 }
 0x941   :  { %p9266_p7 = pnand %p9264_p6, %p9261_p5 }
 0x943   :  { %9269 = shalt.err (!%p9266_p7)
}
 0x944   :  { %s9278_s21 = smov 128   ;;  %s9279_s23 = smov 8  }
 0x945   :  { %6623 = dma.vmem_to_hbm [thread:$0]  %s6618_s14, 256, %s11348_s8, [#allocation5], %s9278_s21, %s9278_s21, %s9279_s23  }
 0x946   :  { %9270 = dma.done.wait [#allocation5], 256  }
 0x947   :  { %9271 = vsyncadd [#allocation5], 4294967040 }
 0x948   :  { %6627 = vsyncpa [#allocation5], 1 }

</bundles_post_ra>
